<compile_context>
chip_gen: v7x
topology: tpu7x:2x2x1
jax: 0.10.0
libtpu: 0.0.40
codegen_flags: <defaults>
</compile_context>

<pallas_src>
import functools

import jax
import jax.numpy as jnp
from jax.experimental import pallas as pl
from jax.experimental.pallas import tpu as pltpu

HIDDEN_1 = 512
HIDDEN_2 = 512
OUT_DIM = 103
OUT_PAD = 128                      # lane-dense padded output width (keep at 128)

M_FLOOR = 256                      # minimum M tile (full MXU rows on v6e/v7x)
MAX_TILE_M = 1024                  # upper bound; also capped by X_TILE_BUDGET
X_TILE_BUDGET = 12 * 1024 * 1024   # budget for the double-buffered f32 x tile
K_RESIDENT_MAX = 2048              # padded input_dim above this -> K-tiled fc1
TILE_K = 2048                      # default K tile for the K-tiled path
VMEM_LIMIT = 32 * 1024 * 1024      # leave headroom on v7x (64 MiB physical)


def _round_up(x, m):
    return ((x + m - 1) // m) * m


def _k_layout(input_dim, tile_k=None):
    """Returns (k_pad, tile_k).  tile_k is None when w1 stays fully resident."""
    if tile_k is not None:
        return _round_up(input_dim, tile_k), tile_k
    k_pad = _round_up(input_dim, 128)
    if k_pad <= K_RESIDENT_MAX:
        return k_pad, None
    return _round_up(input_dim, TILE_K), TILE_K


def _choose_tile_m(batch, k_block):
    """Pick tile_m (multiple of M_FLOOR) that keeps the double-buffered f32 x
    tile within budget, minimizes batch-padding waste, prefers grid_m >= 2
    (both v7x TensorCores busy), then prefers larger tiles (fewer grid steps)."""
    cap = (X_TILE_BUDGET // (2 * 4 * k_block)) // M_FLOOR * M_FLOOR
    cap = max(M_FLOOR, min(MAX_TILE_M, cap))
    best_key, best = None, None
    for t in range(M_FLOOR, cap + 1, M_FLOOR):
        padded = _round_up(max(batch, M_FLOOR), t)
        grid_m = padded // t
        waste = padded - batch
        key = (waste, 0 if grid_m >= 2 else 1, -t)
        if best_key is None or key < best_key:
            best_key, best = key, (t, padded)
    return best


# ----------------------------------------------------------------------------
# Kernels
# ----------------------------------------------------------------------------
def _mlp_kernel(x_ref, w1_ref, b1_ref, w2_ref, b2_ref, w3_ref, b3_ref, o_ref):
    """All weights VMEM-resident; one batch tile per grid step."""
    x = x_ref[...].astype(jnp.bfloat16)                 # cast in-kernel (no HBM copy)
    h1 = jnp.dot(x, w1_ref[...], preferred_element_type=jnp.float32)
    h1 = jnp.maximum(h1 + b1_ref[...], 0.0)
    # Dropout(0.2) -> identity (eval mode).
    h2 = jnp.dot(h1.astype(jnp.bfloat16), w2_ref[...],
                 preferred_element_type=jnp.float32)
    h2 = jnp.maximum(h2 + b2_ref[...], 0.0)
    out = jnp.dot(h2.astype(jnp.bfloat16), w3_ref[...],
                  preferred_element_type=jnp.float32)
    o_ref[...] = (out + b3_ref[...]).astype(o_ref.dtype)


def _mlp_kernel_ktiled(x_ref, w1_ref, b1_ref, w2_ref, b2_ref, w3_ref, b3_ref,
                       o_ref, h1_acc):
    """fc1 contraction tiled over K with an f32 VMEM accumulator."""
    k = pl.program_id(1)

    @pl.when(k == 0)
    def _():
        h1_acc[...] = jnp.zeros_like(h1_acc)

    h1_acc[...] += jnp.dot(x_ref[...].astype(jnp.bfloat16), w1_ref[...],
                           preferred_element_type=jnp.float32)

    @pl.when(k == pl.num_programs(1) - 1)
    def _():
        h1 = jnp.maximum(h1_acc[...] + b1_ref[...], 0.0)
        h2 = jnp.dot(h1.astype(jnp.bfloat16), w2_ref[...],
                     preferred_element_type=jnp.float32)
        h2 = jnp.maximum(h2 + b2_ref[...], 0.0)
        out = jnp.dot(h2.astype(jnp.bfloat16), w3_ref[...],
                      preferred_element_type=jnp.float32)
        o_ref[...] = (out + b3_ref[...]).astype(o_ref.dtype)


# ----------------------------------------------------------------------------
# One-time parameter preparation (hoisted out of the per-call forward)
# ----------------------------------------------------------------------------
def prepare_params(params, tile_k=None):
    """Pad + bf16-cast the weights once; reuse the result across forward calls."""
    w1, b1 = params["w1"], params["b1"]
    w2, b2 = params["w2"], params["b2"]
    w3, b3 = params["w3"], params["b3"]
    input_dim = w1.shape[0]
    k_pad, _ = _k_layout(input_dim, tile_k)

    w1_p = jnp.zeros((k_pad, HIDDEN_1), jnp.float32).at[:input_dim, :].set(w1)
    w1_p = w1_p.astype(jnp.bfloat16)
    w2_p = w2.astype(jnp.bfloat16)
    w3_p = jnp.zeros((HIDDEN_2, OUT_PAD), jnp.float32).at[:, :OUT_DIM].set(w3)
    w3_p = w3_p.astype(jnp.bfloat16)

    b1_p = b1.reshape(1, HIDDEN_1).astype(jnp.float32)
    b2_p = b2.reshape(1, HIDDEN_2).astype(jnp.float32)
    b3_p = (jnp.zeros((1, OUT_PAD), jnp.float32)
            .at[:, :OUT_DIM].set(b3.reshape(1, OUT_DIM)))

    return {"w1": w1_p, "b1": b1_p, "w2": w2_p, "b2": b2_p,
            "w3": w3_p, "b3": b3_p}


# ----------------------------------------------------------------------------
# Forward
# ----------------------------------------------------------------------------
@functools.partial(jax.jit, static_argnames=("tile_k",))
def deep_neural_net1_forward(x, prepared, *, tile_k=None):
    """x: (batch, input_dim) float32.  prepared: output of prepare_params."""
    w1, b1 = prepared["w1"], prepared["b1"]
    w2, b2 = prepared["w2"], prepared["b2"]
    w3, b3 = prepared["w3"], prepared["b3"]

    batch, in_features = x.shape
    k_pad, tile_k_eff = _k_layout(in_features, tile_k)
    if w1.shape[0] != k_pad:
        raise ValueError("prepared params do not match x's feature dim / tile_k")

    k_block = tile_k_eff if tile_k_eff is not None else k_pad
    tile_m, padded_batch = _choose_tile_m(batch, k_block)
    grid_m = padded_batch // tile_m

    # Pad x only when necessary; x stays f32 (cast to bf16 inside the kernel).
    if padded_batch != batch or k_pad != in_features:
        x = jnp.pad(x, ((0, padded_batch - batch), (0, k_pad - in_features)))

    flops = 2 * padded_batch * (k_pad * HIDDEN_1
                                + HIDDEN_1 * HIDDEN_2
                                + HIDDEN_2 * OUT_PAD)
    bytes_accessed = (x.size * 4 + w1.size * 2 + w2.size * 2 + w3.size * 2
                      + (b1.size + b2.size + b3.size) * 4
                      + padded_batch * OUT_PAD * 4)
    cost = pl.CostEstimate(flops=flops, transcendentals=0,
                           bytes_accessed=bytes_accessed)
    out_shape = jax.ShapeDtypeStruct((padded_batch, OUT_PAD), jnp.float32)

    if tile_k_eff is None:
        # ------------- resident-weight path (typical input_dim) -------------
        out_padded = pl.pallas_call(
            _mlp_kernel,
            out_shape=out_shape,
            grid_spec=pltpu.PrefetchScalarGridSpec(
                num_scalar_prefetch=0,
                grid=(grid_m,),
                in_specs=[
                    pl.BlockSpec((tile_m, k_pad), lambda i: (i, 0)),      # x tile
                    pl.BlockSpec((k_pad, HIDDEN_1), lambda i: (0, 0)),    # w1
                    pl.BlockSpec((1, HIDDEN_1), lambda i: (0, 0)),        # b1
                    pl.BlockSpec((HIDDEN_1, HIDDEN_2), lambda i: (0, 0)), # w2
                    pl.BlockSpec((1, HIDDEN_2), lambda i: (0, 0)),        # b2
                    pl.BlockSpec((HIDDEN_2, OUT_PAD), lambda i: (0, 0)),  # w3
                    pl.BlockSpec((1, OUT_PAD), lambda i: (0, 0)),         # b3
                ],
                out_specs=pl.BlockSpec((tile_m, OUT_PAD), lambda i: (i, 0)),
            ),
            compiler_params=pltpu.CompilerParams(
                dimension_semantics=("parallel",),
                vmem_limit_bytes=VMEM_LIMIT,
            ),
            cost_estimate=cost,
        )(x, w1, b1, w2, b2, w3, b3)
    else:
        # ------------- K-tiled fc1 path (large input_dim) --------------------
        grid_k = k_pad // tile_k_eff
        out_padded = pl.pallas_call(
            _mlp_kernel_ktiled,
            out_shape=out_shape,
            grid_spec=pltpu.PrefetchScalarGridSpec(
                num_scalar_prefetch=0,
                grid=(grid_m, grid_k),
                in_specs=[
                    pl.BlockSpec((tile_m, tile_k_eff), lambda i, k: (i, k)),
                    pl.BlockSpec((tile_k_eff, HIDDEN_1), lambda i, k: (k, 0)),
                    pl.BlockSpec((1, HIDDEN_1), lambda i, k: (0, 0)),
                    pl.BlockSpec((HIDDEN_1, HIDDEN_2), lambda i, k: (0, 0)),
                    pl.BlockSpec((1, HIDDEN_2), lambda i, k: (0, 0)),
                    pl.BlockSpec((HIDDEN_2, OUT_PAD), lambda i, k: (0, 0)),
                    pl.BlockSpec((1, OUT_PAD), lambda i, k: (0, 0)),
                ],
                out_specs=pl.BlockSpec((tile_m, OUT_PAD), lambda i, k: (i, 0)),
                scratch_shapes=[pltpu.VMEM((tile_m, HIDDEN_1), jnp.float32)],
            ),
            compiler_params=pltpu.CompilerParams(
                dimension_semantics=("parallel", "arbitrary"),
                vmem_limit_bytes=VMEM_LIMIT,
            ),
            cost_estimate=cost,
        )(x, w1, b1, w2, b2, w3, b3)

    return out_padded[:batch, :OUT_DIM]


# ----------------------------------------------------------------------------
# Param init + pure-JAX reference
# ----------------------------------------------------------------------------
def init_params(key, input_dim):
    """Deterministic init mimicking PyTorch nn.Linear default:
    U(-1/sqrt(fan_in), 1/sqrt(fan_in)) for both weight and bias."""
    keys = jax.random.split(key, 6)

    def linear(kw, kb, fan_in, fan_out):
        bound = 1.0 / jnp.sqrt(fan_in)
        w = jax.random.uniform(kw, (fan_in, fan_out), jnp.float32, -bound, bound)
        b = jax.random.uniform(kb, (1, fan_out), jnp.float32, -bound, bound)
        return w, b

    w1, b1 = linear(keys[0], keys[1], input_dim, HIDDEN_1)
    w2, b2 = linear(keys[2], keys[3], HIDDEN_1, HIDDEN_2)
    w3, b3 = linear(keys[4], keys[5], HIDDEN_2, OUT_DIM)
    return {"w1": w1, "b1": b1, "w2": w2, "b2": b2, "w3": w3, "b3": b3}


def _reference(x, p):
    h1 = jnp.maximum(x @ p["w1"] + p["b1"], 0.0)
    h2 = jnp.maximum(h1 @ p["w2"] + p["b2"], 0.0)
    return h2 @ p["w3"] + p["b3"]


if __name__ == "__main__":
    key = jax.random.PRNGKey(0)
    k_x1, k_p1, k_x2, k_p2 = jax.random.split(key, 4)

    # ---- test 1: small batch, resident-weight path -------------------------
    batch, input_dim = 8, 64
    x = jax.random.normal(k_x1, (batch, input_dim), jnp.float32)
    params = init_params(k_p1, input_dim)
    prepared = prepare_params(params)                       # one-time prep

    out = jax.block_until_ready(deep_neural_net1_forward(x, prepared))
    ref = _reference(x, params)
    assert out.shape == (batch, OUT_DIM), out.shape
    assert jnp.allclose(out, ref, atol=5e-2, rtol=5e-2), "mismatch (resident path)"

    # ---- test 2: awkward batch, K-tiled fc1 path (forced small tile_k) -----
    batch2, input_dim2 = 300, 384
    x2 = jax.random.normal(k_x2, (batch2, input_dim2), jnp.float32)
    params2 = init_params(k_p2, input_dim2)
    prepared2 = prepare_params(params2, tile_k=128)

    out2 = jax.block_until_ready(
        deep_neural_net1_forward(x2, prepared2, tile_k=128))
    ref2 = _reference(x2, params2)
    assert out2.shape == (batch2, OUT_DIM), out2.shape
    assert jnp.allclose(out2, ref2, atol=5e-2, rtol=5e-2), "mismatch (K-tiled path)"

    print("KERNEL_OK")
</pallas_src>

<mosaic_0001>
module attributes {stable_mosaic.version = 11 : i64} {
  func.func @_mlp_kernel(%arg0: i32, %arg1: memref<256x128xf32, #tpu.memory_space<vmem>>, %arg2: memref<128x512xbf16, #tpu.memory_space<vmem>>, %arg3: memref<1x512xf32, #tpu.memory_space<vmem>>, %arg4: memref<512x512xbf16, #tpu.memory_space<vmem>>, %arg5: memref<1x512xf32, #tpu.memory_space<vmem>>, %arg6: memref<512x128xbf16, #tpu.memory_space<vmem>>, %arg7: memref<1x128xf32, #tpu.memory_space<vmem>>, %arg8: memref<256x128xf32, #tpu.memory_space<vmem>>) attributes {dimension_semantics = [#tpu.dimension_semantics<parallel>], iteration_bounds = array<i64: 1>, scalar_prefetch = 0 : i64, scratch_operands = 0 : i64, tpu.core_type = #tpu.core_type<tc>, window_params = [{transform_indices = @transform_0, window_bounds = array<i64: 256, 128>}, {pipeline_mode = #tpu.pipeline_mode<synchronous>, transform_indices = @transform_1, window_bounds = array<i64: 128, 512>}, {pipeline_mode = #tpu.pipeline_mode<synchronous>, transform_indices = @transform_2, window_bounds = array<i64: 1, 512>}, {pipeline_mode = #tpu.pipeline_mode<synchronous>, transform_indices = @transform_3, window_bounds = array<i64: 512, 512>}, {pipeline_mode = #tpu.pipeline_mode<synchronous>, transform_indices = @transform_4, window_bounds = array<i64: 1, 512>}, {pipeline_mode = #tpu.pipeline_mode<synchronous>, transform_indices = @transform_5, window_bounds = array<i64: 512, 128>}, {pipeline_mode = #tpu.pipeline_mode<synchronous>, transform_indices = @transform_6, window_bounds = array<i64: 1, 128>}, {transform_indices = @transform_7, window_bounds = array<i64: 256, 128>}]} {
    %c0 = arith.constant 0 : index
    %c0_0 = arith.constant 0 : index
    %0 = vector.load %arg1[%c0, %c0_0] : memref<256x128xf32, #tpu.memory_space<vmem>>, vector<256x128xf32>
    %1 = arith.truncf %0 : vector<256x128xf32> to vector<256x128xbf16>
    %c0_1 = arith.constant 0 : index
    %c0_2 = arith.constant 0 : index
    %2 = vector.load %arg2[%c0_1, %c0_2] : memref<128x512xbf16, #tpu.memory_space<vmem>>, vector<128x512xbf16>
    %cst = arith.constant dense<0.000000e+00> : vector<256x512xf32>
    %3 = tpu.matmul %1, %2, %cst {dimension_numbers = #tpu.dot_dimension_numbers<[1], [0], [0], [1], [0, 0, 1, 1], [], []>} : vector<256x128xbf16>, vector<128x512xbf16>, vector<256x512xf32> -> vector<256x512xf32>
    %c0_3 = arith.constant 0 : index
    %c0_4 = arith.constant 0 : index
    %4 = vector.load %arg3[%c0_3, %c0_4] : memref<1x512xf32, #tpu.memory_space<vmem>>, vector<1x512xf32>
    %5 = vector.broadcast %4 : vector<1x512xf32> to vector<256x512xf32>
    %6 = arith.addf %3, %5 : vector<256x512xf32>
    %cst_5 = arith.constant 0.000000e+00 : f32
    %7 = vector.broadcast %cst_5 : f32 to vector<256x512xf32>
    %8 = arith.maximumf %6, %7 : vector<256x512xf32>
    %9 = arith.truncf %8 : vector<256x512xf32> to vector<256x512xbf16>
    %c0_6 = arith.constant 0 : index
    %c0_7 = arith.constant 0 : index
    %10 = vector.load %arg4[%c0_6, %c0_7] : memref<512x512xbf16, #tpu.memory_space<vmem>>, vector<512x512xbf16>
    %cst_8 = arith.constant dense<0.000000e+00> : vector<256x512xf32>
    %11 = tpu.matmul %9, %10, %cst_8 {dimension_numbers = #tpu.dot_dimension_numbers<[1], [0], [0], [1], [0, 0, 1, 1], [], []>} : vector<256x512xbf16>, vector<512x512xbf16>, vector<256x512xf32> -> vector<256x512xf32>
    %c0_9 = arith.constant 0 : index
    %c0_10 = arith.constant 0 : index
    %12 = vector.load %arg5[%c0_9, %c0_10] : memref<1x512xf32, #tpu.memory_space<vmem>>, vector<1x512xf32>
    %13 = vector.broadcast %12 : vector<1x512xf32> to vector<256x512xf32>
    %14 = arith.addf %11, %13 : vector<256x512xf32>
    %cst_11 = arith.constant 0.000000e+00 : f32
    %15 = vector.broadcast %cst_11 : f32 to vector<256x512xf32>
    %16 = arith.maximumf %14, %15 : vector<256x512xf32>
    %17 = arith.truncf %16 : vector<256x512xf32> to vector<256x512xbf16>
    %c0_12 = arith.constant 0 : index
    %c0_13 = arith.constant 0 : index
    %18 = vector.load %arg6[%c0_12, %c0_13] : memref<512x128xbf16, #tpu.memory_space<vmem>>, vector<512x128xbf16>
    %cst_14 = arith.constant dense<0.000000e+00> : vector<256x128xf32>
    %19 = tpu.matmul %17, %18, %cst_14 {dimension_numbers = #tpu.dot_dimension_numbers<[1], [0], [0], [1], [0, 0, 1, 1], [], []>} : vector<256x512xbf16>, vector<512x128xbf16>, vector<256x128xf32> -> vector<256x128xf32>
    %c0_15 = arith.constant 0 : index
    %c0_16 = arith.constant 0 : index
    %20 = vector.load %arg7[%c0_15, %c0_16] : memref<1x128xf32, #tpu.memory_space<vmem>>, vector<1x128xf32>
    %21 = vector.broadcast %20 : vector<1x128xf32> to vector<256x128xf32>
    %22 = arith.addf %19, %21 : vector<256x128xf32>
    %c0_17 = arith.constant 0 : index
    %c0_18 = arith.constant 0 : index
    %23 = vector.load %arg8[%c0_17, %c0_18] : memref<256x128xf32, #tpu.memory_space<vmem>>, vector<256x128xf32>
    tpu.vector_store %arg8[%c0_17, %c0_18], %22 {strides = array<i32>} : memref<256x128xf32, #tpu.memory_space<vmem>>, vector<256x128xf32>,
    return
  }
  func.func @transform_0(%arg0: i32) -> (i32, i32) {
    %c0_i32 = arith.constant 0 : i32
    %c0_i32_0 = arith.constant 0 : i32
    return %arg0, %c0_i32 : i32, i32
  }
  func.func @transform_1(%arg0: i32) -> (i32, i32) {
    %c0_i32 = arith.constant 0 : i32
    %c0_i32_0 = arith.constant 0 : i32
    %c0_i32_1 = arith.constant 0 : i32
    return %c0_i32, %c0_i32_0 : i32, i32
  }
  func.func @transform_2(%arg0: i32) -> (i32, i32) {
    %c0_i32 = arith.constant 0 : i32
    %c0_i32_0 = arith.constant 0 : i32
    %c0_i32_1 = arith.constant 0 : i32
    return %c0_i32, %c0_i32_0 : i32, i32
  }
  func.func @transform_3(%arg0: i32) -> (i32, i32) {
    %c0_i32 = arith.constant 0 : i32
    %c0_i32_0 = arith.constant 0 : i32
    %c0_i32_1 = arith.constant 0 : i32
    return %c0_i32, %c0_i32_0 : i32, i32
  }
  func.func @transform_4(%arg0: i32) -> (i32, i32) {
    %c0_i32 = arith.constant 0 : i32
    %c0_i32_0 = arith.constant 0 : i32
    %c0_i32_1 = arith.constant 0 : i32
    return %c0_i32, %c0_i32_0 : i32, i32
  }
  func.func @transform_5(%arg0: i32) -> (i32, i32) {
    %c0_i32 = arith.constant 0 : i32
    %c0_i32_0 = arith.constant 0 : i32
    %c0_i32_1 = arith.constant 0 : i32
    return %c0_i32, %c0_i32_0 : i32, i32
  }
  func.func @transform_6(%arg0: i32) -> (i32, i32) {
    %c0_i32 = arith.constant 0 : i32
    %c0_i32_0 = arith.constant 0 : i32
    %c0_i32_1 = arith.constant 0 : i32
    return %c0_i32, %c0_i32_0 : i32, i32
  }
  func.func @transform_7(%arg0: i32) -> (i32, i32) {
    %c0_i32 = arith.constant 0 : i32
    %c0_i32_0 = arith.constant 0 : i32
    return %arg0, %c0_i32 : i32, i32
  }
}

</mosaic_0001>

<bundles_post_ra>
// kernel: deep_neural_net1_forward.1
= control target key start
LH: loop header
LB: loop body
LE: loop exit
PB: predicated region body
PF: predicated region fallthrough
CT: control target
= control target key end

     0   :  { %12 = vsyncpa [#allocation3], 0  ;;  %s5128_s0 = inlined_call_operand.vmem [shape: f32[256,128], index: 0, kind: input, shape index: {}]   ;;  %s5129_s1 = inlined_call_operand.vmem [shape: bf16[128,512], index: 1, kind: input, shape index: {}]   ;;  %s5130_s2 = inlined_call_operand.vmem [shape: f32[1,512], index: 2, kind: input, shape index: {}]   ;;  %s5131_s3 = inlined_call_operand.hbm [shape: bf16[512,512], index: 3, kind: input, shape index: {}]   ;;  %s5132_s4 = inlined_call_operand.vmem [shape: f32[1,512], index: 4, kind: input, shape index: {}]   ;;  %s5133_s5 = inlined_call_operand.hbm [shape: bf16[512,128], index: 5, kind: input, shape index: {}]   ;;  %s5134_s6 = inlined_call_operand.vmem [shape: f32[1,128], index: 6, kind: input, shape index: {}]   ;;  %s5135_s7 = inlined_call_operand.vmem [shape: f32[256,128], index: 7, kind: output, shape index: {}]  }
   0x1   :  { %13 = vsyncpa [#allocation5], 0  ;;  %s4272_s24 = smov [#allocation2]   ;;  %s4224_s28 = scalar_lea.hbm %s5131_s3, 16384 }
   0x2   :  { %s25_s25 = sshll.u32 %s4272_s24, 4  ;;  %p4225_p0 = scmp.ne.s32.totalorder %s5131_s3, %s4224_s28  ;;  %s26_s25 = int_to_ptr.vmem [resolvable:$true] %s25_s25 }
   0x3   :  { %p4228_p1 = scmp.lt.u32.totalorder %s4224_s28, %s5131_s3 }
   0x5   :  { %p4230_p2 = pnand %p4228_p1, %p4225_p0 }
   0x7   :  { %4233 = shalt.err (!%p4230_p2)
}
   0x8   :  { %s4234_s10 = scalar_lea.vmem %s26_s25, 16384  ;;  %p4239_p4 = scmp.lt.s32.totalorder %s26_s25, %s26_s25 }
   0x9   :  { %p4235_p3 = scmp.ne.s32.totalorder %s26_s25, %s4234_s10  ;;  %p4240_p5 = scmp.lt.s32.totalorder %s4234_s10, %s4234_s10 }
   0xb   :  { %p4241_p6 = por %p4240_p5, %p4239_p4 }
   0xd   :  { %p4242_p7 = pnand %p4241_p6, %p4235_p3 }
   0xf   :  { %4245 = shalt.err (!%p4242_p7)
}
  0x10   :  { %s4273_s11 = smov 256   ;;  %s4274_s12 = smov 16  }
  0x11   :  { %31 = dma.hbm_to_vmem [thread:$0]  %s5131_s3, 16384, %s26_s25, [#allocation3], %s4273_s11, %s4273_s11, %s4274_s12  }
  0x12   :  { %s4275_s15 = smov [#allocation4]   ;;  %s4246_s19 = scalar_lea.hbm %s5133_s5, 4096 }
  0x13   :  { %s39_s16 = sshll.u32 %s4275_s15, 4  ;;  %p4247_p8 = scmp.ne.s32.totalorder %s5133_s5, %s4246_s19  ;;  %s40_s16 = int_to_ptr.vmem [resolvable:$true] %s39_s16 }
  0x14   :  { %p4250_p9 = scmp.lt.u32.totalorder %s4246_s19, %s5133_s5 }
  0x16   :  { %p4252_p10 = pnand %p4250_p9, %p4247_p8 }
  0x18   :  { %4255 = shalt.err (!%p4252_p10)
}
  0x19   :  { %s4256_s24 = scalar_lea.vmem %s40_s16, 4096  ;;  %p4261_p12 = scmp.lt.s32.totalorder %s40_s16, %s40_s16 }
  0x1a   :  { %p4257_p11 = scmp.ne.s32.totalorder %s40_s16, %s4256_s24  ;;  %p4262_p13 = scmp.lt.s32.totalorder %s4256_s24, %s4256_s24 }
  0x1c   :  { %p4263_p0 = por %p4262_p13, %p4261_p12 }
  0x1e   :  { %p4264_p1 = pnand %p4263_p0, %p4257_p11 }
  0x20   :  { %4267 = shalt.err (!%p4264_p1)
}
  0x21   :  { %s4276_s3 = smov 64   ;;  %s4277_s25 = smov 4  }
  0x22   :  { %45 = dma.hbm_to_vmem [thread:$0]  %s5133_s5, 4096, %s40_s16, [#allocation5], %s4276_s3, %s4276_s3, %s4277_s25  }
  0x23   :  { %4268 = dma.done.wait [#allocation3], 16384  }
  0x24   :  { %4269 = vsyncadd [#allocation3], 4294950912 }
  0x25   :  { %4270 = dma.done.wait [#allocation5], 4096  }
  0x26   :  { %4271 = vsyncadd [#allocation5], 4294963200  ;;  %v4278_v0 = vmov 0   ;;  %v3952_v1 = vld [vmem:[%s5129_s1 + $0x4] ss:$16 sps:$4 sm:$0xff]   ;;  %v56_v25 = vld [vmem:[%s5128_s0 + $0x8] sm:$0xff] }
  0x27   :  { %349 = vmatprep.mubr.bf16.mxu0 %v4278_v0  ;;  %542 = vmatprep.mubr.bf16.mxu1 %v4278_v0  ;;  %v3954_v2 = vld [vmem:[%s5129_s1] ss:$16 sps:$4 sm:$0xff]   ;;  %v3955_v3 = vld [vmem:[%s5129_s1 + $0x24] ss:$16 sps:$4 sm:$0xff]   ;;  %v3976_v12 = vld [vmem:[%s5129_s1 + $0xc] ss:$16 sps:$4 sm:$0xff]  }
  0x28   :  { %317 = vmatprep.subr.bf16.mxu0 %v3952_v1  ;;  %v3957_v4 = vld [vmem:[%s5129_s1 + $0x20] ss:$16 sps:$4 sm:$0xff]   ;;  %v3958_v5 = vld [vmem:[%s5129_s1 + $0x44] ss:$16 sps:$4 sm:$0xff]   ;;  %v3978_v14 = vld [vmem:[%s5129_s1 + $0x8] ss:$16 sps:$4 sm:$0xff]   ;;  %510 = vmatprep.subr.bf16.mxu1 %v3976_v12 }
  0x29   :  { %318 = vmatpush1.bf16.msra.mxu0 %v3954_v2  ;;  %v3960_v6 = vld [vmem:[%s5129_s1 + $0x40] ss:$16 sps:$4 sm:$0xff]   ;;  %v3961_v7 = vld [vmem:[%s5129_s1 + $0x64] ss:$16 sps:$4 sm:$0xff]   ;;  %v3979_v15 = vld [vmem:[%s5129_s1 + $0x2c] ss:$16 sps:$4 sm:$0xff]   ;;  %511 = vmatpush1.bf16.msra.mxu1 %v3978_v14 }
  0x2a   :  { %319 = vmatprep.subr.bf16.mxu0 %v3955_v3  ;;  %v3963_v8 = vld [vmem:[%s5129_s1 + $0x60] ss:$16 sps:$4 sm:$0xff]   ;;  %v3964_v9 = vld [vmem:[%s5129_s1 + $0x84] ss:$16 sps:$4 sm:$0xff]   ;;  %v3981_v16 = vld [vmem:[%s5129_s1 + $0x28] ss:$16 sps:$4 sm:$0xff]   ;;  %512 = vmatprep.subr.bf16.mxu1 %v3979_v15 }
  0x2b   :  { %v3966_v10 = vld [vmem:[%s5129_s1 + $0x80] ss:$16 sps:$4 sm:$0xff]   ;;  %v3967_v11 = vld [vmem:[%s5129_s1 + $0xa4] ss:$16 sps:$4 sm:$0xff]   ;;  %v3982_v18 = vld [vmem:[%s5129_s1 + $0x4c] ss:$16 sps:$4 sm:$0xff]  }
  0x2c   :  { %v3969_v13 = vld [vmem:[%s5129_s1 + $0xa0] ss:$16 sps:$4 sm:$0xff]   ;;  %v3970_v17 = vld [vmem:[%s5129_s1 + $0xc4] ss:$16 sps:$4 sm:$0xff]   ;;  %v3984_v20 = vld [vmem:[%s5129_s1 + $0x48] ss:$16 sps:$4 sm:$0xff]  }
  0x2d   :  { %320 = vmatpush1.bf16.msra.mxu0 %v3957_v4  ;;  %v3972_v19 = vld [vmem:[%s5129_s1 + $0xc0] ss:$16 sps:$4 sm:$0xff]   ;;  %513 = vmatpush1.bf16.msra.mxu1 %v3981_v16  ;;  %v3973_v21 = vld [vmem:[%s5129_s1 + $0xe4] ss:$16 sps:$4 sm:$0xff]   ;;  %v3985_v22 = vld [vmem:[%s5129_s1 + $0x6c] ss:$16 sps:$4 sm:$0xff]  }
  0x2e   :  { %321 = vmatprep.subr.bf16.mxu0 %v3958_v5  ;;  %514 = vmatprep.subr.bf16.mxu1 %v3982_v18  ;;  %v3975_v23 = vld [vmem:[%s5129_s1 + $0xe0] ss:$16 sps:$4 sm:$0xff]   ;;  %v3987_v26 = vld [vmem:[%s5129_s1 + $0x68] ss:$16 sps:$4 sm:$0xff]   ;;  %v3988_v27 = vld [vmem:[%s5129_s1 + $0x8c] ss:$16 sps:$4 sm:$0xff]  }
  0x2f   :  { %v55_v24 = vld [vmem:[%s5128_s0] sm:$0xff]  ;;  %v3990_v30 = vld [vmem:[%s5129_s1 + $0x88] ss:$16 sps:$4 sm:$0xff]   ;;  %v3991_v31 = vld [vmem:[%s5129_s1 + $0xac] ss:$16 sps:$4 sm:$0xff]  }
  0x30   :  { %v87_v28 = vpack.c.bf16 %v56_v25, %v55_v24  ;;  %v4002_v29 = vld [vmem:[#allocation2 + $0x4] ss:$16 sps:$4 sm:$0xff]   ;;  %v4000_v32 = vld [vmem:[#allocation2] ss:$16 sps:$4 sm:$0xff]   ;;  %v58_v35 = vld [vmem:[%s5128_s0 + $0x18] sm:$0xff] }
  0x31   :  { %322 = vmatpush1.bf16.msra.mxu0 %v3960_v6  ;;  %515 = vmatpush1.bf16.msra.mxu1 %v3984_v20  ;;  %v4008_v33 = vld [vmem:[#allocation2 + $0x24] ss:$16 sps:$4 sm:$0xff]   ;;  %v3993_v36 = vld [vmem:[%s5129_s1 + $0xa8] ss:$16 sps:$4 sm:$0xff]   ;;  %v3994_v37 = vld [vmem:[%s5129_s1 + $0xcc] ss:$16 sps:$4 sm:$0xff]  }
  0x32   :  { %323 = vmatprep.subr.bf16.mxu0 %v3961_v7  ;;  %516 = vmatprep.subr.bf16.mxu1 %v3985_v22  ;;  %v57_v34 = vld [vmem:[%s5128_s0 + $0x10] sm:$0xff]  ;;  %v3996_v41 = vld [vmem:[%s5129_s1 + $0xc8] ss:$16 sps:$4 sm:$0xff]   ;;  %v3997_v42 = vld [vmem:[%s5129_s1 + $0xec] ss:$16 sps:$4 sm:$0xff]  }
  0x33   :  { %v4006_v38 = vld [vmem:[#allocation2 + $0x20] ss:$16 sps:$4 sm:$0xff]   ;;  %v4014_v39 = vld [vmem:[#allocation2 + $0x44] ss:$16 sps:$4 sm:$0xff]   ;;  %v88_v40 = vpack.c.bf16 %v58_v35, %v57_v34  ;;  %v60_v46 = vld [vmem:[%s5128_s0 + $0x28] sm:$0xff] }
  0x34   :  { %v4012_v43 = vld [vmem:[#allocation2 + $0x40] ss:$16 sps:$4 sm:$0xff]   ;;  %v4020_v44 = vld [vmem:[#allocation2 + $0x64] ss:$16 sps:$4 sm:$0xff]   ;;  %v3999_v47 = vld [vmem:[%s5129_s1 + $0xe8] ss:$16 sps:$4 sm:$0xff]  }
  0x35   :  { %324 = vmatpush1.bf16.msra.mxu0 %v3963_v8  ;;  %517 = vmatpush1.bf16.msra.mxu1 %v3987_v26  ;;  %v59_v45 = vld [vmem:[%s5128_s0 + $0x20] sm:$0xff]  ;;  %v4005_v48 = vld [vmem:[#allocation2 + $0xc] ss:$16 sps:$4 sm:$0xff]   ;;  %v4003_v52 = vld [vmem:[#allocation2 + $0x8] ss:$16 sps:$4 sm:$0xff]  }
  0x36   :  { %325 = vmatprep.subr.bf16.mxu0 %v3964_v9  ;;  %518 = vmatprep.subr.bf16.mxu1 %v3988_v27  ;;  %v4018_v49 = vld [vmem:[#allocation2 + $0x60] ss:$16 sps:$4 sm:$0xff]   ;;  %v4026_v50 = vld [vmem:[#allocation2 + $0x84] ss:$16 sps:$4 sm:$0xff]   ;;  %v89_v51 = vpack.c.bf16 %v60_v46, %v59_v45  ;;  %v4011_v53 = vld [vmem:[#allocation2 + $0x2c] ss:$16 sps:$4 sm:$0xff]  }
  0x37   :  { %v4024_v54 = vld [vmem:[#allocation2 + $0x80] ss:$16 sps:$4 sm:$0xff]   ;;  %v4032_v56 = vld [vmem:[#allocation2 + $0xa4] ss:$16 sps:$4 sm:$0xff]   ;;  %v62_v57 = vld [vmem:[%s5128_s0 + $0x38] sm:$0xff] }
  0x38   :  { %v61_v55 = vld [vmem:[%s5128_s0 + $0x30] sm:$0xff]  ;;  %v4009_v58 = vld [vmem:[#allocation2 + $0x28] ss:$16 sps:$4 sm:$0xff]   ;;  %v4017_v59 = vld [vmem:[#allocation2 + $0x4c] ss:$16 sps:$4 sm:$0xff]  }
  0x39   :  { %326 = vmatpush1.bf16.msra.mxu0 %v3966_v10  ;;  %519 = vmatpush1.bf16.msra.mxu1 %v3990_v30  ;;  %v4030_v60 = vld [vmem:[#allocation2 + $0xa0] ss:$16 sps:$4 sm:$0xff]   ;;  %v90_v61 = vpack.c.bf16 %v62_v57, %v61_v55  ;;  %v4015_v62 = vld [vmem:[#allocation2 + $0x48] ss:$16 sps:$4 sm:$0xff]   ;;  %v4023_v63 = vld [vmem:[#allocation2 + $0x6c] ss:$16 sps:$4 sm:$0xff]  }
  0x3a   :  { %327 = vmatprep.subr.bf16.mxu0 %v3967_v11  ;;  %520 = vmatprep.subr.bf16.mxu1 %v3991_v31  ;;  %v4038_v1 = vld [vmem:[#allocation2 + $0xc4] ss:$16 sps:$4 sm:$0xff]   ;;  %v4036_v2 = vld [vmem:[#allocation2 + $0xc0] ss:$16 sps:$4 sm:$0xff]   ;;  %v64_v5 = vld [vmem:[%s5128_s0 + $0x48] sm:$0xff] }
  0x3b   :  { %v63_v3 = vld [vmem:[%s5128_s0 + $0x40] sm:$0xff]  ;;  %v4021_v6 = vld [vmem:[#allocation2 + $0x68] ss:$16 sps:$4 sm:$0xff]   ;;  %v4029_v7 = vld [vmem:[#allocation2 + $0x8c] ss:$16 sps:$4 sm:$0xff]  }
  0x3c   :  { %v4044_v4 = vld [vmem:[#allocation2 + $0xe4] ss:$16 sps:$4 sm:$0xff]   ;;  %v4042_v8 = vld [vmem:[#allocation2 + $0xe0] ss:$16 sps:$4 sm:$0xff]   ;;  %v91_v9 = vpack.c.bf16 %v64_v5, %v63_v3  ;;  %v4027_v10 = vld [vmem:[#allocation2 + $0x88] ss:$16 sps:$4 sm:$0xff]  }
  0x3d   :  { %328 = vmatpush1.bf16.msra.mxu0 %v3969_v13  ;;  %521 = vmatpush1.bf16.msra.mxu1 %v3993_v36  ;;  %v4035_v11 = vld [vmem:[#allocation2 + $0xac] ss:$16 sps:$4 sm:$0xff]   ;;  %v4050_v12 = vld [vmem:[#allocation2 + $0x104] ss:$16 sps:$4 sm:$0xff]   ;;  %v4048_v13 = vld [vmem:[#allocation2 + $0x100] ss:$16 sps:$4 sm:$0xff]  }
  0x3e   :  { %329 = vmatprep.subr.bf16.mxu0 %v3970_v17  ;;  %522 = vmatprep.subr.bf16.mxu1 %v3994_v37  ;;  %v65_v14 = vld [vmem:[%s5128_s0 + $0x50] sm:$0xff]  ;;  %v66_v16 = vld [vmem:[%s5128_s0 + $0x58] sm:$0xff]  ;;  %v67_v26 = vld [vmem:[%s5128_s0 + $0x60] sm:$0xff] }
  0x3f   :  { %v4056_v15 = vld [vmem:[#allocation2 + $0x124] ss:$16 sps:$4 sm:$0xff]   ;;  %v4033_v17 = vld [vmem:[#allocation2 + $0xa8] ss:$16 sps:$4 sm:$0xff]   ;;  %v4041_v18 = vld [vmem:[#allocation2 + $0xcc] ss:$16 sps:$4 sm:$0xff]   ;;  %v92_v20 = vpack.c.bf16 %v66_v16, %v65_v14 }
  0x40   :  { %v4047_v22 = vld [vmem:[#allocation2 + $0xec] ss:$16 sps:$4 sm:$0xff]   ;;  %v4062_v24 = vld [vmem:[#allocation2 + $0x144] ss:$16 sps:$4 sm:$0xff]   ;;  %v4066_v30 = vld [vmem:[#allocation2 + $0x160] ss:$16 sps:$4 sm:$0xff]  }
  0x41   :  { %330 = vmatpush1.bf16.msra.mxu0 %v3972_v19  ;;  %523 = vmatpush1.bf16.msra.mxu1 %v3996_v41  ;;  %v4054_v19 = vld [vmem:[#allocation2 + $0x120] ss:$16 sps:$4 sm:$0xff]   ;;  %v4068_v25 = vld [vmem:[#allocation2 + $0x164] ss:$16 sps:$4 sm:$0xff]   ;;  %v68_v27 = vld [vmem:[%s5128_s0 + $0x68] sm:$0xff] }
  0x42   :  { %331 = vmatprep.subr.bf16.mxu0 %v3973_v21  ;;  %524 = vmatprep.subr.bf16.mxu1 %v3997_v42  ;;  %v4039_v21 = vld [vmem:[#allocation2 + $0xc8] ss:$16 sps:$4 sm:$0xff]   ;;  %v93_v31 = vpack.c.bf16 %v68_v27, %v67_v26  ;;  %v4059_v34 = vld [vmem:[#allocation2 + $0x12c] ss:$16 sps:$4 sm:$0xff]   ;;  %v4072_v35 = vld [vmem:[#allocation2 + $0x180] ss:$16 sps:$4 sm:$0xff]  }
  0x43   :  { %v4080_v36 = vld [vmem:[#allocation2 + $0x1a4] ss:$16 sps:$4 sm:$0xff]   ;;  %v4078_v41 = vld [vmem:[#allocation2 + $0x1a0] ss:$16 sps:$4 sm:$0xff]   ;;  %v4071_v45 = vld [vmem:[#allocation2 + $0x16c] ss:$16 sps:$4 sm:$0xff]  }
  0x44   :  { %v69_v37 = vld [vmem:[%s5128_s0 + $0x70] sm:$0xff]  ;;  %v74_v55 = vld [vmem:[%s5128_s0 + $0x98] sm:$0xff]  ;;  %v79_v3 = vld [vmem:[%s5128_s0 + $0xc0] sm:$0xff] }
  0x45   :  { %332 = vmatpush1.bf16.msra.mxu0 %v3975_v23  ;;  %525 = vmatpush1.bf16.msra.mxu1 %v3999_v47  ;;  %v4060_v23 = vld [vmem:[#allocation2 + $0x140] ss:$16 sps:$4 sm:$0xff]   ;;  %v4089_v57 = vld [vmem:[#allocation2 + $0x1cc] ss:$16 sps:$4 sm:$0xff]  }
  0x46   :  { %1685 = vmatprep.subr.bf16.mxu0 %v4002_v29  ;;  %2071 = vmatprep.subr.bf16.mxu1 %v4005_v48  ;;  %v4053_v29 = vld [vmem:[#allocation2 + $0x10c] ss:$16 sps:$4 sm:$0xff]   ;;  %v4084_v46 = vld [vmem:[#allocation2 + $0x1c0] ss:$16 sps:$4 sm:$0xff]  }
  0x47   :  { %v71_v47 = vld [vmem:[%s5128_s0 + $0x80] sm:$0xff]  ;;  %v72_v48 = vld [vmem:[%s5128_s0 + $0x88] sm:$0xff] }
  0x48   :  { %350 = vmatmul.mubr.bf16.vlgmr.msra.gmra.mrb[0].mxu0 %v87_v28  ;;  %543 = vmatmul.mubr.bf16.vlgmr.msra.gmra.mrb[0].mxu1 %v87_v28  ;;  %v4045_v28 = vld [vmem:[#allocation2 + $0xe8] ss:$16 sps:$4 sm:$0xff]   ;;  %v4095_v5 = vld [vmem:[#allocation2 + $0x1ec] ss:$16 sps:$4 sm:$0xff]  }
  0x49   :  { %359 = vmatprep.mubr.bf16.mxu0 %v4278_v0  ;;  %1686 = vmatpush1.bf16.msra.mxu0 %v4000_v32  ;;  %v4051_v32 = vld [vmem:[#allocation2 + $0x108] ss:$16 sps:$4 sm:$0xff]  }
  0x4a   :  { %1687 = vmatprep.subr.bf16.mxu0 %v4008_v33  ;;  %2072 = vmatpush1.bf16.msra.mxu1 %v4003_v52  ;;  %v4074_v33 = vld [vmem:[#allocation2 + $0x184] ss:$16 sps:$4 sm:$0xff]   ;;  %v4075_v52 = vld [vmem:[#allocation2 + $0x188] ss:$16 sps:$4 sm:$0xff]  }
  0x4b   :  { %552 = vmatprep.mubr.bf16.mxu1 %v4278_v0  ;;  %2073 = vmatprep.subr.bf16.mxu1 %v4011_v53  ;;  %v4083_v53 = vld [vmem:[#allocation2 + $0x1ac] ss:$16 sps:$4 sm:$0xff]  }
  0x4c   :  { %v84_v16 = vld [vmem:[%s5128_s0 + $0xe8] sm:$0xff] }
  0x4d   :  { %1688 = vmatpush1.bf16.msra.mxu0 %v4006_v38  ;;  %v70_v38 = vld [vmem:[%s5128_s0 + $0x78] sm:$0xff] }
  0x4e   :  { %1689 = vmatprep.subr.bf16.mxu0 %v4014_v39  ;;  %2074 = vmatpush1.bf16.msra.mxu1 %v4009_v58  ;;  %v4057_v39 = vld [vmem:[#allocation2 + $0x128] ss:$16 sps:$4 sm:$0xff]   ;;  %v94_v42 = vpack.c.bf16 %v70_v38, %v69_v37 }
  0x4f   :  { %2075 = vmatprep.subr.bf16.mxu1 %v4017_v59  ;;  %v4087_v59 = vld [vmem:[#allocation2 + $0x1c8] ss:$16 sps:$4 sm:$0xff]  }
  0x50   :  { %360 = vmatmul.mubr.bf16.gmra.mrb[4].mxu0 %v88_v40  ;;  %553 = vmatmul.mubr.bf16.gmra.mrb[4].mxu1 %v88_v40  ;;  %v4065_v40 = vld [vmem:[#allocation2 + $0x14c] ss:$16 sps:$4 sm:$0xff]  }
  0x51   :  { %369 = vmatprep.mubr.bf16.mxu0 %v4278_v0  ;;  %1690 = vmatpush1.bf16.msra.mxu0 %v4012_v43  ;;  %v4063_v43 = vld [vmem:[#allocation2 + $0x148] ss:$16 sps:$4 sm:$0xff]  }
  0x52   :  { %1691 = vmatprep.subr.bf16.mxu0 %v4020_v44  ;;  %562 = vmatprep.mubr.bf16.mxu1 %v4278_v0  ;;  %v4086_v44 = vld [vmem:[#allocation2 + $0x1c4] ss:$16 sps:$4 sm:$0xff]  }
  0x53   :  { %2076 = vmatpush1.bf16.msra.mxu1 %v4015_v62 }
  0x54   :  { %2077 = vmatprep.subr.bf16.mxu1 %v4023_v63  ;;  %v77_v63 = vld [vmem:[%s5128_s0 + $0xb0] sm:$0xff] }
  0x55   :  { %1692 = vmatpush1.bf16.msra.mxu0 %v4018_v49  ;;  %v4069_v49 = vld [vmem:[#allocation2 + $0x168] ss:$16 sps:$4 sm:$0xff]  }
  0x56   :  { %1693 = vmatprep.subr.bf16.mxu0 %v4026_v50  ;;  %v4077_v50 = vld [vmem:[#allocation2 + $0x18c] ss:$16 sps:$4 sm:$0xff]  }
  0x57   :  { %2078 = vmatpush1.bf16.msra.mxu1 %v4021_v6  ;;  %v80_v6 = vld [vmem:[%s5128_s0 + $0xc8] sm:$0xff] }
  0x58   :  { %370 = vmatmul.mubr.bf16.gmra.mrb[8].mxu0 %v89_v51  ;;  %2079 = vmatprep.subr.bf16.mxu1 %v4029_v7  ;;  %v4090_v7 = vld [vmem:[#allocation2 + $0x1e0] ss:$16 sps:$4 sm:$0xff]  }
  0x59   :  { %379 = vmatprep.mubr.bf16.mxu0 %v4278_v0  ;;  %1694 = vmatpush1.bf16.msra.mxu0 %v4024_v54  ;;  %v73_v54 = vld [vmem:[%s5128_s0 + $0x90] sm:$0xff] }
  0x5a   :  { %1695 = vmatprep.subr.bf16.mxu0 %v4032_v56  ;;  %563 = vmatmul.mubr.bf16.gmra.mrb[8].mxu1 %v89_v51  ;;  %v95_v51 = vpack.c.bf16 %v72_v48, %v71_v47  ;;  %v4081_v56 = vld [vmem:[#allocation2 + $0x1a8] ss:$16 sps:$4 sm:$0xff]   ;;  %v96_v58 = vpack.c.bf16 %v74_v55, %v73_v54  ;;  %v4107_v47 = vld [vmem:[#allocation2 + $0x22c] ss:$16 sps:$4 sm:$0xff]   ;;  %v4102_v55 = vld [vmem:[#allocation2 + $0x220] ss:$16 sps:$4 sm:$0xff]  }
  0x5b   :  { %572 = vmatprep.mubr.bf16.mxu1 %v4278_v0  ;;  %2080 = vmatpush1.bf16.msra.mxu1 %v4027_v10  ;;  %v81_v10 = vld [vmem:[%s5128_s0 + $0xd0] sm:$0xff] }
  0x5c   :  { %2081 = vmatprep.subr.bf16.mxu1 %v4035_v11  ;;  %v82_v11 = vld [vmem:[%s5128_s0 + $0xd8] sm:$0xff] }
  0x5d   :  { %1696 = vmatpush1.bf16.msra.mxu0 %v4030_v60  ;;  %v75_v60 = vld [vmem:[%s5128_s0 + $0xa0] sm:$0xff]  ;;  %v100_v14 = vpack.c.bf16 %v82_v11, %v81_v10  ;;  %v4119_v11 = vld [vmem:[#allocation2 + $0x26c] ss:$16 sps:$4 sm:$0xff]  }
  0x5e   :  { %1697 = vmatprep.subr.bf16.mxu0 %v4038_v1  ;;  %v78_v1 = vld [vmem:[%s5128_s0 + $0xb8] sm:$0xff]  ;;  %v4116_v10 = vld [vmem:[#allocation2 + $0x264] ss:$16 sps:$4 sm:$0xff]  }
  0x5f   :  { %2082 = vmatpush1.bf16.msra.mxu1 %v4033_v17 }
  0x60   :  { %380 = vmatmul.mubr.bf16.gmra.mrb[12].mxu0 %v90_v61  ;;  %2083 = vmatprep.subr.bf16.mxu1 %v4041_v18  ;;  %v85_v18 = vld [vmem:[%s5128_s0 + $0xf0] sm:$0xff] }
  0x61   :  { %389 = vmatprep.mubr.bf16.mxu0 %v4278_v0  ;;  %1698 = vmatpush1.bf16.msra.mxu0 %v4036_v2  ;;  %v98_v2 = vpack.c.bf16 %v78_v1, %v77_v63 }
  0x62   :  { %1699 = vmatprep.subr.bf16.mxu0 %v4044_v4  ;;  %573 = vmatmul.mubr.bf16.gmra.mrb[12].mxu1 %v90_v61  ;;  %v76_v61 = vld [vmem:[%s5128_s0 + $0xa8] sm:$0xff]  ;;  %v4092_v4 = vld [vmem:[#allocation2 + $0x1e4] ss:$16 sps:$4 sm:$0xff]  }
  0x63   :  { %582 = vmatprep.mubr.bf16.mxu1 %v4278_v0  ;;  %2084 = vmatpush1.bf16.msra.mxu1 %v4039_v21  ;;  %v97_v62 = vpack.c.bf16 %v76_v61, %v75_v60  ;;  %v137_v21 = vlaneseq  ;;  %v4113_v60 = vld [vmem:[#allocation2 + $0x24c] ss:$16 sps:$4 sm:$0xff]  }
  0x64   :  { %2085 = vmatprep.subr.bf16.mxu1 %v4047_v22 }
  0x65   :  { %1700 = vmatpush1.bf16.msra.mxu0 %v4042_v8  ;;  %v4093_v8 = vld [vmem:[#allocation2 + $0x1e8] ss:$16 sps:$4 sm:$0xff]   ;;  %v4567_v22 = vshrl.u32 %v137_v21, 7 }
  0x66   :  { %1701 = vmatprep.subr.bf16.mxu0 %v4050_v12  ;;  %v4098_v12 = vld [vmem:[#allocation2 + $0x204] ss:$16 sps:$4 sm:$0xff]  }
  0x67   :  { %2086 = vmatpush1.bf16.msra.mxu1 %v4045_v28  ;;  %v147_v48 = vsub.s32 2, %v4567_v22 }
  0x68   :  { %390 = vmatmul.mubr.bf16.gmra.mrb[16].mxu0 %v91_v9  ;;  %2087 = vmatprep.subr.bf16.mxu1 %v4053_v29 }
  0x69   :  { %399 = vmatprep.mubr.bf16.mxu0 %v4278_v0  ;;  %1702 = vmatpush1.bf16.msra.mxu0 %v4048_v13  ;;  %v4101_v13 = vld [vmem:[#allocation2 + $0x20c] ss:$16 sps:$4 sm:$0xff]  }
  0x6a   :  { %1703 = vmatprep.subr.bf16.mxu0 %v4056_v15  ;;  %583 = vmatmul.mubr.bf16.gmra.mrb[16].mxu1 %v91_v9  ;;  %v99_v9 = vpack.c.bf16 %v80_v6, %v79_v3  ;;  %v83_v15 = vld [vmem:[%s5128_s0 + $0xe0] sm:$0xff]  ;;  %v4111_v6 = vld [vmem:[#allocation2 + $0x248] ss:$16 sps:$4 sm:$0xff]  }
  0x6b   :  { %592 = vmatprep.mubr.bf16.mxu1 %v4278_v0  ;;  %2088 = vmatpush1.bf16.msra.mxu1 %v4051_v32  ;;  %v101_v17 = vpack.c.bf16 %v84_v16, %v83_v15 }
  0x6c   :  { %2089 = vmatprep.subr.bf16.mxu1 %v4059_v34 }
  0x6d   :  { %1704 = vmatpush1.bf16.msra.mxu0 %v4054_v19  ;;  %v86_v19 = vld [vmem:[%s5128_s0 + $0xf8] sm:$0xff] }
  0x6e   :  { %1705 = vmatprep.subr.bf16.mxu0 %v4062_v24  ;;  %v135_v24 = vld [vmem:[%s5130_s2] sm:$0xf] }
  0x6f   :  { %2090 = vmatpush1.bf16.msra.mxu1 %v4057_v39  ;;  %v4594_v61 = vrot.slane %v135_v24, %v147_v48 }
  0x70   :  { %400 = vmatmul.mubr.bf16.gmra.mrb[20].mxu0 %v92_v20  ;;  %2091 = vmatprep.subr.bf16.mxu1 %v4065_v40 }
  0x71   :  { %409 = vmatprep.mubr.bf16.mxu0 %v4278_v0  ;;  %1706 = vmatpush1.bf16.msra.mxu0 %v4060_v23  ;;  %v139_v23 = vsub.s32 0, %v4567_v22 }
  0x72   :  { %1707 = vmatprep.subr.bf16.mxu0 %v4068_v25  ;;  %593 = vmatmul.mubr.bf16.gmra.mrb[20].mxu1 %v92_v20  ;;  %v102_v20 = vpack.c.bf16 %v86_v19, %v85_v18  ;;  %v143_v25 = vsub.s32 1, %v4567_v22 }
  0x73   :  { %602 = vmatprep.mubr.bf16.mxu1 %v4278_v0  ;;  %2092 = vmatpush1.bf16.msra.mxu1 %v4063_v43  ;;  %v4576_v26 = vrot.slane %v135_v24, %v139_v23  ;;  %v4099_v43 = vld [vmem:[#allocation2 + $0x208] ss:$16 sps:$4 sm:$0xff]  }
  0x74   :  { %2093 = vmatprep.subr.bf16.mxu1 %v4071_v45  ;;  %v4580_v27 = vrot.slane %v135_v24, %v143_v25 }
  0x75   :  { %1708 = vmatpush1.bf16.msra.mxu0 %v4066_v30 }
  0x76   :  { %1709 = vmatprep.subr.bf16.mxu0 %v4074_v33 }
  0x77   :  { %2094 = vmatpush1.bf16.msra.mxu1 %v4069_v49 }
  0x78   :  { %410 = vmatmul.mubr.bf16.gmra.mrb[24].mxu0 %v93_v31  ;;  %2095 = vmatprep.subr.bf16.mxu1 %v4077_v50 }
  0x79   :  { %419 = vmatprep.mubr.bf16.mxu0 %v4278_v0  ;;  %1710 = vmatpush1.bf16.msra.mxu0 %v4072_v35 }
  0x7a   :  { %1711 = vmatprep.subr.bf16.mxu0 %v4080_v36  ;;  %603 = vmatmul.mubr.bf16.gmra.mrb[24].mxu1 %v93_v31 }
  0x7b   :  { %612 = vmatprep.mubr.bf16.mxu1 %v4278_v0  ;;  %2096 = vmatpush1.bf16.msra.mxu1 %v4075_v52 }
  0x7c   :  { %2097 = vmatprep.subr.bf16.mxu1 %v4083_v53 }
  0x7d   :  { %1712 = vmatpush1.bf16.msra.mxu0 %v4078_v41 }
  0x7e   :  { %1713 = vmatprep.subr.bf16.mxu0 %v4086_v44 }
  0x7f   :  { %2098 = vmatpush1.bf16.msra.mxu1 %v4081_v56  ;;  %v4105_v56 = vld [vmem:[#allocation2 + $0x228] ss:$16 sps:$4 sm:$0xff]  }
  0x80   :  { %420 = vmatmul.mubr.bf16.gmra.mrb[28].mxu0 %v94_v42  ;;  %2099 = vmatprep.subr.bf16.mxu1 %v4089_v57 }
  0x81   :  { %429 = vmatprep.mubr.bf16.mxu0 %v4278_v0  ;;  %1714 = vmatpush1.bf16.msra.mxu0 %v4084_v46  ;;  %v4104_v46 = vld [vmem:[#allocation2 + $0x224] ss:$16 sps:$4 sm:$0xff]  }
  0x82   :  { %613 = vmatmul.mubr.bf16.gmra.mrb[28].mxu1 %v94_v42  ;;  %1715 = vmatprep.subr.bf16.mxu0 %v4092_v4  ;;  %v4096_v42 = vld [vmem:[#allocation2 + $0x200] ss:$16 sps:$4 sm:$0xff]  }
  0x83   :  { %622 = vmatprep.mubr.bf16.mxu1 %v4278_v0  ;;  %2100 = vmatpush1.bf16.msra.mxu1 %v4087_v59  ;;  %v4110_v59 = vld [vmem:[#allocation2 + $0x244] ss:$16 sps:$4 sm:$0xff]  }
  0x84   :  { %2101 = vmatprep.subr.bf16.mxu1 %v4095_v5  ;;  %v4108_v5 = vld [vmem:[#allocation2 + $0x240] ss:$16 sps:$4 sm:$0xff]  }
  0x85   :  { %1716 = vmatpush1.bf16.msra.mxu0 %v4090_v7 }
  0x86   :  { %1878 = vmatprep.subr.bf16.mxu0 %v4098_v12 }
  0x87   :  { %2102 = vmatpush1.bf16.msra.mxu1 %v4093_v8 }
  0x88   :  { %430 = vmatmul.mubr.bf16.gmra.mrb[32].mxu0 %v95_v51  ;;  %2264 = vmatprep.subr.bf16.mxu1 %v4101_v13 }
  0x89   :  { %439 = vmatprep.mubr.bf16.mxu0 %v4278_v0 }
  0x8a   :  { %623 = vmatmul.mubr.bf16.gmra.mrb[32].mxu1 %v95_v51  ;;  %v151_v51 = vsub.s32 3, %v4567_v22 }
  0x8b   :  { %632 = vmatprep.mubr.bf16.mxu1 %v4278_v0 }
  0x8c   :  { %v4598_v1 = vrot.slane %v135_v24, %v151_v51 }
  0x90   :  { %440 = vmatmul.mubr.bf16.gmra.mrb[36].mxu0 %v96_v58 }
  0x91   :  { %449 = vmatprep.mubr.bf16.mxu0 %v4278_v0 }
  0x92   :  { %633 = vmatmul.mubr.bf16.gmra.mrb[36].mxu1 %v96_v58 }
  0x93   :  { %642 = vmatprep.mubr.bf16.mxu1 %v4278_v0 }
  0x98   :  { %450 = vmatmul.mubr.bf16.gmra.mrb[40].mxu0 %v97_v62 }
  0x99   :  { %459 = vmatprep.mubr.bf16.mxu0 %v4278_v0 }
  0x9a   :  { %643 = vmatmul.mubr.bf16.gmra.mrb[40].mxu1 %v97_v62 }
  0x9b   :  { %652 = vmatprep.mubr.bf16.mxu1 %v4278_v0 }
  0xa0   :  { %460 = vmatmul.mubr.bf16.gmra.mrb[44].mxu0 %v98_v2 }
  0xa1   :  { %469 = vmatprep.mubr.bf16.mxu0 %v4278_v0 }
  0xa2   :  { %653 = vmatmul.mubr.bf16.gmra.mrb[44].mxu1 %v98_v2 }
  0xa3   :  { %662 = vmatprep.mubr.bf16.mxu1 %v4278_v0 }
  0xa8   :  { %470 = vmatmul.mubr.bf16.gmra.mrb[48].mxu0 %v99_v9 }
  0xa9   :  { %479 = vmatprep.mubr.bf16.mxu0 %v4278_v0 }
  0xaa   :  { %663 = vmatmul.mubr.bf16.gmra.mrb[48].mxu1 %v99_v9 }
  0xab   :  { %672 = vmatprep.mubr.bf16.mxu1 %v4278_v0 }
  0xb0   :  { %480 = vmatmul.mubr.bf16.gmra.mrb[52].mxu0 %v100_v14 }
  0xb1   :  { %489 = vmatprep.mubr.bf16.mxu0 %v4278_v0 }
  0xb2   :  { %673 = vmatmul.mubr.bf16.gmra.mrb[52].mxu1 %v100_v14 }
  0xb3   :  { %682 = vmatprep.mubr.bf16.mxu1 %v4278_v0 }
  0xb8   :  { %490 = vmatmul.mubr.bf16.gmra.mrb[56].mxu0 %v101_v17 }
  0xb9   :  { %499 = vmatprep.mubr.bf16.mxu0 %v4278_v0 }
  0xba   :  { %683 = vmatmul.mubr.bf16.gmra.mrb[56].mxu1 %v101_v17 }
  0xbb   :  { %692 = vmatprep.mubr.bf16.mxu1 %v4278_v0 }
  0xc0   :  { %500 = vmatmul.mubr.bf16.gmra.mrb[60].mxu0 %v102_v20 }
  0xc2   :  { %693 = vmatmul.mubr.bf16.gmra.mrb[60].mxu1 %v102_v20  ;;  %v4114_v20 = vld [vmem:[#allocation2 + $0x260] ss:$16 sps:$4 sm:$0xff]  }
 0x11b   :  { %v351_v0 = vpop.f32.mrb[0].mxu0  ;;  %v544_v7 = vpop.f32.mrb[0].mxu1 }
 0x11c   :  { %v352_v28 = vadd.f32 %v351_v0, %v4576_v26  ;;  %v353_v29 = vpop.f32.mrb[1].mxu0  ;;  %v545_v12 = vadd.f32 %v544_v7, %v4594_v61  ;;  %v546_v13 = vpop.f32.mrb[1].mxu1  ;;  %v4134_v7 = vld [vmem:[#allocation2 + $0x2c4] ss:$16 sps:$4 sm:$0xff]  }
 0x11d   :  { %v354_v30 = vadd.f32 %v353_v29, %v4580_v27  ;;  %v355_v31 = vpop.f32.mrb[2].mxu0  ;;  %v547_v16 = vadd.f32 %v546_v13, %v4598_v1  ;;  %v548_v17 = vpop.f32.mrb[2].mxu1  ;;  %v4117_v29 = vld [vmem:[#allocation2 + $0x268] ss:$16 sps:$4 sm:$0xff]  }
 0x11e   :  { %v356_v32 = vadd.f32 %v355_v31, %v4576_v26  ;;  %v357_v33 = vpop.f32.mrb[3].mxu0  ;;  %v703_v35 = vmax.f32 %v352_v28, 0.0  ;;  %v705_v21 = vmax.f32 %v545_v12, 0.0  ;;  %v549_v24 = vadd.f32 %v548_v17, %v4594_v61  ;;  %v550_v0 = vpop.f32.mrb[3].mxu1  ;;  %v4137_v12 = vld [vmem:[#allocation2 + $0x2cc] ss:$16 sps:$4 sm:$0xff]  }
 0x11f   :  { %v358_v34 = vadd.f32 %v357_v33, %v4580_v27  ;;  %v704_v37 = vmax.f32 %v354_v30, 0.0  ;;  %v4122_v30 = vld [vmem:[#allocation2 + $0x284] ss:$16 sps:$4 sm:$0xff]   ;;  %v706_v31 = vmax.f32 %v547_v16, 0.0 }
 0x120   :  { %v707_v36 = vmax.f32 %v356_v32, 0.0  ;;  %v551_v32 = vadd.f32 %v550_v0, %v4598_v1 }
 0x121   :  { %v708_v38 = vmax.f32 %v358_v34, 0.0 }
 0x122   :  { %v831_v39 = vpack.c.bf16 %v707_v36, %v703_v35  ;;  %v4125_v35 = vld [vmem:[#allocation2 + $0x28c] ss:$16 sps:$4 sm:$0xff]   ;;  %v709_v36 = vmax.f32 %v549_v24, 0.0  ;;  %v4135_v24 = vld [vmem:[#allocation2 + $0x2c8] ss:$16 sps:$4 sm:$0xff]  }
 0x123   :  { %v832_v40 = vpack.c.bf16 %v708_v38, %v704_v37  ;;  %v361_v41 = vpop.f32.mrb[4].mxu0 }
 0x124   :  { %v362_v44 = vadd.f32 %v361_v41, %v4576_v26  ;;  %v363_v45 = vpop.f32.mrb[5].mxu0  ;;  %v4608_v41 = vpack.c.bf16 %v709_v36, %v705_v21  ;;  %v4132_v21 = vld [vmem:[#allocation2 + $0x2c0] ss:$16 sps:$4 sm:$0xff]  }
 0x125   :  { %v364_v49 = vadd.f32 %v363_v45, %v4580_v27  ;;  %v365_v50 = vpop.f32.mrb[6].mxu0  ;;  %1717 = vmatprep.mubr.bf16.mxu0 %v832_v40  ;;  %2103 = vmatprep.mubr.bf16.mxu1 %v832_v40  ;;  %v4123_v45 = vld [vmem:[#allocation2 + $0x288] ss:$16 sps:$4 sm:$0xff]  }
 0x126   :  { %v366_v52 = vadd.f32 %v365_v50, %v4576_v26  ;;  %v367_v53 = vpop.f32.mrb[7].mxu0  ;;  %1718 = vmatmul.mubr.bf16.vlgmr.msra.gmra.mrb[64].mxu0 %v831_v39  ;;  %2104 = vmatmul.mubr.bf16.vlgmr.msra.gmra.mrb[64].mxu1 %v831_v39  ;;  %v711_v57 = vmax.f32 %v362_v44, 0.0  ;;  %v710_v39 = vmax.f32 %v551_v32, 0.0  ;;  %v4120_v44 = vld [vmem:[#allocation2 + $0x280] ss:$16 sps:$4 sm:$0xff]  }
 0x127   :  { %v368_v54 = vadd.f32 %v367_v53, %v4580_v27  ;;  %1879 = vmatpush1.bf16.msra.mxu0 %v4096_v42  ;;  %2265 = vmatpush1.bf16.msra.mxu1 %v4099_v43  ;;  %v712_v62 = vmax.f32 %v364_v49, 0.0  ;;  %v4131_v53 = vld [vmem:[#allocation2 + $0x2ac] ss:$16 sps:$4 sm:$0xff]  }
 0x128   :  { %v715_v58 = vmax.f32 %v366_v52, 0.0  ;;  %1880 = vmatprep.subr.bf16.mxu0 %v4104_v46  ;;  %2266 = vmatprep.subr.bf16.mxu1 %v4107_v47  ;;  %v4610_v46 = vpack.c.bf16 %v710_v39, %v706_v31  ;;  %v554_v47 = vpop.f32.mrb[4].mxu1  ;;  %v4128_v52 = vld [vmem:[#allocation2 + $0x2a4] ss:$16 sps:$4 sm:$0xff]   ;;  %v4143_v32 = vld [vmem:[#allocation2 + $0x2ec] ss:$16 sps:$4 sm:$0xff]  }
 0x129   :  { %v716_v63 = vmax.f32 %v368_v54, 0.0  ;;  %v555_v54 = vadd.f32 %v554_v47, %v4594_v61  ;;  %v4140_v31 = vld [vmem:[#allocation2 + $0x2e4] ss:$16 sps:$4 sm:$0xff]  }
 0x12a   :  { %v835_v2 = vpack.c.bf16 %v715_v58, %v711_v57 }
 0x12b   :  { %v836_v3 = vpack.c.bf16 %v716_v63, %v712_v62  ;;  %v371_v4 = vpop.f32.mrb[8].mxu0  ;;  %1881 = vmatpush1.bf16.msra.mxu0 %v4102_v55  ;;  %2267 = vmatpush1.bf16.msra.mxu1 %v4105_v56  ;;  %v556_v55 = vpop.f32.mrb[5].mxu1  ;;  %v4126_v63 = vld [vmem:[#allocation2 + $0x2a0] ss:$16 sps:$4 sm:$0xff]  }
 0x12c   :  { %v372_v8 = vadd.f32 %v371_v4, %v4576_v26  ;;  %v373_v9 = vpop.f32.mrb[9].mxu0  ;;  %1882 = vmatprep.subr.bf16.mxu0 %v4110_v59  ;;  %2268 = vmatprep.subr.bf16.mxu1 %v4113_v60  ;;  %v557_v58 = vadd.f32 %v556_v55, %v4598_v1  ;;  %v558_v59 = vpop.f32.mrb[6].mxu1 }
 0x12d   :  { %v374_v14 = vadd.f32 %v373_v9, %v4580_v27  ;;  %v375_v15 = vpop.f32.mrb[10].mxu0  ;;  %1727 = vmatprep.mubr.bf16.mxu0 %v836_v3  ;;  %2113 = vmatprep.mubr.bf16.mxu1 %v836_v3  ;;  %v559_v3 = vadd.f32 %v558_v59, %v4594_v61  ;;  %v560_v4 = vpop.f32.mrb[7].mxu1 }
 0x12e   :  { %v376_v18 = vadd.f32 %v375_v15, %v4576_v26  ;;  %v377_v19 = vpop.f32.mrb[11].mxu0  ;;  %1728 = vmatmul.mubr.bf16.gmra.mrb[68].mxu0 %v835_v2  ;;  %2114 = vmatmul.mubr.bf16.gmra.mrb[68].mxu1 %v835_v2  ;;  %v719_v33 = vmax.f32 %v372_v8, 0.0  ;;  %v713_v2 = vmax.f32 %v555_v54, 0.0  ;;  %v714_v8 = vmax.f32 %v557_v58, 0.0 }
 0x12f   :  { %v378_v28 = vadd.f32 %v377_v19, %v4580_v27  ;;  %1883 = vmatpush1.bf16.msra.mxu0 %v4108_v5  ;;  %2269 = vmatpush1.bf16.msra.mxu1 %v4111_v6  ;;  %v720_v37 = vmax.f32 %v374_v14, 0.0  ;;  %v4129_v6 = vld [vmem:[#allocation2 + $0x2a8] ss:$16 sps:$4 sm:$0xff]   ;;  %v561_v9 = vadd.f32 %v560_v4, %v4598_v1  ;;  %v717_v13 = vmax.f32 %v559_v3, 0.0  ;;  %v4144_v4 = vld [vmem:[#allocation2 + $0x300] ss:$16 sps:$4 sm:$0xff]  }
 0x130   :  { %v723_v34 = vmax.f32 %v376_v18, 0.0  ;;  %1884 = vmatprep.subr.bf16.mxu0 %v4116_v10  ;;  %2270 = vmatprep.subr.bf16.mxu1 %v4119_v11 }
 0x131   :  { %v724_v38 = vmax.f32 %v378_v28, 0.0  ;;  %v718_v16 = vmax.f32 %v561_v9, 0.0  ;;  %v4620_v18 = vpack.c.bf16 %v717_v13, %v713_v2  ;;  %v564_v28 = vpop.f32.mrb[8].mxu1 }
 0x132   :  { %v839_v40 = vpack.c.bf16 %v723_v34, %v719_v33  ;;  %v565_v33 = vadd.f32 %v564_v28, %v4594_v61  ;;  %v566_v34 = vpop.f32.mrb[9].mxu1 }
 0x133   :  { %v840_v42 = vpack.c.bf16 %v724_v38, %v720_v37  ;;  %v381_v43 = vpop.f32.mrb[12].mxu0  ;;  %1885 = vmatpush1.bf16.msra.mxu0 %v4114_v20  ;;  %2271 = vmatpush1.bf16.msra.mxu1 %v4117_v29  ;;  %v4622_v0 = vpack.c.bf16 %v718_v16, %v714_v8  ;;  %v567_v37 = vadd.f32 %v566_v34, %v4598_v1  ;;  %v568_v38 = vpop.f32.mrb[10].mxu1 }
 0x134   :  { %v382_v49 = vadd.f32 %v381_v43, %v4576_v26  ;;  %v383_v50 = vpop.f32.mrb[13].mxu0  ;;  %1886 = vmatprep.subr.bf16.mxu0 %v4122_v30  ;;  %2272 = vmatprep.subr.bf16.mxu1 %v4125_v35  ;;  %v721_v43 = vmax.f32 %v565_v33, 0.0 }
 0x135   :  { %v384_v56 = vadd.f32 %v383_v50, %v4580_v27  ;;  %v385_v57 = vpop.f32.mrb[14].mxu0  ;;  %1737 = vmatprep.mubr.bf16.mxu0 %v840_v42  ;;  %2123 = vmatprep.mubr.bf16.mxu1 %v840_v42  ;;  %v4138_v42 = vld [vmem:[#allocation2 + $0x2e0] ss:$16 sps:$4 sm:$0xff]   ;;  %v4146_v50 = vld [vmem:[#allocation2 + $0x304] ss:$16 sps:$4 sm:$0xff]  }
 0x136   :  { %v386_v60 = vadd.f32 %v385_v57, %v4576_v26  ;;  %v387_v62 = vpop.f32.mrb[15].mxu0  ;;  %1738 = vmatmul.mubr.bf16.gmra.mrb[72].mxu0 %v839_v40  ;;  %2124 = vmatmul.mubr.bf16.gmra.mrb[72].mxu1 %v839_v40  ;;  %v727_v10 = vmax.f32 %v382_v49, 0.0  ;;  %v4141_v49 = vld [vmem:[#allocation2 + $0x2e8] ss:$16 sps:$4 sm:$0xff]  }
 0x137   :  { %v388_v5 = vadd.f32 %v387_v62, %v4580_v27  ;;  %1887 = vmatpush1.bf16.msra.mxu0 %v4120_v44  ;;  %2273 = vmatpush1.bf16.msra.mxu1 %v4123_v45  ;;  %v728_v14 = vmax.f32 %v384_v56, 0.0  ;;  %v569_v44 = vadd.f32 %v568_v38, %v4594_v61  ;;  %v570_v45 = vpop.f32.mrb[11].mxu1  ;;  %v4149_v56 = vld [vmem:[#allocation2 + $0x30c] ss:$16 sps:$4 sm:$0xff]  }
 0x138   :  { %v731_v11 = vmax.f32 %v386_v60, 0.0  ;;  %1888 = vmatprep.subr.bf16.mxu0 %v4128_v52  ;;  %2274 = vmatprep.subr.bf16.mxu1 %v4131_v53  ;;  %v722_v52 = vmax.f32 %v567_v37, 0.0  ;;  %v571_v53 = vadd.f32 %v570_v45, %v4598_v1  ;;  %v4161_v37 = vld [vmem:[#allocation2 + $0x34c] ss:$16 sps:$4 sm:$0xff]  }
 0x139   :  { %v732_v15 = vmax.f32 %v388_v5, 0.0  ;;  %v725_v57 = vmax.f32 %v569_v44, 0.0  ;;  %v4147_v5 = vld [vmem:[#allocation2 + $0x308] ss:$16 sps:$4 sm:$0xff]  }
 0x13a   :  { %v843_v17 = vpack.c.bf16 %v731_v11, %v727_v10  ;;  %v726_v60 = vmax.f32 %v571_v53, 0.0  ;;  %v4152_v10 = vld [vmem:[#allocation2 + $0x324] ss:$16 sps:$4 sm:$0xff]   ;;  %v4155_v11 = vld [vmem:[#allocation2 + $0x32c] ss:$16 sps:$4 sm:$0xff]  }
 0x13b   :  { %v844_v19 = vpack.c.bf16 %v732_v15, %v728_v14  ;;  %v391_v20 = vpop.f32.mrb[16].mxu0  ;;  %1889 = vmatpush1.bf16.msra.mxu0 %v4126_v63  ;;  %2275 = vmatpush1.bf16.msra.mxu1 %v4129_v6  ;;  %v4632_v63 = vpack.c.bf16 %v725_v57, %v721_v43  ;;  %v4167_v57 = vld [vmem:[#allocation2 + $0x36c] ss:$16 sps:$4 sm:$0xff]  }
 0x13c   :  { %v392_v29 = vadd.f32 %v391_v20, %v4576_v26  ;;  %v393_v30 = vpop.f32.mrb[17].mxu0  ;;  %1890 = vmatprep.subr.bf16.mxu0 %v4134_v7  ;;  %2276 = vmatprep.subr.bf16.mxu1 %v4137_v12  ;;  %v4634_v6 = vpack.c.bf16 %v726_v60, %v722_v52  ;;  %v574_v7 = vpop.f32.mrb[12].mxu1 }
 0x13d   :  { %v394_v35 = vadd.f32 %v393_v30, %v4580_v27  ;;  %v395_v36 = vpop.f32.mrb[18].mxu0  ;;  %1747 = vmatprep.mubr.bf16.mxu0 %v844_v19  ;;  %2133 = vmatprep.mubr.bf16.mxu1 %v844_v19  ;;  %v575_v12 = vadd.f32 %v574_v7, %v4594_v61  ;;  %v576_v13 = vpop.f32.mrb[13].mxu1  ;;  %v4162_v7 = vld [vmem:[#allocation2 + $0x360] ss:$16 sps:$4 sm:$0xff]  }
 0x13e   :  { %v396_v39 = vadd.f32 %v395_v36, %v4576_v26  ;;  %v397_v40 = vpop.f32.mrb[19].mxu0  ;;  %1748 = vmatmul.mubr.bf16.gmra.mrb[76].mxu0 %v843_v17  ;;  %2134 = vmatmul.mubr.bf16.gmra.mrb[76].mxu1 %v843_v17  ;;  %v735_v54 = vmax.f32 %v392_v29, 0.0  ;;  %v577_v16 = vadd.f32 %v576_v13, %v4598_v1  ;;  %v578_v17 = vpop.f32.mrb[14].mxu1  ;;  %v4170_v13 = vld [vmem:[#allocation2 + $0x384] ss:$16 sps:$4 sm:$0xff]  }
 0x13f   :  { %v398_v47 = vadd.f32 %v397_v40, %v4580_v27  ;;  %1891 = vmatpush1.bf16.msra.mxu0 %v4132_v21  ;;  %2277 = vmatpush1.bf16.msra.mxu1 %v4135_v24  ;;  %v736_v58 = vmax.f32 %v394_v35, 0.0  ;;  %v4150_v21 = vld [vmem:[#allocation2 + $0x320] ss:$16 sps:$4 sm:$0xff]   ;;  %v729_v24 = vmax.f32 %v575_v12, 0.0  ;;  %v579_v28 = vadd.f32 %v578_v17, %v4594_v61  ;;  %v580_v29 = vpop.f32.mrb[15].mxu1 }
 0x140   :  { %v739_v55 = vmax.f32 %v396_v39, 0.0  ;;  %1892 = vmatprep.subr.bf16.mxu0 %v4140_v31  ;;  %2278 = vmatprep.subr.bf16.mxu1 %v4143_v32  ;;  %v4153_v31 = vld [vmem:[#allocation2 + $0x328] ss:$16 sps:$4 sm:$0xff]   ;;  %v4158_v32 = vld [vmem:[#allocation2 + $0x344] ss:$16 sps:$4 sm:$0xff]   ;;  %v730_v33 = vmax.f32 %v577_v16, 0.0  ;;  %v581_v34 = vadd.f32 %v580_v29, %v4598_v1 }
 0x141   :  { %v740_v59 = vmax.f32 %v398_v47, 0.0  ;;  %v733_v38 = vmax.f32 %v579_v28, 0.0  ;;  %v584_v53 = vpop.f32.mrb[16].mxu1  ;;  %v4165_v12 = vld [vmem:[#allocation2 + $0x368] ss:$16 sps:$4 sm:$0xff]  }
 0x142   :  { %v847_v62 = vpack.c.bf16 %v739_v55, %v735_v54 }
 0x143   :  { %v848_v2 = vpack.c.bf16 %v740_v59, %v736_v58  ;;  %v401_v3 = vpop.f32.mrb[20].mxu0  ;;  %1893 = vmatpush1.bf16.msra.mxu0 %v4138_v42  ;;  %2279 = vmatpush1.bf16.msra.mxu1 %v4141_v49  ;;  %v734_v42 = vmax.f32 %v581_v34, 0.0  ;;  %v4644_v44 = vpack.c.bf16 %v733_v38, %v729_v24  ;;  %v4156_v49 = vld [vmem:[#allocation2 + $0x340] ss:$16 sps:$4 sm:$0xff]   ;;  %v585_v58 = vadd.f32 %v584_v53, %v4594_v61  ;;  %v586_v59 = vpop.f32.mrb[17].mxu1 }
 0x144   :  { %v402_v8 = vadd.f32 %v401_v3, %v4576_v26  ;;  %v403_v9 = vpop.f32.mrb[21].mxu0  ;;  %1894 = vmatprep.subr.bf16.mxu0 %v4146_v50  ;;  %2280 = vmatprep.subr.bf16.mxu1 %v4149_v56  ;;  %v4159_v50 = vld [vmem:[#allocation2 + $0x348] ss:$16 sps:$4 sm:$0xff]   ;;  %v4164_v56 = vld [vmem:[#allocation2 + $0x364] ss:$16 sps:$4 sm:$0xff]   ;;  %v588_v3 = vpop.f32.mrb[18].mxu1 }
 0x145   :  { %v404_v14 = vadd.f32 %v403_v9, %v4580_v27  ;;  %v405_v15 = vpop.f32.mrb[22].mxu0  ;;  %1757 = vmatprep.mubr.bf16.mxu0 %v848_v2  ;;  %2143 = vmatprep.mubr.bf16.mxu1 %v848_v2  ;;  %v4646_v52 = vpack.c.bf16 %v734_v42, %v730_v33  ;;  %v587_v2 = vadd.f32 %v586_v59, %v4598_v1  ;;  %v4168_v33 = vld [vmem:[#allocation2 + $0x380] ss:$16 sps:$4 sm:$0xff]   ;;  %v4171_v34 = vld [vmem:[#allocation2 + $0x388] ss:$16 sps:$4 sm:$0xff]  }
 0x146   :  { %v406_v19 = vadd.f32 %v405_v15, %v4576_v26  ;;  %v407_v20 = vpop.f32.mrb[23].mxu0  ;;  %1758 = vmatmul.mubr.bf16.gmra.mrb[80].mxu0 %v847_v62  ;;  %2144 = vmatmul.mubr.bf16.gmra.mrb[80].mxu1 %v847_v62  ;;  %v743_v35 = vmax.f32 %v402_v8, 0.0  ;;  %v737_v8 = vmax.f32 %v585_v58, 0.0  ;;  %v589_v9 = vadd.f32 %v588_v3, %v4594_v61 }
 0x147   :  { %v408_v30 = vadd.f32 %v407_v20, %v4580_v27  ;;  %1895 = vmatpush1.bf16.msra.mxu0 %v4144_v4  ;;  %2281 = vmatpush1.bf16.msra.mxu1 %v4147_v5  ;;  %v744_v39 = vmax.f32 %v404_v14, 0.0  ;;  %v738_v14 = vmax.f32 %v587_v2, 0.0 }
 0x148   :  { %v747_v36 = vmax.f32 %v406_v19, 0.0  ;;  %1896 = vmatprep.subr.bf16.mxu0 %v4152_v10  ;;  %2282 = vmatprep.subr.bf16.mxu1 %v4155_v11  ;;  %v590_v10 = vpop.f32.mrb[19].mxu1  ;;  %v4173_v19 = vld [vmem:[#allocation2 + $0x38c] ss:$16 sps:$4 sm:$0xff]   ;;  %v741_v20 = vmax.f32 %v589_v9, 0.0 }
 0x149   :  { %v748_v40 = vmax.f32 %v408_v30, 0.0  ;;  %v591_v15 = vadd.f32 %v590_v10, %v4598_v1 }
 0x14a   :  { %v851_v43 = vpack.c.bf16 %v747_v36, %v743_v35  ;;  %v4656_v30 = vpack.c.bf16 %v741_v20, %v737_v8  ;;  %v594_v36 = vpop.f32.mrb[20].mxu1 }
 0x14b   :  { %v852_v45 = vpack.c.bf16 %v748_v40, %v744_v39  ;;  %v411_v47 = vpop.f32.mrb[24].mxu0  ;;  %1897 = vmatpush1.bf16.msra.mxu0 %v4150_v21  ;;  %2283 = vmatpush1.bf16.msra.mxu1 %v4153_v31  ;;  %v742_v28 = vmax.f32 %v591_v15, 0.0  ;;  %v4176_v39 = vld [vmem:[#allocation2 + $0x3a4] ss:$16 sps:$4 sm:$0xff]   ;;  %v4179_v40 = vld [vmem:[#allocation2 + $0x3ac] ss:$16 sps:$4 sm:$0xff]   ;;  %v595_v42 = vadd.f32 %v594_v36, %v4594_v61 }
 0x14c   :  { %v412_v54 = vadd.f32 %v411_v47, %v4576_v26  ;;  %v413_v55 = vpop.f32.mrb[25].mxu0  ;;  %1898 = vmatprep.subr.bf16.mxu0 %v4158_v32  ;;  %2284 = vmatprep.subr.bf16.mxu1 %v4161_v37 }
 0x14d   :  { %v414_v60 = vadd.f32 %v413_v55, %v4580_v27  ;;  %v415_v62 = vpop.f32.mrb[26].mxu0  ;;  %1767 = vmatprep.mubr.bf16.mxu0 %v852_v45  ;;  %2153 = vmatprep.mubr.bf16.mxu1 %v852_v45  ;;  %v4658_v35 = vpack.c.bf16 %v742_v28, %v738_v14  ;;  %v4174_v55 = vld [vmem:[#allocation2 + $0x3a0] ss:$16 sps:$4 sm:$0xff]   ;;  %v4188_v28 = vld [vmem:[#allocation2 + $0x3e4] ss:$16 sps:$4 sm:$0xff]  }
 0x14e   :  { %v416_v4 = vadd.f32 %v415_v62, %v4576_v26  ;;  %v417_v5 = vpop.f32.mrb[27].mxu0  ;;  %1768 = vmatmul.mubr.bf16.gmra.mrb[84].mxu0 %v851_v43  ;;  %2154 = vmatmul.mubr.bf16.gmra.mrb[84].mxu1 %v851_v43  ;;  %v751_v16 = vmax.f32 %v412_v54, 0.0  ;;  %v596_v43 = vpop.f32.mrb[21].mxu1  ;;  %v4182_v62 = vld [vmem:[#allocation2 + $0x3c4] ss:$16 sps:$4 sm:$0xff]  }
 0x14f   :  { %v418_v11 = vadd.f32 %v417_v5, %v4580_v27  ;;  %1899 = vmatpush1.bf16.msra.mxu0 %v4156_v49  ;;  %2285 = vmatpush1.bf16.msra.mxu1 %v4159_v50  ;;  %v752_v21 = vmax.f32 %v414_v60, 0.0  ;;  %v597_v49 = vadd.f32 %v596_v43, %v4598_v1  ;;  %v598_v50 = vpop.f32.mrb[22].mxu1  ;;  %v4177_v60 = vld [vmem:[#allocation2 + $0x3a8] ss:$16 sps:$4 sm:$0xff]  }
 0x150   :  { %v755_v17 = vmax.f32 %v416_v4, 0.0  ;;  %1900 = vmatprep.subr.bf16.mxu0 %v4164_v56  ;;  %2286 = vmatprep.subr.bf16.mxu1 %v4167_v57  ;;  %v745_v56 = vmax.f32 %v595_v42, 0.0  ;;  %v599_v57 = vadd.f32 %v598_v50, %v4594_v61  ;;  %v600_v58 = vpop.f32.mrb[23].mxu1 }
 0x151   :  { %v756_v24 = vmax.f32 %v418_v11, 0.0  ;;  %v746_v2 = vmax.f32 %v597_v49, 0.0  ;;  %v601_v3 = vadd.f32 %v600_v58, %v4598_v1  ;;  %v604_v20 = vpop.f32.mrb[24].mxu1  ;;  %v4189_v49 = vld [vmem:[#allocation2 + $0x3e8] ss:$16 sps:$4 sm:$0xff]  }
 0x152   :  { %v855_v29 = vpack.c.bf16 %v755_v17, %v751_v16  ;;  %v749_v8 = vmax.f32 %v599_v57, 0.0  ;;  %v4180_v16 = vld [vmem:[#allocation2 + $0x3c0] ss:$16 sps:$4 sm:$0xff]   ;;  %v4183_v17 = vld [vmem:[#allocation2 + $0x3c8] ss:$16 sps:$4 sm:$0xff]  }
 0x153   :  { %v856_v31 = vpack.c.bf16 %v756_v24, %v752_v21  ;;  %v421_v32 = vpop.f32.mrb[28].mxu0  ;;  %1901 = vmatpush1.bf16.msra.mxu0 %v4162_v7  ;;  %2287 = vmatpush1.bf16.msra.mxu1 %v4165_v12  ;;  %v4185_v7 = vld [vmem:[#allocation2 + $0x3cc] ss:$16 sps:$4 sm:$0xff]   ;;  %v750_v11 = vmax.f32 %v601_v3, 0.0 }
 0x154   :  { %v422_v37 = vadd.f32 %v421_v32, %v4576_v26  ;;  %v423_v38 = vpop.f32.mrb[29].mxu0  ;;  %1902 = vmatprep.subr.bf16.mxu0 %v4170_v13  ;;  %2288 = vmatprep.subr.bf16.mxu1 %v4173_v19  ;;  %v4668_v13 = vpack.c.bf16 %v749_v8, %v745_v56  ;;  %v606_v32 = vpop.f32.mrb[25].mxu1 }
 0x155   :  { %v424_v45 = vadd.f32 %v423_v38, %v4580_v27  ;;  %v425_v47 = vpop.f32.mrb[30].mxu0  ;;  %1777 = vmatprep.mubr.bf16.mxu0 %v856_v31  ;;  %2163 = vmatprep.mubr.bf16.mxu1 %v856_v31  ;;  %v4670_v19 = vpack.c.bf16 %v750_v11, %v746_v2  ;;  %v605_v31 = vadd.f32 %v604_v20, %v4594_v61 }
 0x156   :  { %v426_v53 = vadd.f32 %v425_v47, %v4576_v26  ;;  %v427_v54 = vpop.f32.mrb[31].mxu0  ;;  %1778 = vmatmul.mubr.bf16.gmra.mrb[88].mxu0 %v855_v29  ;;  %2164 = vmatmul.mubr.bf16.gmra.mrb[88].mxu1 %v855_v29  ;;  %v759_v4 = vmax.f32 %v422_v37, 0.0  ;;  %v4191_v29 = vld [vmem:[#allocation2 + $0x3ec] ss:$16 sps:$4 sm:$0xff]   ;;  %v607_v36 = vadd.f32 %v606_v32, %v4598_v1  ;;  %v608_v37 = vpop.f32.mrb[26].mxu1 }
 0x157   :  { %v428_v59 = vadd.f32 %v427_v54, %v4580_v27  ;;  %1903 = vmatpush1.bf16.msra.mxu0 %v4168_v33  ;;  %2289 = vmatpush1.bf16.msra.mxu1 %v4171_v34  ;;  %v760_v9 = vmax.f32 %v424_v45, 0.0  ;;  %v609_v42 = vadd.f32 %v608_v37, %v4594_v61  ;;  %v610_v43 = vpop.f32.mrb[27].mxu1  ;;  %v4186_v47 = vld [vmem:[#allocation2 + $0x3e0] ss:$16 sps:$4 sm:$0xff]  }
 0x158   :  { %v763_v5 = vmax.f32 %v426_v53, 0.0  ;;  %1904 = vmatprep.subr.bf16.mxu0 %v4176_v39  ;;  %2290 = vmatprep.subr.bf16.mxu1 %v4179_v40  ;;  %v753_v40 = vmax.f32 %v605_v31, 0.0  ;;  %v754_v50 = vmax.f32 %v607_v36, 0.0  ;;  %v611_v53 = vadd.f32 %v610_v43, %v4598_v1 }
 0x159   :  { %v764_v10 = vmax.f32 %v428_v59, 0.0  ;;  %v757_v56 = vmax.f32 %v609_v42, 0.0 }
 0x15a   :  { %v859_v12 = vpack.c.bf16 %v763_v5, %v759_v4  ;;  %v758_v59 = vmax.f32 %v611_v53, 0.0  ;;  %v614_v5 = vpop.f32.mrb[28].mxu1 }
 0x15b   :  { %v860_v14 = vpack.c.bf16 %v764_v10, %v760_v9  ;;  %v431_v15 = vpop.f32.mrb[32].mxu0  ;;  %1905 = vmatpush1.bf16.msra.mxu0 %v4174_v55  ;;  %2291 = vmatpush1.bf16.msra.mxu1 %v4177_v60  ;;  %v615_v9 = vadd.f32 %v614_v5, %v4594_v61  ;;  %v616_v10 = vpop.f32.mrb[29].mxu1 }
 0x15c   :  { %v432_v21 = vadd.f32 %v431_v15, %v4576_v26  ;;  %v433_v24 = vpop.f32.mrb[33].mxu0  ;;  %1906 = vmatprep.subr.bf16.mxu0 %v4182_v62  ;;  %2292 = vmatprep.subr.bf16.mxu1 %v4185_v7  ;;  %v4680_v62 = vpack.c.bf16 %v757_v56, %v753_v40  ;;  %v4682_v4 = vpack.c.bf16 %v758_v59, %v754_v50  ;;  %v618_v15 = vpop.f32.mrb[30].mxu1 }
 0x15d   :  { %v434_v33 = vadd.f32 %v433_v24, %v4580_v27  ;;  %v435_v34 = vpop.f32.mrb[34].mxu0  ;;  %1787 = vmatprep.mubr.bf16.mxu0 %v860_v14  ;;  %2173 = vmatprep.mubr.bf16.mxu1 %v860_v14  ;;  %v617_v14 = vadd.f32 %v616_v10, %v4598_v1  ;;  %v761_v20 = vmax.f32 %v615_v9, 0.0  ;;  %v620_v24 = vpop.f32.mrb[31].mxu1 }
 0x15e   :  { %v436_v38 = vadd.f32 %v435_v34, %v4576_v26  ;;  %v437_v39 = vpop.f32.mrb[35].mxu0  ;;  %1788 = vmatmul.mubr.bf16.gmra.mrb[92].mxu0 %v859_v12  ;;  %2174 = vmatmul.mubr.bf16.gmra.mrb[92].mxu1 %v859_v12  ;;  %v767_v54 = vmax.f32 %v432_v21, 0.0  ;;  %v619_v21 = vadd.f32 %v618_v15, %v4594_v61  ;;  %v621_v31 = vadd.f32 %v620_v24, %v4598_v1 }
 0x15f   :  { %v438_v45 = vadd.f32 %v437_v39, %v4580_v27  ;;  %1907 = vmatpush1.bf16.msra.mxu0 %v4180_v16  ;;  %2293 = vmatpush1.bf16.msra.mxu1 %v4183_v17  ;;  %v768_v57 = vmax.f32 %v434_v33, 0.0 }
 0x160   :  { %v771_v55 = vmax.f32 %v436_v38, 0.0  ;;  %1908 = vmatprep.subr.bf16.mxu0 %v4188_v28  ;;  %2294 = vmatprep.subr.bf16.mxu1 %v4191_v29  ;;  %v762_v29 = vmax.f32 %v617_v14, 0.0  ;;  %v765_v34 = vmax.f32 %v619_v21, 0.0  ;;  %v766_v38 = vmax.f32 %v621_v31, 0.0 }
 0x161   :  { %v772_v58 = vmax.f32 %v438_v45, 0.0 }
 0x162   :  { %v863_v60 = vpack.c.bf16 %v771_v55, %v767_v54  ;;  %v4692_v40 = vpack.c.bf16 %v765_v34, %v761_v20  ;;  %v4694_v45 = vpack.c.bf16 %v766_v38, %v762_v29 }
 0x163   :  { %v864_v2 = vpack.c.bf16 %v772_v58, %v768_v57  ;;  %v441_v3 = vpop.f32.mrb[36].mxu0  ;;  %1909 = vmatpush1.bf16.msra.mxu0 %v4186_v47  ;;  %2295 = vmatpush1.bf16.msra.mxu1 %v4189_v49  ;;  %v624_v47 = vpop.f32.mrb[32].mxu1 }
 0x164   :  { %v442_v7 = vadd.f32 %v441_v3, %v4576_v26  ;;  %v443_v8 = vpop.f32.mrb[37].mxu0  ;;  %v625_v53 = vadd.f32 %v624_v47, %v4594_v61  ;;  %v626_v54 = vpop.f32.mrb[33].mxu1 }
 0x165   :  { %v444_v11 = vadd.f32 %v443_v8, %v4580_v27  ;;  %v445_v12 = vpop.f32.mrb[38].mxu0  ;;  %1797 = vmatprep.mubr.bf16.mxu0 %v864_v2  ;;  %2183 = vmatprep.mubr.bf16.mxu1 %v864_v2  ;;  %v627_v57 = vadd.f32 %v626_v54, %v4598_v1  ;;  %v628_v58 = vpop.f32.mrb[34].mxu1 }
 0x166   :  { %v446_v16 = vadd.f32 %v445_v12, %v4576_v26  ;;  %v447_v17 = vpop.f32.mrb[39].mxu0  ;;  %1798 = vmatmul.mubr.bf16.gmra.mrb[96].mxu0 %v863_v60  ;;  %2184 = vmatmul.mubr.bf16.gmra.mrb[96].mxu1 %v863_v60  ;;  %v775_v32 = vmax.f32 %v442_v7, 0.0  ;;  %v769_v2 = vmax.f32 %v625_v53, 0.0  ;;  %v629_v3 = vadd.f32 %v628_v58, %v4594_v61  ;;  %v630_v5 = vpop.f32.mrb[35].mxu1 }
 0x167   :  { %v448_v28 = vadd.f32 %v447_v17, %v4580_v27  ;;  %v776_v36 = vmax.f32 %v444_v11, 0.0  ;;  %v770_v8 = vmax.f32 %v627_v57, 0.0  ;;  %v631_v9 = vadd.f32 %v630_v5, %v4598_v1  ;;  %v634_v29 = vpop.f32.mrb[36].mxu1 }
 0x168   :  { %v779_v33 = vmax.f32 %v446_v16, 0.0  ;;  %v773_v12 = vmax.f32 %v629_v3, 0.0  ;;  %v636_v34 = vpop.f32.mrb[37].mxu1 }
 0x169   :  { %v780_v37 = vmax.f32 %v448_v28, 0.0  ;;  %v774_v16 = vmax.f32 %v631_v9, 0.0  ;;  %v637_v38 = vadd.f32 %v636_v34, %v4598_v1 }
 0x16a   :  { %v867_v39 = vpack.c.bf16 %v779_v33, %v775_v32  ;;  %v4704_v20 = vpack.c.bf16 %v773_v12, %v769_v2  ;;  %v635_v33 = vadd.f32 %v634_v29, %v4594_v61 }
 0x16b   :  { %v868_v42 = vpack.c.bf16 %v780_v37, %v776_v36  ;;  %v451_v43 = vpop.f32.mrb[40].mxu0  ;;  %v4706_v28 = vpack.c.bf16 %v774_v16, %v770_v8  ;;  %v778_v54 = vmax.f32 %v637_v38, 0.0 }
 0x16c   :  { %v452_v49 = vadd.f32 %v451_v43, %v4576_v26  ;;  %v453_v50 = vpop.f32.mrb[41].mxu0  ;;  %v777_v47 = vmax.f32 %v635_v33, 0.0 }
 0x16d   :  { %v454_v55 = vadd.f32 %v453_v50, %v4580_v27  ;;  %v455_v56 = vpop.f32.mrb[42].mxu0  ;;  %1807 = vmatprep.mubr.bf16.mxu0 %v868_v42  ;;  %2193 = vmatprep.mubr.bf16.mxu1 %v868_v42 }
 0x16e   :  { %v456_v59 = vadd.f32 %v455_v56, %v4576_v26  ;;  %v457_v60 = vpop.f32.mrb[43].mxu0  ;;  %1808 = vmatmul.mubr.bf16.gmra.mrb[100].mxu0 %v867_v39  ;;  %2194 = vmatmul.mubr.bf16.gmra.mrb[100].mxu1 %v867_v39  ;;  %v783_v10 = vmax.f32 %v452_v49, 0.0  ;;  %v638_v39 = vpop.f32.mrb[38].mxu1 }
 0x16f   :  { %v458_v7 = vadd.f32 %v457_v60, %v4580_v27  ;;  %v784_v14 = vmax.f32 %v454_v55, 0.0  ;;  %v639_v49 = vadd.f32 %v638_v39, %v4594_v61  ;;  %v640_v50 = vpop.f32.mrb[39].mxu1  ;;  %v4192_v39 = vld [vmem:[#allocation4 + $0x40] sm:$0xff]  }
 0x170   :  { %v787_v11 = vmax.f32 %v456_v59, 0.0  ;;  %v641_v55 = vadd.f32 %v640_v50, %v4598_v1  ;;  %3465 = vmatprep.subr.bf16.mxu0 %v4192_v39 }
 0x171   :  { %v788_v15 = vmax.f32 %v458_v7, 0.0  ;;  %v781_v58 = vmax.f32 %v639_v49, 0.0 }
 0x172   :  { %v871_v17 = vpack.c.bf16 %v787_v11, %v783_v10  ;;  %v782_v2 = vmax.f32 %v641_v55, 0.0  ;;  %v644_v10 = vpop.f32.mrb[40].mxu1 }
 0x173   :  { %v872_v21 = vpack.c.bf16 %v788_v15, %v784_v14  ;;  %v461_v24 = vpop.f32.mrb[44].mxu0  ;;  %v4716_v5 = vpack.c.bf16 %v781_v58, %v777_v47  ;;  %v645_v14 = vadd.f32 %v644_v10, %v4594_v61  ;;  %v646_v15 = vpop.f32.mrb[41].mxu1 }
 0x174   :  { %v462_v31 = vadd.f32 %v461_v24, %v4576_v26  ;;  %v463_v32 = vpop.f32.mrb[45].mxu0  ;;  %v4718_v9 = vpack.c.bf16 %v782_v2, %v778_v54  ;;  %v648_v24 = vpop.f32.mrb[42].mxu1 }
 0x175   :  { %v464_v36 = vadd.f32 %v463_v32, %v4580_v27  ;;  %v465_v37 = vpop.f32.mrb[46].mxu0  ;;  %1817 = vmatprep.mubr.bf16.mxu0 %v872_v21  ;;  %2203 = vmatprep.mubr.bf16.mxu1 %v872_v21  ;;  %v647_v21 = vadd.f32 %v646_v15, %v4598_v1  ;;  %v785_v32 = vmax.f32 %v645_v14, 0.0  ;;  %v649_v33 = vadd.f32 %v648_v24, %v4594_v61  ;;  %v650_v34 = vpop.f32.mrb[43].mxu1 }
 0x176   :  { %v466_v42 = vadd.f32 %v465_v37, %v4576_v26  ;;  %v467_v43 = vpop.f32.mrb[47].mxu0  ;;  %1818 = vmatmul.mubr.bf16.gmra.mrb[104].mxu0 %v871_v17  ;;  %2204 = vmatmul.mubr.bf16.gmra.mrb[104].mxu1 %v871_v17  ;;  %v791_v56 = vmax.f32 %v462_v31, 0.0  ;;  %v651_v38 = vadd.f32 %v650_v34, %v4598_v1 }
 0x177   :  { %v468_v53 = vadd.f32 %v467_v43, %v4580_v27  ;;  %v792_v59 = vmax.f32 %v464_v36, 0.0  ;;  %v786_v37 = vmax.f32 %v647_v21, 0.0  ;;  %v789_v49 = vmax.f32 %v649_v33, 0.0 }
 0x178   :  { %v795_v57 = vmax.f32 %v466_v42, 0.0  ;;  %v4194_v42 = vld [vmem:[#allocation4 + $0xc0] sm:$0xff]   ;;  %v790_v54 = vmax.f32 %v651_v38, 0.0 }
 0x179   :  { %v796_v60 = vmax.f32 %v468_v53, 0.0  ;;  %3577 = vmatprep.subr.bf16.mxu1 %v4194_v42 }
 0x17a   :  { %v875_v3 = vpack.c.bf16 %v795_v57, %v791_v56  ;;  %v4728_v56 = vpack.c.bf16 %v789_v49, %v785_v32 }
 0x17b   :  { %v876_v7 = vpack.c.bf16 %v796_v60, %v792_v59  ;;  %v471_v8 = vpop.f32.mrb[48].mxu0  ;;  %v4730_v59 = vpack.c.bf16 %v790_v54, %v786_v37  ;;  %v654_v60 = vpop.f32.mrb[44].mxu1 }
 0x17c   :  { %v472_v11 = vadd.f32 %v471_v8, %v4576_v26  ;;  %v473_v12 = vpop.f32.mrb[49].mxu0  ;;  %v656_v8 = vpop.f32.mrb[45].mxu1 }
 0x17d   :  { %v474_v16 = vadd.f32 %v473_v12, %v4580_v27  ;;  %v475_v17 = vpop.f32.mrb[50].mxu0  ;;  %1827 = vmatprep.mubr.bf16.mxu0 %v876_v7  ;;  %2213 = vmatprep.mubr.bf16.mxu1 %v876_v7  ;;  %v655_v7 = vadd.f32 %v654_v60, %v4594_v61  ;;  %v657_v12 = vadd.f32 %v656_v8, %v4598_v1  ;;  %v658_v14 = vpop.f32.mrb[46].mxu1 }
 0x17e   :  { %v476_v29 = vadd.f32 %v475_v17, %v4576_v26  ;;  %v477_v31 = vpop.f32.mrb[51].mxu0  ;;  %1828 = vmatmul.mubr.bf16.gmra.mrb[108].mxu0 %v875_v3  ;;  %2214 = vmatmul.mubr.bf16.gmra.mrb[108].mxu1 %v875_v3  ;;  %v799_v43 = vmax.f32 %v472_v11, 0.0  ;;  %v659_v21 = vadd.f32 %v658_v14, %v4594_v61  ;;  %v660_v24 = vpop.f32.mrb[47].mxu1 }
 0x17f   :  { %v478_v36 = vadd.f32 %v477_v31, %v4580_v27  ;;  %v800_v50 = vmax.f32 %v474_v16, 0.0  ;;  %v793_v17 = vmax.f32 %v655_v7, 0.0  ;;  %v794_v31 = vmax.f32 %v657_v12, 0.0 }
 0x180   :  { %v803_v47 = vmax.f32 %v476_v29, 0.0  ;;  %v661_v32 = vadd.f32 %v660_v24, %v4598_v1 }
 0x181   :  { %v804_v53 = vmax.f32 %v478_v36, 0.0  ;;  %v797_v36 = vmax.f32 %v659_v21, 0.0 }
 0x182   :  { %v879_v55 = vpack.c.bf16 %v803_v47, %v799_v43  ;;  %v798_v39 = vmax.f32 %v661_v32, 0.0 }
 0x183   :  { %v880_v57 = vpack.c.bf16 %v804_v53, %v800_v50  ;;  %v481_v58 = vpop.f32.mrb[52].mxu0  ;;  %v4740_v43 = vpack.c.bf16 %v797_v36, %v793_v17  ;;  %v664_v53 = vpop.f32.mrb[48].mxu1 }
 0x184   :  { %v482_v2 = vadd.f32 %v481_v58, %v4576_v26  ;;  %v483_v3 = vpop.f32.mrb[53].mxu0  ;;  %v4742_v50 = vpack.c.bf16 %v798_v39, %v794_v31  ;;  %v666_v58 = vpop.f32.mrb[49].mxu1 }
 0x185   :  { %v484_v10 = vadd.f32 %v483_v3, %v4580_v27  ;;  %v485_v11 = vpop.f32.mrb[54].mxu0  ;;  %1837 = vmatprep.mubr.bf16.mxu0 %v880_v57  ;;  %2223 = vmatprep.mubr.bf16.mxu1 %v880_v57  ;;  %v665_v57 = vadd.f32 %v664_v53, %v4594_v61  ;;  %v667_v3 = vadd.f32 %v666_v58, %v4598_v1  ;;  %v668_v7 = vpop.f32.mrb[50].mxu1 }
 0x186   :  { %v486_v15 = vadd.f32 %v485_v11, %v4576_v26  ;;  %v487_v16 = vpop.f32.mrb[55].mxu0  ;;  %1838 = vmatmul.mubr.bf16.gmra.mrb[112].mxu0 %v879_v55  ;;  %2224 = vmatmul.mubr.bf16.gmra.mrb[112].mxu1 %v879_v55  ;;  %v807_v33 = vmax.f32 %v482_v2, 0.0  ;;  %v669_v12 = vadd.f32 %v668_v7, %v4594_v61  ;;  %v670_v14 = vpop.f32.mrb[51].mxu1 }
 0x187   :  { %v488_v29 = vadd.f32 %v487_v16, %v4580_v27  ;;  %v808_v37 = vmax.f32 %v484_v10, 0.0  ;;  %v801_v11 = vmax.f32 %v665_v57, 0.0  ;;  %v802_v16 = vmax.f32 %v667_v3, 0.0 }
 0x188   :  { %v811_v34 = vmax.f32 %v486_v15, 0.0  ;;  %v671_v17 = vadd.f32 %v670_v14, %v4598_v1 }
 0x189   :  { %v812_v38 = vmax.f32 %v488_v29, 0.0  ;;  %v805_v29 = vmax.f32 %v669_v12, 0.0 }
 0x18a   :  { %v883_v42 = vpack.c.bf16 %v811_v34, %v807_v33  ;;  %v806_v33 = vmax.f32 %v671_v17, 0.0 }
 0x18b   :  { %v884_v47 = vpack.c.bf16 %v812_v38, %v808_v37  ;;  %v491_v49 = vpop.f32.mrb[56].mxu0  ;;  %v4752_v36 = vpack.c.bf16 %v805_v29, %v801_v11 }
 0x18c   :  { %v492_v54 = vadd.f32 %v491_v49, %v4576_v26  ;;  %v493_v55 = vpop.f32.mrb[57].mxu0  ;;  %v4754_v39 = vpack.c.bf16 %v806_v33, %v802_v16 }
 0x18d   :  { %v494_v60 = vadd.f32 %v493_v55, %v4580_v27  ;;  %v495_v2 = vpop.f32.mrb[58].mxu0  ;;  %1847 = vmatprep.mubr.bf16.mxu0 %v884_v47  ;;  %2233 = vmatprep.mubr.bf16.mxu1 %v884_v47 }
 0x18e   :  { %v496_v8 = vadd.f32 %v495_v2, %v4576_v26  ;;  %v497_v10 = vpop.f32.mrb[59].mxu0  ;;  %1848 = vmatmul.mubr.bf16.gmra.mrb[116].mxu0 %v883_v42  ;;  %2234 = vmatmul.mubr.bf16.gmra.mrb[116].mxu1 %v883_v42  ;;  %v815_v21 = vmax.f32 %v492_v54, 0.0  ;;  %v674_v42 = vpop.f32.mrb[52].mxu1 }
 0x18f   :  { %v498_v15 = vadd.f32 %v497_v10, %v4580_v27  ;;  %v816_v31 = vmax.f32 %v494_v60, 0.0  ;;  %v675_v53 = vadd.f32 %v674_v42, %v4594_v61  ;;  %v676_v55 = vpop.f32.mrb[53].mxu1 }
 0x190   :  { %v819_v24 = vmax.f32 %v496_v8, 0.0  ;;  %v677_v58 = vadd.f32 %v676_v55, %v4598_v1  ;;  %v678_v60 = vpop.f32.mrb[54].mxu1 }
 0x191   :  { %v820_v32 = vmax.f32 %v498_v15, 0.0  ;;  %v809_v7 = vmax.f32 %v675_v53, 0.0  ;;  %v679_v8 = vadd.f32 %v678_v60, %v4594_v61  ;;  %v680_v10 = vpop.f32.mrb[55].mxu1 }
 0x192   :  { %v887_v34 = vpack.c.bf16 %v819_v24, %v815_v21  ;;  %v810_v12 = vmax.f32 %v677_v58, 0.0  ;;  %v681_v14 = vadd.f32 %v680_v10, %v4598_v1  ;;  %v4193_v10 = vld [vmem:[#allocation4] sm:$0xff]  }
 0x193   :  { %v888_v37 = vpack.c.bf16 %v820_v32, %v816_v31  ;;  %v501_v38 = vpop.f32.mrb[60].mxu0  ;;  %v813_v17 = vmax.f32 %v679_v8, 0.0 }
 0x194   :  { %v502_v47 = vadd.f32 %v501_v38, %v4576_v26  ;;  %v503_v49 = vpop.f32.mrb[61].mxu0  ;;  %v814_v29 = vmax.f32 %v681_v14, 0.0 }
 0x195   :  { %v504_v54 = vadd.f32 %v503_v49, %v4580_v27  ;;  %v505_v57 = vpop.f32.mrb[62].mxu0  ;;  %1857 = vmatprep.mubr.bf16.mxu0 %v888_v37  ;;  %2243 = vmatprep.mubr.bf16.mxu1 %v888_v37 }
 0x196   :  { %v506_v2 = vadd.f32 %v505_v57, %v4576_v26  ;;  %v507_v3 = vpop.f32.mrb[63].mxu0  ;;  %1858 = vmatmul.mubr.bf16.gmra.mrb[120].mxu0 %v887_v34  ;;  %2244 = vmatmul.mubr.bf16.gmra.mrb[120].mxu1 %v887_v34  ;;  %v823_v15 = vmax.f32 %v502_v47, 0.0  ;;  %v4764_v26 = vpack.c.bf16 %v813_v17, %v809_v7  ;;  %v4766_v33 = vpack.c.bf16 %v814_v29, %v810_v12  ;;  %v684_v34 = vpop.f32.mrb[56].mxu1 }
 0x197   :  { %v508_v11 = vadd.f32 %v507_v3, %v4580_v27  ;;  %v824_v21 = vmax.f32 %v504_v54, 0.0  ;;  %v685_v37 = vadd.f32 %v684_v34, %v4594_v61  ;;  %v686_v38 = vpop.f32.mrb[57].mxu1  ;;  %v4199_v34 = vld [vmem:[#allocation4 + $0x88] sm:$0xff]  }
 0x198   :  { %v827_v16 = vmax.f32 %v506_v2, 0.0  ;;  %v687_v27 = vadd.f32 %v686_v38, %v4598_v1  ;;  %v688_v42 = vpop.f32.mrb[58].mxu1  ;;  %v4202_v38 = vld [vmem:[#allocation4 + $0xd0] sm:$0xff]  }
 0x199   :  { %v828_v24 = vmax.f32 %v508_v11, 0.0  ;;  %v817_v47 = vmax.f32 %v685_v37, 0.0  ;;  %v689_v49 = vadd.f32 %v688_v42, %v4594_v61  ;;  %v690_v53 = vpop.f32.mrb[59].mxu1  ;;  %v4195_v11 = vld [vmem:[#allocation4 + $0x80] sm:$0xff]   ;;  %v4203_v42 = vld [vmem:[#allocation4 + $0x90] sm:$0xff]  }
 0x19a   :  { %v891_v31 = vpack.c.bf16 %v827_v16, %v823_v15  ;;  %v818_v55 = vmax.f32 %v687_v27, 0.0  ;;  %v691_v54 = vadd.f32 %v690_v53, %v4598_v1  ;;  %v694_v3 = vpop.f32.mrb[60].mxu1  ;;  %v4196_v15 = vld [vmem:[#allocation4 + $0x48] sm:$0xff]   ;;  %v4207_v53 = vld [vmem:[#allocation4 + $0x98] sm:$0xff]  }
 0x19b   :  { %v892_v32 = vpack.c.bf16 %v828_v24, %v824_v21  ;;  %v821_v57 = vmax.f32 %v689_v49, 0.0  ;;  %v695_v7 = vadd.f32 %v694_v3, %v4594_v61  ;;  %v696_v8 = vpop.f32.mrb[61].mxu1  ;;  %v4205_v49 = vld [vmem:[#allocation4 + $0x18] sm:$0xff]   ;;  %v4212_v3 = vld [vmem:[#allocation4 + $0x68] sm:$0xff]  }
 0x19c   :  { %v822_v58 = vmax.f32 %v691_v54, 0.0  ;;  %v697_v12 = vadd.f32 %v696_v8, %v4598_v1  ;;  %v698_v14 = vpop.f32.mrb[62].mxu1  ;;  %v4210_v54 = vld [vmem:[#allocation4 + $0xe0] sm:$0xff]   ;;  %v4216_v8 = vld [vmem:[#allocation4 + $0x70] sm:$0xff]  }
 0x19d   :  { %1867 = vmatprep.mubr.bf16.mxu0 %v892_v32  ;;  %2253 = vmatprep.mubr.bf16.mxu1 %v892_v32  ;;  %v4774_v60 = vpack.c.bf16 %v821_v57, %v817_v47  ;;  %v825_v16 = vmax.f32 %v695_v7, 0.0  ;;  %v699_v17 = vadd.f32 %v698_v14, %v4594_v61  ;;  %v700_v21 = vpop.f32.mrb[63].mxu1  ;;  %v4197_v32 = vld [vmem:[#allocation4 + $0x8] sm:$0xff]   ;;  %v4206_v47 = vld [vmem:[#allocation4 + $0xd8] sm:$0xff]   ;;  %v4209_v57 = vld [vmem:[#allocation4 + $0x20] sm:$0xff]  }
 0x19e   :  { %1868 = vmatmul.mubr.bf16.gmra.mrb[124].mxu0 %v891_v31  ;;  %2254 = vmatmul.mubr.bf16.gmra.mrb[124].mxu1 %v891_v31  ;;  %v4776_v2 = vpack.c.bf16 %v822_v58, %v818_v55  ;;  %v826_v24 = vmax.f32 %v697_v12, 0.0  ;;  %v701_v29 = vadd.f32 %v700_v21, %v4598_v1  ;;  %v4204_v1 = vld [vmem:[#allocation4 + $0x58] sm:$0xff]   ;;  %v4208_v55 = vld [vmem:[#allocation4 + $0x60] sm:$0xff]   ;;  %v4215_v7 = vld [vmem:[#allocation4 + $0xa8] sm:$0xff]  }
 0x19f   :  { %1910 = vmatprep.mubr.bf16.mxu0 %v4610_v46  ;;  %2296 = vmatprep.mubr.bf16.mxu1 %v4610_v46  ;;  %v4198_v46 = vld [vmem:[#allocation4 + $0xc8] sm:$0xff]   ;;  %v829_v31 = vmax.f32 %v699_v17, 0.0  ;;  %v4211_v58 = vld [vmem:[#allocation4 + $0xa0] sm:$0xff]   ;;  %v4219_v12 = vld [vmem:[#allocation4 + $0xb0] sm:$0xff]  }
 0x1a0   :  { %v830_v37 = vmax.f32 %v701_v29, 0.0  ;;  %v4220_v14 = vld [vmem:[#allocation4 + $0x78] sm:$0xff]  }
 0x1a1   :  { %v4786_v27 = vpack.c.bf16 %v829_v31, %v825_v16 }
 0x1a2   :  { %v4788_v61 = vpack.c.bf16 %v830_v37, %v826_v24 }
 0x1a6   :  { %1911 = vmatmul.mubr.bf16.vlgmr.msra.gmra.mrb[64].mxu0 %v4608_v41  ;;  %2297 = vmatmul.mubr.bf16.vlgmr.msra.gmra.mrb[64].mxu1 %v4608_v41  ;;  %v4200_v41 = vld [vmem:[#allocation4 + $0x50] sm:$0xff]  }
 0x1a7   :  { %1920 = vmatprep.mubr.bf16.mxu0 %v4622_v0  ;;  %2306 = vmatprep.mubr.bf16.mxu1 %v4622_v0  ;;  %v4201_v0 = vld [vmem:[#allocation4 + $0x10] sm:$0xff]  }
 0x1a8   :  { %3466 = vmatpush3.bf16.msra.mxu0 %v4193_v10  ;;  %3578 = vmatpush3.bf16.msra.mxu1 %v4195_v11  ;;  %v4218_v10 = vld [vmem:[#allocation4 + $0xf0] sm:$0xff]  }
 0x1a9   :  { %3467 = vmatprep.subr.bf16.mxu0 %v4196_v15  ;;  %3579 = vmatprep.subr.bf16.mxu1 %v4198_v46  ;;  %v4217_v11 = vld [vmem:[#allocation4 + $0x30] sm:$0xff]   ;;  %v4223_v15 = vld [vmem:[#allocation4 + $0xb8] sm:$0xff]  }
 0x1ac   :  { %3468 = vmatpush3.bf16.msra.mxu0 %v4197_v32  ;;  %3580 = vmatpush3.bf16.msra.mxu1 %v4199_v34 }
 0x1ad   :  { %3469 = vmatprep.subr.bf16.mxu0 %v4200_v41  ;;  %3581 = vmatprep.subr.bf16.mxu1 %v4202_v38 }
 0x1ae   :  { %1921 = vmatmul.mubr.bf16.gmra.mrb[68].mxu0 %v4620_v18  ;;  %2307 = vmatmul.mubr.bf16.gmra.mrb[68].mxu1 %v4620_v18  ;;  %v4214_v18 = vld [vmem:[#allocation4 + $0xe8] sm:$0xff]  }
 0x1af   :  { %1930 = vmatprep.mubr.bf16.mxu0 %v4634_v6  ;;  %2316 = vmatprep.mubr.bf16.mxu1 %v4634_v6  ;;  %v4213_v6 = vld [vmem:[#allocation4 + $0x28] sm:$0xff]  }
 0x1b0   :  { %3470 = vmatpush3.bf16.msra.mxu0 %v4201_v0  ;;  %3582 = vmatpush3.bf16.msra.mxu1 %v4203_v42 }
 0x1b1   :  { %3471 = vmatprep.subr.bf16.mxu0 %v4204_v1  ;;  %3583 = vmatprep.subr.bf16.mxu1 %v4206_v47 }
 0x1b4   :  { %3472 = vmatpush3.bf16.msra.mxu0 %v4205_v49  ;;  %3584 = vmatpush3.bf16.msra.mxu1 %v4207_v53 }
 0x1b5   :  { %3473 = vmatprep.subr.bf16.mxu0 %v4208_v55  ;;  %3585 = vmatprep.subr.bf16.mxu1 %v4210_v54 }
 0x1b6   :  { %1931 = vmatmul.mubr.bf16.gmra.mrb[72].mxu0 %v4632_v63  ;;  %2317 = vmatmul.mubr.bf16.gmra.mrb[72].mxu1 %v4632_v63  ;;  %v4222_v63 = vld [vmem:[#allocation4 + $0xf8] sm:$0xff]  }
 0x1b7   :  { %1940 = vmatprep.mubr.bf16.mxu0 %v4646_v52  ;;  %2326 = vmatprep.mubr.bf16.mxu1 %v4646_v52  ;;  %v4221_v52 = vld [vmem:[#allocation4 + $0x38] sm:$0xff]  }
 0x1b8   :  { %3474 = vmatpush3.bf16.msra.mxu0 %v4209_v57  ;;  %3586 = vmatpush3.bf16.msra.mxu1 %v4211_v58 }
 0x1b9   :  { %3475 = vmatprep.subr.bf16.mxu0 %v4212_v3  ;;  %3587 = vmatprep.subr.bf16.mxu1 %v4214_v18 }
 0x1bc   :  { %3476 = vmatpush3.bf16.msra.mxu0 %v4213_v6  ;;  %3588 = vmatpush3.bf16.msra.mxu1 %v4215_v7 }
 0x1bd   :  { %3477 = vmatprep.subr.bf16.mxu0 %v4216_v8  ;;  %3589 = vmatprep.subr.bf16.mxu1 %v4218_v10 }
 0x1be   :  { %1941 = vmatmul.mubr.bf16.gmra.mrb[76].mxu0 %v4644_v44  ;;  %2327 = vmatmul.mubr.bf16.gmra.mrb[76].mxu1 %v4644_v44  ;;  %v1023_v44 = vld [vmem:[%s5132_s4] sm:$0xf] }
 0x1bf   :  { %1950 = vmatprep.mubr.bf16.mxu0 %v4658_v35  ;;  %2336 = vmatprep.mubr.bf16.mxu1 %v4658_v35  ;;  %v4857_v35 = vrot.slane %v1023_v44, %v147_v48 }
 0x1c0   :  { %3478 = vmatpush3.bf16.msra.mxu0 %v4217_v11  ;;  %3590 = vmatpush3.bf16.msra.mxu1 %v4219_v12 }
 0x1c1   :  { %3479 = vmatprep.subr.bf16.mxu0 %v4220_v14  ;;  %3591 = vmatprep.subr.bf16.mxu1 %v4222_v63 }
 0x1c4   :  { %3480 = vmatpush3.bf16.msra.mxu0 %v4221_v52  ;;  %3592 = vmatpush3.bf16.msra.mxu1 %v4223_v15 }
 0x1c6   :  { %1951 = vmatmul.mubr.bf16.gmra.mrb[80].mxu0 %v4656_v30  ;;  %2337 = vmatmul.mubr.bf16.gmra.mrb[80].mxu1 %v4656_v30  ;;  %v4853_v30 = vrot.slane %v1023_v44, %v139_v23 }
 0x1c7   :  { %1960 = vmatprep.mubr.bf16.mxu0 %v4670_v19  ;;  %2346 = vmatprep.mubr.bf16.mxu1 %v4670_v19  ;;  %v4865_v19 = vrot.slane %v1023_v44, %v151_v51 }
 0x1ce   :  { %1961 = vmatmul.mubr.bf16.gmra.mrb[84].mxu0 %v4668_v13  ;;  %2347 = vmatmul.mubr.bf16.gmra.mrb[84].mxu1 %v4668_v13  ;;  %v4861_v13 = vrot.slane %v1023_v44, %v143_v25 }
 0x1cf   :  { %1970 = vmatprep.mubr.bf16.mxu0 %v4682_v4  ;;  %2356 = vmatprep.mubr.bf16.mxu1 %v4682_v4 }
 0x1d6   :  { %1971 = vmatmul.mubr.bf16.gmra.mrb[88].mxu0 %v4680_v62  ;;  %2357 = vmatmul.mubr.bf16.gmra.mrb[88].mxu1 %v4680_v62 }
 0x1d7   :  { %1980 = vmatprep.mubr.bf16.mxu0 %v4694_v45  ;;  %2366 = vmatprep.mubr.bf16.mxu1 %v4694_v45 }
 0x1de   :  { %1981 = vmatmul.mubr.bf16.gmra.mrb[92].mxu0 %v4692_v40  ;;  %2367 = vmatmul.mubr.bf16.gmra.mrb[92].mxu1 %v4692_v40 }
 0x1df   :  { %1990 = vmatprep.mubr.bf16.mxu0 %v4706_v28  ;;  %2376 = vmatprep.mubr.bf16.mxu1 %v4706_v28 }
 0x1e6   :  { %1991 = vmatmul.mubr.bf16.gmra.mrb[96].mxu0 %v4704_v20  ;;  %2377 = vmatmul.mubr.bf16.gmra.mrb[96].mxu1 %v4704_v20 }
 0x1e7   :  { %2000 = vmatprep.mubr.bf16.mxu0 %v4718_v9  ;;  %2386 = vmatprep.mubr.bf16.mxu1 %v4718_v9 }
 0x1ee   :  { %2001 = vmatmul.mubr.bf16.gmra.mrb[100].mxu0 %v4716_v5  ;;  %2387 = vmatmul.mubr.bf16.gmra.mrb[100].mxu1 %v4716_v5 }
 0x1ef   :  { %2010 = vmatprep.mubr.bf16.mxu0 %v4730_v59  ;;  %2396 = vmatprep.mubr.bf16.mxu1 %v4730_v59 }
 0x1f6   :  { %2011 = vmatmul.mubr.bf16.gmra.mrb[104].mxu0 %v4728_v56  ;;  %2397 = vmatmul.mubr.bf16.gmra.mrb[104].mxu1 %v4728_v56 }
 0x1f7   :  { %2020 = vmatprep.mubr.bf16.mxu0 %v4742_v50  ;;  %2406 = vmatprep.mubr.bf16.mxu1 %v4742_v50 }
 0x1fe   :  { %2021 = vmatmul.mubr.bf16.gmra.mrb[108].mxu0 %v4740_v43  ;;  %2407 = vmatmul.mubr.bf16.gmra.mrb[108].mxu1 %v4740_v43 }
 0x1ff   :  { %2030 = vmatprep.mubr.bf16.mxu0 %v4754_v39  ;;  %2416 = vmatprep.mubr.bf16.mxu1 %v4754_v39 }
 0x206   :  { %2031 = vmatmul.mubr.bf16.gmra.mrb[112].mxu0 %v4752_v36  ;;  %2417 = vmatmul.mubr.bf16.gmra.mrb[112].mxu1 %v4752_v36 }
 0x207   :  { %2040 = vmatprep.mubr.bf16.mxu0 %v4766_v33  ;;  %2426 = vmatprep.mubr.bf16.mxu1 %v4766_v33 }
 0x20e   :  { %2041 = vmatmul.mubr.bf16.gmra.mrb[116].mxu0 %v4764_v26  ;;  %2427 = vmatmul.mubr.bf16.gmra.mrb[116].mxu1 %v4764_v26 }
 0x20f   :  { %2050 = vmatprep.mubr.bf16.mxu0 %v4776_v2  ;;  %2436 = vmatprep.mubr.bf16.mxu1 %v4776_v2 }
 0x216   :  { %2051 = vmatmul.mubr.bf16.gmra.mrb[120].mxu0 %v4774_v60  ;;  %2437 = vmatmul.mubr.bf16.gmra.mrb[120].mxu1 %v4774_v60 }
 0x217   :  { %2060 = vmatprep.mubr.bf16.mxu0 %v4788_v61  ;;  %2446 = vmatprep.mubr.bf16.mxu1 %v4788_v61 }
 0x21e   :  { %2061 = vmatmul.mubr.bf16.gmra.mrb[124].mxu0 %v4786_v27  ;;  %2447 = vmatmul.mubr.bf16.gmra.mrb[124].mxu1 %v4786_v27 }
 0x279   :  { %v1912_v62 = vpop.f32.mrb[64].mxu0  ;;  %v2298_v4 = vpop.f32.mrb[64].mxu1 }
 0x27a   :  { %v3689_v40 = vadd.f32 %v1912_v62, %v4853_v30  ;;  %v3753_v45 = vadd.f32 %v2298_v4, %v4857_v35  ;;  %v1914_v23 = vpop.f32.mrb[65].mxu0  ;;  %v2300_v20 = vpop.f32.mrb[65].mxu1 }
 0x27b   :  { %v3690_v28 = vadd.f32 %v1914_v23, %v4861_v13  ;;  %v3754_v48 = vadd.f32 %v2300_v20, %v4865_v19  ;;  %v1916_v5 = vpop.f32.mrb[66].mxu0  ;;  %v2302_v9 = vpop.f32.mrb[66].mxu1 }
 0x27c   :  { %v3691_v25 = vadd.f32 %v1916_v5, %v4853_v30  ;;  %v3755_v22 = vadd.f32 %v2302_v9, %v4857_v35  ;;  %v1918_v51 = vpop.f32.mrb[67].mxu0  ;;  %v2304_v56 = vpop.f32.mrb[67].mxu1  ;;  %v2457_v50 = vmax.f32 %v3689_v40, 0.0  ;;  %v2459_v36 = vmax.f32 %v3753_v45, 0.0 }
 0x27d   :  { %v3692_v59 = vadd.f32 %v1918_v51, %v4861_v13  ;;  %v3756_v43 = vadd.f32 %v2304_v56, %v4865_v19  ;;  %v2458_v33 = vmax.f32 %v3690_v28, 0.0  ;;  %v2460_v60 = vmax.f32 %v3754_v48, 0.0 }
 0x27e   :  { %v2461_v39 = vmax.f32 %v3691_v25, 0.0  ;;  %v2463_v26 = vmax.f32 %v3755_v22, 0.0 }
 0x27f   :  { %v2462_v2 = vmax.f32 %v3692_v59, 0.0  ;;  %v2464_v46 = vmax.f32 %v3756_v43, 0.0 }
 0x280   :  { %v2585_v16 = vpack.c.bf16 %v2461_v39, %v2457_v50  ;;  %v2587_v17 = vpack.c.bf16 %v2463_v26, %v2459_v36 }
 0x281   :  { %v2586_v21 = vpack.c.bf16 %v2462_v2, %v2458_v33  ;;  %v2588_v24 = vpack.c.bf16 %v2464_v46, %v2460_v60  ;;  %v1922_v29 = vpop.f32.mrb[68].mxu0  ;;  %v2308_v31 = vpop.f32.mrb[68].mxu1 }
 0x282   :  { %v3693_v32 = vadd.f32 %v1922_v29, %v4853_v30  ;;  %v3757_v34 = vadd.f32 %v2308_v31, %v4857_v35  ;;  %v1924_v37 = vpop.f32.mrb[69].mxu0  ;;  %v2310_v41 = vpop.f32.mrb[69].mxu1 }
 0x283   :  { %v3694_v38 = vadd.f32 %v1924_v37, %v4861_v13  ;;  %v3758_v27 = vadd.f32 %v2310_v41, %v4865_v19  ;;  %v1926_v61 = vpop.f32.mrb[70].mxu0  ;;  %v2312_v0 = vpop.f32.mrb[70].mxu1  ;;  %2944 = vmatprep.mubr.bf16.mxu0 %v2586_v21  ;;  %3105 = vmatprep.mubr.bf16.mxu1 %v2588_v24 }
 0x284   :  { %v3695_v42 = vadd.f32 %v1926_v61, %v4853_v30  ;;  %v3759_v1 = vadd.f32 %v2312_v0, %v4857_v35  ;;  %v1928_v47 = vpop.f32.mrb[71].mxu0  ;;  %v2314_v49 = vpop.f32.mrb[71].mxu1  ;;  %2945 = vmatmul.mubr.bf16.vlgmr.msra.gmra.mrb[128].mxu0 %v2585_v16  ;;  %3106 = vmatmul.mubr.bf16.vlgmr.msra.gmra.mrb[128].mxu1 %v2587_v17  ;;  %v2465_v54 = vmax.f32 %v3693_v32, 0.0  ;;  %v2467_v57 = vmax.f32 %v3757_v34, 0.0 }
 0x285   :  { %v3696_v53 = vadd.f32 %v1928_v47, %v4861_v13  ;;  %v3760_v55 = vadd.f32 %v2314_v49, %v4865_v19  ;;  %v2466_v18 = vmax.f32 %v3694_v38, 0.0  ;;  %v2468_v6 = vmax.f32 %v3758_v27, 0.0 }
 0x286   :  { %v2469_v58 = vmax.f32 %v3695_v42, 0.0  ;;  %v2471_v3 = vmax.f32 %v3759_v1, 0.0 }
 0x287   :  { %v2470_v7 = vmax.f32 %v3696_v53, 0.0  ;;  %v2472_v8 = vmax.f32 %v3760_v55, 0.0 }
 0x288   :  { %v2589_v10 = vpack.c.bf16 %v2469_v58, %v2465_v54  ;;  %v2591_v11 = vpack.c.bf16 %v2471_v3, %v2467_v57 }
 0x289   :  { %v2590_v12 = vpack.c.bf16 %v2470_v7, %v2466_v18  ;;  %v2592_v14 = vpack.c.bf16 %v2472_v8, %v2468_v6  ;;  %v1932_v63 = vpop.f32.mrb[72].mxu0  ;;  %v2318_v52 = vpop.f32.mrb[72].mxu1 }
 0x28a   :  { %v3697_v15 = vadd.f32 %v1932_v63, %v4853_v30  ;;  %v3761_v44 = vadd.f32 %v2318_v52, %v4857_v35  ;;  %v1934_v62 = vpop.f32.mrb[73].mxu0  ;;  %v2320_v4 = vpop.f32.mrb[73].mxu1 }
 0x28b   :  { %v3698_v40 = vadd.f32 %v1934_v62, %v4861_v13  ;;  %v3762_v45 = vadd.f32 %v2320_v4, %v4865_v19  ;;  %v1936_v23 = vpop.f32.mrb[74].mxu0  ;;  %v2322_v20 = vpop.f32.mrb[74].mxu1  ;;  %2952 = vmatprep.mubr.bf16.mxu0 %v2590_v12  ;;  %3113 = vmatprep.mubr.bf16.mxu1 %v2592_v14 }
 0x28c   :  { %v3699_v28 = vadd.f32 %v1936_v23, %v4853_v30  ;;  %v3763_v48 = vadd.f32 %v2322_v20, %v4857_v35  ;;  %v1938_v5 = vpop.f32.mrb[75].mxu0  ;;  %v2324_v9 = vpop.f32.mrb[75].mxu1  ;;  %2953 = vmatmul.mubr.bf16.gmra.mrb[132].mxu0 %v2589_v10  ;;  %3114 = vmatmul.mubr.bf16.gmra.mrb[132].mxu1 %v2591_v11  ;;  %v2473_v51 = vmax.f32 %v3697_v15, 0.0  ;;  %v2475_v56 = vmax.f32 %v3761_v44, 0.0 }
 0x28d   :  { %v3700_v25 = vadd.f32 %v1938_v5, %v4861_v13  ;;  %v3764_v22 = vadd.f32 %v2324_v9, %v4865_v19  ;;  %v2474_v50 = vmax.f32 %v3698_v40, 0.0  ;;  %v2476_v36 = vmax.f32 %v3762_v45, 0.0 }
 0x28e   :  { %v2477_v59 = vmax.f32 %v3699_v28, 0.0  ;;  %v2479_v43 = vmax.f32 %v3763_v48, 0.0 }
 0x28f   :  { %v2478_v39 = vmax.f32 %v3700_v25, 0.0  ;;  %v2480_v26 = vmax.f32 %v3764_v22, 0.0 }
 0x290   :  { %v2593_v33 = vpack.c.bf16 %v2477_v59, %v2473_v51  ;;  %v2595_v60 = vpack.c.bf16 %v2479_v43, %v2475_v56 }
 0x291   :  { %v2594_v2 = vpack.c.bf16 %v2478_v39, %v2474_v50  ;;  %v2596_v46 = vpack.c.bf16 %v2480_v26, %v2476_v36  ;;  %v1942_v16 = vpop.f32.mrb[76].mxu0  ;;  %v2328_v17 = vpop.f32.mrb[76].mxu1 }
 0x292   :  { %v3701_v21 = vadd.f32 %v1942_v16, %v4853_v30  ;;  %v3765_v24 = vadd.f32 %v2328_v17, %v4857_v35  ;;  %v1944_v29 = vpop.f32.mrb[77].mxu0  ;;  %v2330_v31 = vpop.f32.mrb[77].mxu1 }
 0x293   :  { %v3702_v32 = vadd.f32 %v1944_v29, %v4861_v13  ;;  %v3766_v34 = vadd.f32 %v2330_v31, %v4865_v19  ;;  %v1946_v37 = vpop.f32.mrb[78].mxu0  ;;  %v2332_v41 = vpop.f32.mrb[78].mxu1  ;;  %2960 = vmatprep.mubr.bf16.mxu0 %v2594_v2  ;;  %3121 = vmatprep.mubr.bf16.mxu1 %v2596_v46 }
 0x294   :  { %v3703_v38 = vadd.f32 %v1946_v37, %v4853_v30  ;;  %v3767_v27 = vadd.f32 %v2332_v41, %v4857_v35  ;;  %v1948_v61 = vpop.f32.mrb[79].mxu0  ;;  %v2334_v0 = vpop.f32.mrb[79].mxu1  ;;  %2961 = vmatmul.mubr.bf16.gmra.mrb[136].mxu0 %v2593_v33  ;;  %3122 = vmatmul.mubr.bf16.gmra.mrb[136].mxu1 %v2595_v60  ;;  %v2481_v47 = vmax.f32 %v3701_v21, 0.0  ;;  %v2483_v49 = vmax.f32 %v3765_v24, 0.0 }
 0x295   :  { %v3704_v42 = vadd.f32 %v1948_v61, %v4861_v13  ;;  %v3768_v1 = vadd.f32 %v2334_v0, %v4865_v19  ;;  %v2482_v54 = vmax.f32 %v3702_v32, 0.0  ;;  %v2484_v57 = vmax.f32 %v3766_v34, 0.0 }
 0x296   :  { %v2485_v53 = vmax.f32 %v3703_v38, 0.0  ;;  %v2487_v55 = vmax.f32 %v3767_v27, 0.0 }
 0x297   :  { %v2486_v58 = vmax.f32 %v3704_v42, 0.0  ;;  %v2488_v3 = vmax.f32 %v3768_v1, 0.0 }
 0x298   :  { %v2597_v18 = vpack.c.bf16 %v2485_v53, %v2481_v47  ;;  %v2599_v6 = vpack.c.bf16 %v2487_v55, %v2483_v49 }
 0x299   :  { %v2598_v7 = vpack.c.bf16 %v2486_v58, %v2482_v54  ;;  %v2600_v8 = vpack.c.bf16 %v2488_v3, %v2484_v57  ;;  %v1952_v10 = vpop.f32.mrb[80].mxu0  ;;  %v2338_v11 = vpop.f32.mrb[80].mxu1 }
 0x29a   :  { %v3705_v12 = vadd.f32 %v1952_v10, %v4853_v30  ;;  %v3769_v14 = vadd.f32 %v2338_v11, %v4857_v35  ;;  %v1954_v63 = vpop.f32.mrb[81].mxu0  ;;  %v2340_v52 = vpop.f32.mrb[81].mxu1 }
 0x29b   :  { %v3706_v15 = vadd.f32 %v1954_v63, %v4861_v13  ;;  %v3770_v44 = vadd.f32 %v2340_v52, %v4865_v19  ;;  %v1956_v62 = vpop.f32.mrb[82].mxu0  ;;  %v2342_v4 = vpop.f32.mrb[82].mxu1  ;;  %2968 = vmatprep.mubr.bf16.mxu0 %v2598_v7  ;;  %3129 = vmatprep.mubr.bf16.mxu1 %v2600_v8 }
 0x29c   :  { %v3707_v40 = vadd.f32 %v1956_v62, %v4853_v30  ;;  %v3771_v45 = vadd.f32 %v2342_v4, %v4857_v35  ;;  %v1958_v23 = vpop.f32.mrb[83].mxu0  ;;  %v2344_v20 = vpop.f32.mrb[83].mxu1  ;;  %2969 = vmatmul.mubr.bf16.gmra.mrb[140].mxu0 %v2597_v18  ;;  %3130 = vmatmul.mubr.bf16.gmra.mrb[140].mxu1 %v2599_v6  ;;  %v2489_v5 = vmax.f32 %v3705_v12, 0.0  ;;  %v2491_v9 = vmax.f32 %v3769_v14, 0.0 }
 0x29d   :  { %v3708_v28 = vadd.f32 %v1958_v23, %v4861_v13  ;;  %v3772_v48 = vadd.f32 %v2344_v20, %v4865_v19  ;;  %v2490_v51 = vmax.f32 %v3706_v15, 0.0  ;;  %v2492_v56 = vmax.f32 %v3770_v44, 0.0 }
 0x29e   :  { %v2493_v25 = vmax.f32 %v3707_v40, 0.0  ;;  %v2495_v22 = vmax.f32 %v3771_v45, 0.0 }
 0x29f   :  { %v2494_v59 = vmax.f32 %v3708_v28, 0.0  ;;  %v2496_v43 = vmax.f32 %v3772_v48, 0.0 }
 0x2a0   :  { %v2601_v50 = vpack.c.bf16 %v2493_v25, %v2489_v5  ;;  %v2603_v36 = vpack.c.bf16 %v2495_v22, %v2491_v9 }
 0x2a1   :  { %v2602_v39 = vpack.c.bf16 %v2494_v59, %v2490_v51  ;;  %v2604_v26 = vpack.c.bf16 %v2496_v43, %v2492_v56  ;;  %v1962_v33 = vpop.f32.mrb[84].mxu0  ;;  %v2348_v60 = vpop.f32.mrb[84].mxu1 }
 0x2a2   :  { %v3709_v2 = vadd.f32 %v1962_v33, %v4853_v30  ;;  %v3773_v46 = vadd.f32 %v2348_v60, %v4857_v35  ;;  %v1964_v16 = vpop.f32.mrb[85].mxu0  ;;  %v2350_v17 = vpop.f32.mrb[85].mxu1 }
 0x2a3   :  { %v3710_v21 = vadd.f32 %v1964_v16, %v4861_v13  ;;  %v3774_v24 = vadd.f32 %v2350_v17, %v4865_v19  ;;  %v1966_v29 = vpop.f32.mrb[86].mxu0  ;;  %v2352_v31 = vpop.f32.mrb[86].mxu1  ;;  %2976 = vmatprep.mubr.bf16.mxu0 %v2602_v39  ;;  %3137 = vmatprep.mubr.bf16.mxu1 %v2604_v26 }
 0x2a4   :  { %v3711_v32 = vadd.f32 %v1966_v29, %v4853_v30  ;;  %v3775_v34 = vadd.f32 %v2352_v31, %v4857_v35  ;;  %v1968_v37 = vpop.f32.mrb[87].mxu0  ;;  %v2354_v41 = vpop.f32.mrb[87].mxu1  ;;  %2977 = vmatmul.mubr.bf16.gmra.mrb[144].mxu0 %v2601_v50  ;;  %3138 = vmatmul.mubr.bf16.gmra.mrb[144].mxu1 %v2603_v36  ;;  %v2497_v61 = vmax.f32 %v3709_v2, 0.0  ;;  %v2499_v0 = vmax.f32 %v3773_v46, 0.0 }
 0x2a5   :  { %v3712_v38 = vadd.f32 %v1968_v37, %v4861_v13  ;;  %v3776_v27 = vadd.f32 %v2354_v41, %v4865_v19  ;;  %v2498_v47 = vmax.f32 %v3710_v21, 0.0  ;;  %v2500_v49 = vmax.f32 %v3774_v24, 0.0 }
 0x2a6   :  { %v2501_v42 = vmax.f32 %v3711_v32, 0.0  ;;  %v2503_v1 = vmax.f32 %v3775_v34, 0.0 }
 0x2a7   :  { %v2502_v53 = vmax.f32 %v3712_v38, 0.0  ;;  %v2504_v55 = vmax.f32 %v3776_v27, 0.0 }
 0x2a8   :  { %v2605_v54 = vpack.c.bf16 %v2501_v42, %v2497_v61  ;;  %v2607_v57 = vpack.c.bf16 %v2503_v1, %v2499_v0 }
 0x2a9   :  { %v2606_v58 = vpack.c.bf16 %v2502_v53, %v2498_v47  ;;  %v2608_v3 = vpack.c.bf16 %v2504_v55, %v2500_v49  ;;  %v1972_v18 = vpop.f32.mrb[88].mxu0  ;;  %v2358_v6 = vpop.f32.mrb[88].mxu1 }
 0x2aa   :  { %v3713_v7 = vadd.f32 %v1972_v18, %v4853_v30  ;;  %v3777_v8 = vadd.f32 %v2358_v6, %v4857_v35  ;;  %v1974_v10 = vpop.f32.mrb[89].mxu0  ;;  %v2360_v11 = vpop.f32.mrb[89].mxu1 }
 0x2ab   :  { %v3714_v12 = vadd.f32 %v1974_v10, %v4861_v13  ;;  %v3778_v14 = vadd.f32 %v2360_v11, %v4865_v19  ;;  %v1976_v63 = vpop.f32.mrb[90].mxu0  ;;  %v2362_v52 = vpop.f32.mrb[90].mxu1  ;;  %2984 = vmatprep.mubr.bf16.mxu0 %v2606_v58  ;;  %3145 = vmatprep.mubr.bf16.mxu1 %v2608_v3 }
 0x2ac   :  { %v3715_v15 = vadd.f32 %v1976_v63, %v4853_v30  ;;  %v3779_v44 = vadd.f32 %v2362_v52, %v4857_v35  ;;  %v1978_v62 = vpop.f32.mrb[91].mxu0  ;;  %v2364_v4 = vpop.f32.mrb[91].mxu1  ;;  %2985 = vmatmul.mubr.bf16.gmra.mrb[148].mxu0 %v2605_v54  ;;  %3146 = vmatmul.mubr.bf16.gmra.mrb[148].mxu1 %v2607_v57  ;;  %v2505_v23 = vmax.f32 %v3713_v7, 0.0  ;;  %v2507_v20 = vmax.f32 %v3777_v8, 0.0 }
 0x2ad   :  { %v3716_v40 = vadd.f32 %v1978_v62, %v4861_v13  ;;  %v3780_v45 = vadd.f32 %v2364_v4, %v4865_v19  ;;  %v2506_v5 = vmax.f32 %v3714_v12, 0.0  ;;  %v2508_v9 = vmax.f32 %v3778_v14, 0.0 }
 0x2ae   :  { %v2509_v28 = vmax.f32 %v3715_v15, 0.0  ;;  %v2511_v48 = vmax.f32 %v3779_v44, 0.0 }
 0x2af   :  { %v2510_v25 = vmax.f32 %v3716_v40, 0.0  ;;  %v2512_v22 = vmax.f32 %v3780_v45, 0.0 }
 0x2b0   :  { %v2609_v51 = vpack.c.bf16 %v2509_v28, %v2505_v23  ;;  %v2611_v56 = vpack.c.bf16 %v2511_v48, %v2507_v20 }
 0x2b1   :  { %v2610_v59 = vpack.c.bf16 %v2510_v25, %v2506_v5  ;;  %v2612_v43 = vpack.c.bf16 %v2512_v22, %v2508_v9  ;;  %v1982_v50 = vpop.f32.mrb[92].mxu0  ;;  %v2368_v36 = vpop.f32.mrb[92].mxu1 }
 0x2b2   :  { %v3717_v39 = vadd.f32 %v1982_v50, %v4853_v30  ;;  %v3781_v26 = vadd.f32 %v2368_v36, %v4857_v35  ;;  %v1984_v33 = vpop.f32.mrb[93].mxu0  ;;  %v2370_v60 = vpop.f32.mrb[93].mxu1 }
 0x2b3   :  { %v3718_v2 = vadd.f32 %v1984_v33, %v4861_v13  ;;  %v3782_v46 = vadd.f32 %v2370_v60, %v4865_v19  ;;  %v1986_v16 = vpop.f32.mrb[94].mxu0  ;;  %v2372_v17 = vpop.f32.mrb[94].mxu1  ;;  %2992 = vmatprep.mubr.bf16.mxu0 %v2610_v59  ;;  %3153 = vmatprep.mubr.bf16.mxu1 %v2612_v43 }
 0x2b4   :  { %v3719_v21 = vadd.f32 %v1986_v16, %v4853_v30  ;;  %v3783_v24 = vadd.f32 %v2372_v17, %v4857_v35  ;;  %v1988_v29 = vpop.f32.mrb[95].mxu0  ;;  %v2374_v31 = vpop.f32.mrb[95].mxu1  ;;  %2993 = vmatmul.mubr.bf16.gmra.mrb[152].mxu0 %v2609_v51  ;;  %3154 = vmatmul.mubr.bf16.gmra.mrb[152].mxu1 %v2611_v56  ;;  %v2513_v37 = vmax.f32 %v3717_v39, 0.0  ;;  %v2515_v41 = vmax.f32 %v3781_v26, 0.0 }
 0x2b5   :  { %v3720_v32 = vadd.f32 %v1988_v29, %v4861_v13  ;;  %v3784_v34 = vadd.f32 %v2374_v31, %v4865_v19  ;;  %v2514_v61 = vmax.f32 %v3718_v2, 0.0  ;;  %v2516_v0 = vmax.f32 %v3782_v46, 0.0 }
 0x2b6   :  { %v2517_v38 = vmax.f32 %v3719_v21, 0.0  ;;  %v2519_v27 = vmax.f32 %v3783_v24, 0.0 }
 0x2b7   :  { %v2518_v42 = vmax.f32 %v3720_v32, 0.0  ;;  %v2520_v1 = vmax.f32 %v3784_v34, 0.0 }
 0x2b8   :  { %v2613_v47 = vpack.c.bf16 %v2517_v38, %v2513_v37  ;;  %v2615_v49 = vpack.c.bf16 %v2519_v27, %v2515_v41 }
 0x2b9   :  { %v2614_v53 = vpack.c.bf16 %v2518_v42, %v2514_v61  ;;  %v2616_v55 = vpack.c.bf16 %v2520_v1, %v2516_v0  ;;  %v1992_v54 = vpop.f32.mrb[96].mxu0  ;;  %v2378_v57 = vpop.f32.mrb[96].mxu1 }
 0x2ba   :  { %v3721_v58 = vadd.f32 %v1992_v54, %v4853_v30  ;;  %v3785_v3 = vadd.f32 %v2378_v57, %v4857_v35  ;;  %v1994_v18 = vpop.f32.mrb[97].mxu0  ;;  %v2380_v6 = vpop.f32.mrb[97].mxu1 }
 0x2bb   :  { %v3722_v7 = vadd.f32 %v1994_v18, %v4861_v13  ;;  %v3786_v8 = vadd.f32 %v2380_v6, %v4865_v19  ;;  %v1996_v10 = vpop.f32.mrb[98].mxu0  ;;  %v2382_v11 = vpop.f32.mrb[98].mxu1  ;;  %3000 = vmatprep.mubr.bf16.mxu0 %v2614_v53  ;;  %3161 = vmatprep.mubr.bf16.mxu1 %v2616_v55 }
 0x2bc   :  { %v3723_v12 = vadd.f32 %v1996_v10, %v4853_v30  ;;  %v3787_v14 = vadd.f32 %v2382_v11, %v4857_v35  ;;  %v1998_v63 = vpop.f32.mrb[99].mxu0  ;;  %v2384_v52 = vpop.f32.mrb[99].mxu1  ;;  %3001 = vmatmul.mubr.bf16.gmra.mrb[156].mxu0 %v2613_v47  ;;  %3162 = vmatmul.mubr.bf16.gmra.mrb[156].mxu1 %v2615_v49  ;;  %v2521_v62 = vmax.f32 %v3721_v58, 0.0  ;;  %v2523_v4 = vmax.f32 %v3785_v3, 0.0 }
 0x2bd   :  { %v3724_v15 = vadd.f32 %v1998_v63, %v4861_v13  ;;  %v3788_v44 = vadd.f32 %v2384_v52, %v4865_v19  ;;  %v2522_v23 = vmax.f32 %v3722_v7, 0.0  ;;  %v2524_v20 = vmax.f32 %v3786_v8, 0.0 }
 0x2be   :  { %v2525_v40 = vmax.f32 %v3723_v12, 0.0  ;;  %v2527_v45 = vmax.f32 %v3787_v14, 0.0 }
 0x2bf   :  { %v2526_v28 = vmax.f32 %v3724_v15, 0.0  ;;  %v2528_v48 = vmax.f32 %v3788_v44, 0.0 }
 0x2c0   :  { %v2617_v5 = vpack.c.bf16 %v2525_v40, %v2521_v62  ;;  %v2619_v9 = vpack.c.bf16 %v2527_v45, %v2523_v4 }
 0x2c1   :  { %v2618_v25 = vpack.c.bf16 %v2526_v28, %v2522_v23  ;;  %v2620_v22 = vpack.c.bf16 %v2528_v48, %v2524_v20  ;;  %v2002_v51 = vpop.f32.mrb[100].mxu0  ;;  %v2388_v56 = vpop.f32.mrb[100].mxu1 }
 0x2c2   :  { %v3725_v59 = vadd.f32 %v2002_v51, %v4853_v30  ;;  %v3789_v43 = vadd.f32 %v2388_v56, %v4857_v35  ;;  %v2004_v50 = vpop.f32.mrb[101].mxu0  ;;  %v2390_v36 = vpop.f32.mrb[101].mxu1 }
 0x2c3   :  { %v3726_v39 = vadd.f32 %v2004_v50, %v4861_v13  ;;  %v3790_v26 = vadd.f32 %v2390_v36, %v4865_v19  ;;  %v2006_v33 = vpop.f32.mrb[102].mxu0  ;;  %v2392_v60 = vpop.f32.mrb[102].mxu1  ;;  %3008 = vmatprep.mubr.bf16.mxu0 %v2618_v25  ;;  %3169 = vmatprep.mubr.bf16.mxu1 %v2620_v22 }
 0x2c4   :  { %v3727_v2 = vadd.f32 %v2006_v33, %v4853_v30  ;;  %v3791_v46 = vadd.f32 %v2392_v60, %v4857_v35  ;;  %v2008_v16 = vpop.f32.mrb[103].mxu0  ;;  %v2394_v17 = vpop.f32.mrb[103].mxu1  ;;  %3009 = vmatmul.mubr.bf16.gmra.mrb[160].mxu0 %v2617_v5  ;;  %3170 = vmatmul.mubr.bf16.gmra.mrb[160].mxu1 %v2619_v9  ;;  %v2529_v29 = vmax.f32 %v3725_v59, 0.0  ;;  %v2531_v31 = vmax.f32 %v3789_v43, 0.0 }
 0x2c5   :  { %v3728_v21 = vadd.f32 %v2008_v16, %v4861_v13  ;;  %v3792_v24 = vadd.f32 %v2394_v17, %v4865_v19  ;;  %v2530_v37 = vmax.f32 %v3726_v39, 0.0  ;;  %v2532_v41 = vmax.f32 %v3790_v26, 0.0 }
 0x2c6   :  { %v2533_v32 = vmax.f32 %v3727_v2, 0.0  ;;  %v2535_v34 = vmax.f32 %v3791_v46, 0.0 }
 0x2c7   :  { %v2534_v38 = vmax.f32 %v3728_v21, 0.0  ;;  %v2536_v27 = vmax.f32 %v3792_v24, 0.0 }
 0x2c8   :  { %v2621_v61 = vpack.c.bf16 %v2533_v32, %v2529_v29  ;;  %v2623_v0 = vpack.c.bf16 %v2535_v34, %v2531_v31 }
 0x2c9   :  { %v2622_v42 = vpack.c.bf16 %v2534_v38, %v2530_v37  ;;  %v2624_v1 = vpack.c.bf16 %v2536_v27, %v2532_v41  ;;  %v2012_v47 = vpop.f32.mrb[104].mxu0  ;;  %v2398_v49 = vpop.f32.mrb[104].mxu1 }
 0x2ca   :  { %v3729_v53 = vadd.f32 %v2012_v47, %v4853_v30  ;;  %v3793_v55 = vadd.f32 %v2398_v49, %v4857_v35  ;;  %v2014_v54 = vpop.f32.mrb[105].mxu0  ;;  %v2400_v57 = vpop.f32.mrb[105].mxu1 }
 0x2cb   :  { %v3730_v58 = vadd.f32 %v2014_v54, %v4861_v13  ;;  %v3794_v3 = vadd.f32 %v2400_v57, %v4865_v19  ;;  %v2016_v18 = vpop.f32.mrb[106].mxu0  ;;  %v2402_v6 = vpop.f32.mrb[106].mxu1  ;;  %3016 = vmatprep.mubr.bf16.mxu0 %v2622_v42  ;;  %3177 = vmatprep.mubr.bf16.mxu1 %v2624_v1 }
 0x2cc   :  { %v3731_v7 = vadd.f32 %v2016_v18, %v4853_v30  ;;  %v3795_v8 = vadd.f32 %v2402_v6, %v4857_v35  ;;  %v2018_v10 = vpop.f32.mrb[107].mxu0  ;;  %v2404_v11 = vpop.f32.mrb[107].mxu1  ;;  %3017 = vmatmul.mubr.bf16.gmra.mrb[164].mxu0 %v2621_v61  ;;  %3178 = vmatmul.mubr.bf16.gmra.mrb[164].mxu1 %v2623_v0  ;;  %v2537_v63 = vmax.f32 %v3729_v53, 0.0  ;;  %v2539_v52 = vmax.f32 %v3793_v55, 0.0 }
 0x2cd   :  { %v3732_v12 = vadd.f32 %v2018_v10, %v4861_v13  ;;  %v3796_v14 = vadd.f32 %v2404_v11, %v4865_v19  ;;  %v2538_v62 = vmax.f32 %v3730_v58, 0.0  ;;  %v2540_v4 = vmax.f32 %v3794_v3, 0.0 }
 0x2ce   :  { %v2541_v15 = vmax.f32 %v3731_v7, 0.0  ;;  %v2543_v44 = vmax.f32 %v3795_v8, 0.0 }
 0x2cf   :  { %v2542_v40 = vmax.f32 %v3732_v12, 0.0  ;;  %v2544_v45 = vmax.f32 %v3796_v14, 0.0 }
 0x2d0   :  { %v2625_v23 = vpack.c.bf16 %v2541_v15, %v2537_v63  ;;  %v2627_v20 = vpack.c.bf16 %v2543_v44, %v2539_v52 }
 0x2d1   :  { %v2626_v28 = vpack.c.bf16 %v2542_v40, %v2538_v62  ;;  %v2628_v48 = vpack.c.bf16 %v2544_v45, %v2540_v4  ;;  %v2022_v5 = vpop.f32.mrb[108].mxu0  ;;  %v2408_v9 = vpop.f32.mrb[108].mxu1 }
 0x2d2   :  { %v3733_v25 = vadd.f32 %v2022_v5, %v4853_v30  ;;  %v3797_v22 = vadd.f32 %v2408_v9, %v4857_v35  ;;  %v2024_v51 = vpop.f32.mrb[109].mxu0  ;;  %v2410_v56 = vpop.f32.mrb[109].mxu1 }
 0x2d3   :  { %v3734_v59 = vadd.f32 %v2024_v51, %v4861_v13  ;;  %v3798_v43 = vadd.f32 %v2410_v56, %v4865_v19  ;;  %v2026_v50 = vpop.f32.mrb[110].mxu0  ;;  %v2412_v36 = vpop.f32.mrb[110].mxu1  ;;  %3024 = vmatprep.mubr.bf16.mxu0 %v2626_v28  ;;  %3185 = vmatprep.mubr.bf16.mxu1 %v2628_v48 }
 0x2d4   :  { %v3735_v39 = vadd.f32 %v2026_v50, %v4853_v30  ;;  %v3799_v26 = vadd.f32 %v2412_v36, %v4857_v35  ;;  %v2028_v33 = vpop.f32.mrb[111].mxu0  ;;  %v2414_v60 = vpop.f32.mrb[111].mxu1  ;;  %3025 = vmatmul.mubr.bf16.gmra.mrb[168].mxu0 %v2625_v23  ;;  %3186 = vmatmul.mubr.bf16.gmra.mrb[168].mxu1 %v2627_v20  ;;  %v2545_v16 = vmax.f32 %v3733_v25, 0.0  ;;  %v2547_v17 = vmax.f32 %v3797_v22, 0.0 }
 0x2d5   :  { %v3736_v2 = vadd.f32 %v2028_v33, %v4861_v13  ;;  %v3800_v46 = vadd.f32 %v2414_v60, %v4865_v19  ;;  %v2546_v29 = vmax.f32 %v3734_v59, 0.0  ;;  %v2548_v31 = vmax.f32 %v3798_v43, 0.0 }
 0x2d6   :  { %v2549_v21 = vmax.f32 %v3735_v39, 0.0  ;;  %v2551_v24 = vmax.f32 %v3799_v26, 0.0 }
 0x2d7   :  { %v2550_v32 = vmax.f32 %v3736_v2, 0.0  ;;  %v2552_v34 = vmax.f32 %v3800_v46, 0.0 }
 0x2d8   :  { %v2629_v37 = vpack.c.bf16 %v2549_v21, %v2545_v16  ;;  %v2631_v41 = vpack.c.bf16 %v2551_v24, %v2547_v17 }
 0x2d9   :  { %v2630_v38 = vpack.c.bf16 %v2550_v32, %v2546_v29  ;;  %v2632_v27 = vpack.c.bf16 %v2552_v34, %v2548_v31  ;;  %v2032_v61 = vpop.f32.mrb[112].mxu0  ;;  %v2418_v0 = vpop.f32.mrb[112].mxu1 }
 0x2da   :  { %v3737_v42 = vadd.f32 %v2032_v61, %v4853_v30  ;;  %v3801_v1 = vadd.f32 %v2418_v0, %v4857_v35  ;;  %v2034_v47 = vpop.f32.mrb[113].mxu0  ;;  %v2420_v49 = vpop.f32.mrb[113].mxu1 }
 0x2db   :  { %v3738_v53 = vadd.f32 %v2034_v47, %v4861_v13  ;;  %v3802_v55 = vadd.f32 %v2420_v49, %v4865_v19  ;;  %v2036_v54 = vpop.f32.mrb[114].mxu0  ;;  %v2422_v57 = vpop.f32.mrb[114].mxu1  ;;  %3032 = vmatprep.mubr.bf16.mxu0 %v2630_v38  ;;  %3193 = vmatprep.mubr.bf16.mxu1 %v2632_v27 }
 0x2dc   :  { %v3739_v58 = vadd.f32 %v2036_v54, %v4853_v30  ;;  %v3803_v3 = vadd.f32 %v2422_v57, %v4857_v35  ;;  %v2038_v18 = vpop.f32.mrb[115].mxu0  ;;  %v2424_v6 = vpop.f32.mrb[115].mxu1  ;;  %3033 = vmatmul.mubr.bf16.gmra.mrb[172].mxu0 %v2629_v37  ;;  %3194 = vmatmul.mubr.bf16.gmra.mrb[172].mxu1 %v2631_v41  ;;  %v2553_v10 = vmax.f32 %v3737_v42, 0.0  ;;  %v2555_v11 = vmax.f32 %v3801_v1, 0.0 }
 0x2dd   :  { %v3740_v7 = vadd.f32 %v2038_v18, %v4861_v13  ;;  %v3804_v8 = vadd.f32 %v2424_v6, %v4865_v19  ;;  %v2554_v63 = vmax.f32 %v3738_v53, 0.0  ;;  %v2556_v52 = vmax.f32 %v3802_v55, 0.0 }
 0x2de   :  { %v2557_v12 = vmax.f32 %v3739_v58, 0.0  ;;  %v2559_v14 = vmax.f32 %v3803_v3, 0.0 }
 0x2df   :  { %v2558_v15 = vmax.f32 %v3740_v7, 0.0  ;;  %v2560_v44 = vmax.f32 %v3804_v8, 0.0 }
 0x2e0   :  { %v2633_v62 = vpack.c.bf16 %v2557_v12, %v2553_v10  ;;  %v2635_v4 = vpack.c.bf16 %v2559_v14, %v2555_v11 }
 0x2e1   :  { %v2634_v40 = vpack.c.bf16 %v2558_v15, %v2554_v63  ;;  %v2636_v45 = vpack.c.bf16 %v2560_v44, %v2556_v52  ;;  %v2042_v23 = vpop.f32.mrb[116].mxu0  ;;  %v2428_v20 = vpop.f32.mrb[116].mxu1 }
 0x2e2   :  { %v3741_v28 = vadd.f32 %v2042_v23, %v4853_v30  ;;  %v3805_v48 = vadd.f32 %v2428_v20, %v4857_v35  ;;  %v2044_v5 = vpop.f32.mrb[117].mxu0  ;;  %v2430_v9 = vpop.f32.mrb[117].mxu1 }
 0x2e3   :  { %v3742_v25 = vadd.f32 %v2044_v5, %v4861_v13  ;;  %v3806_v22 = vadd.f32 %v2430_v9, %v4865_v19  ;;  %v2046_v51 = vpop.f32.mrb[118].mxu0  ;;  %v2432_v56 = vpop.f32.mrb[118].mxu1  ;;  %3040 = vmatprep.mubr.bf16.mxu0 %v2634_v40  ;;  %3201 = vmatprep.mubr.bf16.mxu1 %v2636_v45 }
 0x2e4   :  { %v3743_v59 = vadd.f32 %v2046_v51, %v4853_v30  ;;  %v3807_v43 = vadd.f32 %v2432_v56, %v4857_v35  ;;  %v2048_v50 = vpop.f32.mrb[119].mxu0  ;;  %v2434_v36 = vpop.f32.mrb[119].mxu1  ;;  %3041 = vmatmul.mubr.bf16.gmra.mrb[176].mxu0 %v2633_v62  ;;  %3202 = vmatmul.mubr.bf16.gmra.mrb[176].mxu1 %v2635_v4  ;;  %v2561_v33 = vmax.f32 %v3741_v28, 0.0  ;;  %v2563_v60 = vmax.f32 %v3805_v48, 0.0 }
 0x2e5   :  { %v3744_v39 = vadd.f32 %v2048_v50, %v4861_v13  ;;  %v3808_v26 = vadd.f32 %v2434_v36, %v4865_v19  ;;  %v2562_v16 = vmax.f32 %v3742_v25, 0.0  ;;  %v2564_v17 = vmax.f32 %v3806_v22, 0.0 }
 0x2e6   :  { %v2565_v2 = vmax.f32 %v3743_v59, 0.0  ;;  %v2567_v46 = vmax.f32 %v3807_v43, 0.0 }
 0x2e7   :  { %v2566_v21 = vmax.f32 %v3744_v39, 0.0  ;;  %v2568_v24 = vmax.f32 %v3808_v26, 0.0 }
 0x2e8   :  { %v2637_v29 = vpack.c.bf16 %v2565_v2, %v2561_v33  ;;  %v2639_v31 = vpack.c.bf16 %v2567_v46, %v2563_v60 }
 0x2e9   :  { %v2638_v32 = vpack.c.bf16 %v2566_v21, %v2562_v16  ;;  %v2640_v34 = vpack.c.bf16 %v2568_v24, %v2564_v17  ;;  %v2052_v37 = vpop.f32.mrb[120].mxu0  ;;  %v2438_v41 = vpop.f32.mrb[120].mxu1 }
 0x2ea   :  { %v3745_v38 = vadd.f32 %v2052_v37, %v4853_v30  ;;  %v3809_v27 = vadd.f32 %v2438_v41, %v4857_v35  ;;  %v2054_v61 = vpop.f32.mrb[121].mxu0  ;;  %v2440_v0 = vpop.f32.mrb[121].mxu1 }
 0x2eb   :  { %v3746_v42 = vadd.f32 %v2054_v61, %v4861_v13  ;;  %v3810_v1 = vadd.f32 %v2440_v0, %v4865_v19  ;;  %v2056_v47 = vpop.f32.mrb[122].mxu0  ;;  %v2442_v49 = vpop.f32.mrb[122].mxu1  ;;  %3048 = vmatprep.mubr.bf16.mxu0 %v2638_v32  ;;  %3209 = vmatprep.mubr.bf16.mxu1 %v2640_v34 }
 0x2ec   :  { %v3747_v53 = vadd.f32 %v2056_v47, %v4853_v30  ;;  %v3811_v55 = vadd.f32 %v2442_v49, %v4857_v35  ;;  %v2058_v54 = vpop.f32.mrb[123].mxu0  ;;  %v2444_v57 = vpop.f32.mrb[123].mxu1  ;;  %3049 = vmatmul.mubr.bf16.gmra.mrb[180].mxu0 %v2637_v29  ;;  %3210 = vmatmul.mubr.bf16.gmra.mrb[180].mxu1 %v2639_v31  ;;  %v2569_v18 = vmax.f32 %v3745_v38, 0.0  ;;  %v2571_v6 = vmax.f32 %v3809_v27, 0.0 }
 0x2ed   :  { %v3748_v58 = vadd.f32 %v2058_v54, %v4861_v13  ;;  %v3812_v3 = vadd.f32 %v2444_v57, %v4865_v19  ;;  %v2570_v10 = vmax.f32 %v3746_v42, 0.0  ;;  %v2572_v11 = vmax.f32 %v3810_v1, 0.0 }
 0x2ee   :  { %v2573_v7 = vmax.f32 %v3747_v53, 0.0  ;;  %v2575_v8 = vmax.f32 %v3811_v55, 0.0 }
 0x2ef   :  { %v2574_v12 = vmax.f32 %v3748_v58, 0.0  ;;  %v2576_v14 = vmax.f32 %v3812_v3, 0.0 }
 0x2f0   :  { %v2641_v63 = vpack.c.bf16 %v2573_v7, %v2569_v18  ;;  %v2643_v52 = vpack.c.bf16 %v2575_v8, %v2571_v6 }
 0x2f1   :  { %v2642_v15 = vpack.c.bf16 %v2574_v12, %v2570_v10  ;;  %v2644_v44 = vpack.c.bf16 %v2576_v14, %v2572_v11  ;;  %v2062_v62 = vpop.f32.mrb[124].mxu0  ;;  %v2448_v4 = vpop.f32.mrb[124].mxu1 }
 0x2f2   :  { %v3749_v40 = vadd.f32 %v2062_v62, %v4853_v30  ;;  %v3813_v45 = vadd.f32 %v2448_v4, %v4857_v35  ;;  %v2064_v23 = vpop.f32.mrb[125].mxu0  ;;  %v2450_v20 = vpop.f32.mrb[125].mxu1 }
 0x2f3   :  { %v3750_v28 = vadd.f32 %v2064_v23, %v4861_v13  ;;  %v3814_v48 = vadd.f32 %v2450_v20, %v4865_v19  ;;  %v2066_v5 = vpop.f32.mrb[126].mxu0  ;;  %v2452_v9 = vpop.f32.mrb[126].mxu1  ;;  %3056 = vmatprep.mubr.bf16.mxu0 %v2642_v15  ;;  %3217 = vmatprep.mubr.bf16.mxu1 %v2644_v44 }
 0x2f4   :  { %v3751_v25 = vadd.f32 %v2066_v5, %v4853_v30  ;;  %v3815_v22 = vadd.f32 %v2452_v9, %v4857_v35  ;;  %v2068_v51 = vpop.f32.mrb[127].mxu0  ;;  %v2454_v56 = vpop.f32.mrb[127].mxu1  ;;  %3057 = vmatmul.mubr.bf16.gmra.mrb[184].mxu0 %v2641_v63  ;;  %3218 = vmatmul.mubr.bf16.gmra.mrb[184].mxu1 %v2643_v52  ;;  %v2577_v50 = vmax.f32 %v3749_v40, 0.0  ;;  %v2579_v36 = vmax.f32 %v3813_v45, 0.0 }
 0x2f5   :  { %v3752_v59 = vadd.f32 %v2068_v51, %v4861_v13  ;;  %v3816_v43 = vadd.f32 %v2454_v56, %v4865_v19  ;;  %v2578_v33 = vmax.f32 %v3750_v28, 0.0  ;;  %v2580_v60 = vmax.f32 %v3814_v48, 0.0  ;;  %v4998_v19 = vld [vmem:[%s5134_s6] ss:$0 sm:$0xff] }
 0x2f6   :  { %v2581_v39 = vmax.f32 %v3751_v25, 0.0  ;;  %v2583_v26 = vmax.f32 %v3815_v22, 0.0 }
 0x2f7   :  { %v2582_v2 = vmax.f32 %v3752_v59, 0.0  ;;  %v2584_v46 = vmax.f32 %v3816_v43, 0.0 }
 0x2f8   :  { %v2645_v16 = vpack.c.bf16 %v2581_v39, %v2577_v50  ;;  %v2647_v30 = vpack.c.bf16 %v2583_v26, %v2579_v36 }
 0x2f9   :  { %v2646_v17 = vpack.c.bf16 %v2582_v2, %v2578_v33  ;;  %v2648_v35 = vpack.c.bf16 %v2584_v46, %v2580_v60 }
 0x2fb   :  { %3064 = vmatprep.mubr.bf16.mxu0 %v2646_v17  ;;  %3225 = vmatprep.mubr.bf16.mxu1 %v2648_v35 }
 0x2fc   :  { %3065 = vmatmul.mubr.bf16.gmra.mrb[188].mxu0 %v2645_v16  ;;  %3226 = vmatmul.mubr.bf16.gmra.mrb[188].mxu1 %v2647_v30 }
 0x357   :  { %v3481_v21 = vpop.f32.mrb[128].mxu0  ;;  %v3593_v13 = vpop.f32.mrb[128].mxu1 }
 0x358   :  { %v3482_v24 = vpop.f32.mrb[129].mxu0  ;;  %v3594_v29 = vpop.f32.mrb[129].mxu1 }
 0x359   :  { %v3483_v31 = vadd.f32 %v3482_v24, %v3481_v21  ;;  %v3595_v32 = vadd.f32 %v3594_v29, %v3593_v13  ;;  %v3484_v34 = vpop.f32.mrb[130].mxu0  ;;  %v3596_v37 = vpop.f32.mrb[130].mxu1 }
 0x35a   :  { %v3485_v41 = vpop.f32.mrb[131].mxu0  ;;  %v3597_v38 = vpop.f32.mrb[131].mxu1 }
 0x35b   :  { %v2947_v27 = vadd.f32 %v3483_v31, %v4998_v19  ;;  %v3486_v61 = vadd.f32 %v3485_v41, %v3484_v34  ;;  %v3598_v0 = vadd.f32 %v3597_v38, %v3596_v37 }
 0x35d   :  { %v3108_v42 = vadd.f32 %v3595_v32, %v2947_v27  ;;  %v2950_v1 = vadd.f32 %v3486_v61, %v4998_v19 }
 0x35f   :  { %3234 = vst [vmem:[%s5135_s7] sm:$0xff] %v3108_v42  ;;  %v3111_v47 = vadd.f32 %v3598_v0, %v2950_v1  ;;  %v3487_v49 = vpop.f32.mrb[132].mxu0  ;;  %v3599_v53 = vpop.f32.mrb[132].mxu1 }
 0x360   :  { %v3488_v55 = vpop.f32.mrb[133].mxu0  ;;  %v3600_v54 = vpop.f32.mrb[133].mxu1 }
 0x361   :  { %3235 = vst [vmem:[%s5135_s7 + $0x8] sm:$0xff] %v3111_v47  ;;  %v3489_v57 = vadd.f32 %v3488_v55, %v3487_v49  ;;  %v3601_v58 = vadd.f32 %v3600_v54, %v3599_v53  ;;  %v3490_v3 = vpop.f32.mrb[134].mxu0  ;;  %v3602_v18 = vpop.f32.mrb[134].mxu1 }
 0x362   :  { %v3491_v6 = vpop.f32.mrb[135].mxu0  ;;  %v3603_v7 = vpop.f32.mrb[135].mxu1 }
 0x363   :  { %v2955_v8 = vadd.f32 %v3489_v57, %v4998_v19  ;;  %v3492_v10 = vadd.f32 %v3491_v6, %v3490_v3  ;;  %v3604_v11 = vadd.f32 %v3603_v7, %v3602_v18 }
 0x365   :  { %v3116_v12 = vadd.f32 %v3601_v58, %v2955_v8  ;;  %v2958_v14 = vadd.f32 %v3492_v10, %v4998_v19 }
 0x367   :  { %3236 = vst [vmem:[%s5135_s7 + $0x10] sm:$0xff] %v3116_v12  ;;  %v3119_v63 = vadd.f32 %v3604_v11, %v2958_v14  ;;  %v3493_v52 = vpop.f32.mrb[136].mxu0  ;;  %v3605_v15 = vpop.f32.mrb[136].mxu1 }
 0x368   :  { %v3494_v44 = vpop.f32.mrb[137].mxu0  ;;  %v3606_v62 = vpop.f32.mrb[137].mxu1 }
 0x369   :  { %3237 = vst [vmem:[%s5135_s7 + $0x18] sm:$0xff] %v3119_v63  ;;  %v3495_v4 = vadd.f32 %v3494_v44, %v3493_v52  ;;  %v3607_v40 = vadd.f32 %v3606_v62, %v3605_v15  ;;  %v3496_v45 = vpop.f32.mrb[138].mxu0  ;;  %v3608_v23 = vpop.f32.mrb[138].mxu1 }
 0x36a   :  { %v3497_v20 = vpop.f32.mrb[139].mxu0  ;;  %v3609_v28 = vpop.f32.mrb[139].mxu1 }
 0x36b   :  { %v2963_v48 = vadd.f32 %v3495_v4, %v4998_v19  ;;  %v3498_v5 = vadd.f32 %v3497_v20, %v3496_v45  ;;  %v3610_v9 = vadd.f32 %v3609_v28, %v3608_v23 }
 0x36d   :  { %v3124_v25 = vadd.f32 %v3607_v40, %v2963_v48  ;;  %v2966_v22 = vadd.f32 %v3498_v5, %v4998_v19 }
 0x36f   :  { %3238 = vst [vmem:[%s5135_s7 + $0x20] sm:$0xff] %v3124_v25  ;;  %v3127_v51 = vadd.f32 %v3610_v9, %v2966_v22  ;;  %v3499_v56 = vpop.f32.mrb[140].mxu0  ;;  %v3611_v59 = vpop.f32.mrb[140].mxu1 }
 0x370   :  { %v3500_v43 = vpop.f32.mrb[141].mxu0  ;;  %v3612_v50 = vpop.f32.mrb[141].mxu1 }
 0x371   :  { %3239 = vst [vmem:[%s5135_s7 + $0x28] sm:$0xff] %v3127_v51  ;;  %v3501_v36 = vadd.f32 %v3500_v43, %v3499_v56  ;;  %v3613_v39 = vadd.f32 %v3612_v50, %v3611_v59  ;;  %v3502_v26 = vpop.f32.mrb[142].mxu0  ;;  %v3614_v33 = vpop.f32.mrb[142].mxu1 }
 0x372   :  { %v3503_v60 = vpop.f32.mrb[143].mxu0  ;;  %v3615_v2 = vpop.f32.mrb[143].mxu1 }
 0x373   :  { %v2971_v46 = vadd.f32 %v3501_v36, %v4998_v19  ;;  %v3504_v16 = vadd.f32 %v3503_v60, %v3502_v26  ;;  %v3616_v30 = vadd.f32 %v3615_v2, %v3614_v33 }
 0x375   :  { %v3132_v17 = vadd.f32 %v3613_v39, %v2971_v46  ;;  %v2974_v35 = vadd.f32 %v3504_v16, %v4998_v19 }
 0x377   :  { %3240 = vst [vmem:[%s5135_s7 + $0x30] sm:$0xff] %v3132_v17  ;;  %v3135_v21 = vadd.f32 %v3616_v30, %v2974_v35  ;;  %v3505_v13 = vpop.f32.mrb[144].mxu0  ;;  %v3617_v24 = vpop.f32.mrb[144].mxu1 }
 0x378   :  { %v3506_v29 = vpop.f32.mrb[145].mxu0  ;;  %v3618_v31 = vpop.f32.mrb[145].mxu1 }
 0x379   :  { %3241 = vst [vmem:[%s5135_s7 + $0x38] sm:$0xff] %v3135_v21  ;;  %v3507_v32 = vadd.f32 %v3506_v29, %v3505_v13  ;;  %v3619_v34 = vadd.f32 %v3618_v31, %v3617_v24  ;;  %v3508_v37 = vpop.f32.mrb[146].mxu0  ;;  %v3620_v41 = vpop.f32.mrb[146].mxu1 }
 0x37a   :  { %v3509_v38 = vpop.f32.mrb[147].mxu0  ;;  %v3621_v27 = vpop.f32.mrb[147].mxu1 }
 0x37b   :  { %v2979_v61 = vadd.f32 %v3507_v32, %v4998_v19  ;;  %v3510_v0 = vadd.f32 %v3509_v38, %v3508_v37  ;;  %v3622_v42 = vadd.f32 %v3621_v27, %v3620_v41 }
 0x37d   :  { %v3140_v1 = vadd.f32 %v3619_v34, %v2979_v61  ;;  %v2982_v47 = vadd.f32 %v3510_v0, %v4998_v19 }
 0x37f   :  { %3242 = vst [vmem:[%s5135_s7 + $0x40] sm:$0xff] %v3140_v1  ;;  %v3143_v49 = vadd.f32 %v3622_v42, %v2982_v47  ;;  %v3511_v53 = vpop.f32.mrb[148].mxu0  ;;  %v3623_v55 = vpop.f32.mrb[148].mxu1 }
 0x380   :  { %v3512_v54 = vpop.f32.mrb[149].mxu0  ;;  %v3624_v57 = vpop.f32.mrb[149].mxu1 }
 0x381   :  { %3243 = vst [vmem:[%s5135_s7 + $0x48] sm:$0xff] %v3143_v49  ;;  %v3513_v58 = vadd.f32 %v3512_v54, %v3511_v53  ;;  %v3625_v3 = vadd.f32 %v3624_v57, %v3623_v55  ;;  %v3514_v18 = vpop.f32.mrb[150].mxu0  ;;  %v3626_v6 = vpop.f32.mrb[150].mxu1 }
 0x382   :  { %v3515_v7 = vpop.f32.mrb[151].mxu0  ;;  %v3627_v8 = vpop.f32.mrb[151].mxu1 }
 0x383   :  { %v2987_v10 = vadd.f32 %v3513_v58, %v4998_v19  ;;  %v3516_v11 = vadd.f32 %v3515_v7, %v3514_v18  ;;  %v3628_v12 = vadd.f32 %v3627_v8, %v3626_v6 }
 0x385   :  { %v3148_v14 = vadd.f32 %v3625_v3, %v2987_v10  ;;  %v2990_v63 = vadd.f32 %v3516_v11, %v4998_v19 }
 0x387   :  { %3244 = vst [vmem:[%s5135_s7 + $0x50] sm:$0xff] %v3148_v14  ;;  %v3151_v52 = vadd.f32 %v3628_v12, %v2990_v63  ;;  %v3517_v15 = vpop.f32.mrb[152].mxu0  ;;  %v3629_v44 = vpop.f32.mrb[152].mxu1 }
 0x388   :  { %v3518_v62 = vpop.f32.mrb[153].mxu0  ;;  %v3630_v4 = vpop.f32.mrb[153].mxu1 }
 0x389   :  { %3245 = vst [vmem:[%s5135_s7 + $0x58] sm:$0xff] %v3151_v52  ;;  %v3519_v40 = vadd.f32 %v3518_v62, %v3517_v15  ;;  %v3631_v45 = vadd.f32 %v3630_v4, %v3629_v44  ;;  %v3520_v23 = vpop.f32.mrb[154].mxu0  ;;  %v3632_v20 = vpop.f32.mrb[154].mxu1 }
 0x38a   :  { %v3521_v28 = vpop.f32.mrb[155].mxu0  ;;  %v3633_v48 = vpop.f32.mrb[155].mxu1 }
 0x38b   :  { %v2995_v5 = vadd.f32 %v3519_v40, %v4998_v19  ;;  %v3522_v9 = vadd.f32 %v3521_v28, %v3520_v23  ;;  %v3634_v25 = vadd.f32 %v3633_v48, %v3632_v20 }
 0x38d   :  { %v3156_v22 = vadd.f32 %v3631_v45, %v2995_v5  ;;  %v2998_v51 = vadd.f32 %v3522_v9, %v4998_v19 }
 0x38f   :  { %3246 = vst [vmem:[%s5135_s7 + $0x60] sm:$0xff] %v3156_v22  ;;  %v3159_v56 = vadd.f32 %v3634_v25, %v2998_v51  ;;  %v3523_v59 = vpop.f32.mrb[156].mxu0  ;;  %v3635_v43 = vpop.f32.mrb[156].mxu1 }
 0x390   :  { %v3524_v50 = vpop.f32.mrb[157].mxu0  ;;  %v3636_v36 = vpop.f32.mrb[157].mxu1 }
 0x391   :  { %3247 = vst [vmem:[%s5135_s7 + $0x68] sm:$0xff] %v3159_v56  ;;  %v3525_v39 = vadd.f32 %v3524_v50, %v3523_v59  ;;  %v3637_v26 = vadd.f32 %v3636_v36, %v3635_v43  ;;  %v3526_v33 = vpop.f32.mrb[158].mxu0  ;;  %v3638_v60 = vpop.f32.mrb[158].mxu1 }
 0x392   :  { %v3527_v2 = vpop.f32.mrb[159].mxu0  ;;  %v3639_v46 = vpop.f32.mrb[159].mxu1 }
 0x393   :  { %v3003_v16 = vadd.f32 %v3525_v39, %v4998_v19  ;;  %v3528_v30 = vadd.f32 %v3527_v2, %v3526_v33  ;;  %v3640_v17 = vadd.f32 %v3639_v46, %v3638_v60 }
 0x395   :  { %v3164_v35 = vadd.f32 %v3637_v26, %v3003_v16  ;;  %v3006_v21 = vadd.f32 %v3528_v30, %v4998_v19 }
 0x397   :  { %3248 = vst [vmem:[%s5135_s7 + $0x70] sm:$0xff] %v3164_v35  ;;  %v3167_v13 = vadd.f32 %v3640_v17, %v3006_v21  ;;  %v3529_v24 = vpop.f32.mrb[160].mxu0  ;;  %v3641_v29 = vpop.f32.mrb[160].mxu1 }
 0x398   :  { %v3530_v31 = vpop.f32.mrb[161].mxu0  ;;  %v3642_v32 = vpop.f32.mrb[161].mxu1 }
 0x399   :  { %3249 = vst [vmem:[%s5135_s7 + $0x78] sm:$0xff] %v3167_v13  ;;  %v3531_v34 = vadd.f32 %v3530_v31, %v3529_v24  ;;  %v3643_v37 = vadd.f32 %v3642_v32, %v3641_v29  ;;  %v3532_v41 = vpop.f32.mrb[162].mxu0  ;;  %v3644_v38 = vpop.f32.mrb[162].mxu1 }
 0x39a   :  { %v3533_v27 = vpop.f32.mrb[163].mxu0  ;;  %v3645_v61 = vpop.f32.mrb[163].mxu1 }
 0x39b   :  { %v3011_v0 = vadd.f32 %v3531_v34, %v4998_v19  ;;  %v3534_v42 = vadd.f32 %v3533_v27, %v3532_v41  ;;  %v3646_v1 = vadd.f32 %v3645_v61, %v3644_v38 }
 0x39d   :  { %v3172_v47 = vadd.f32 %v3643_v37, %v3011_v0  ;;  %v3014_v49 = vadd.f32 %v3534_v42, %v4998_v19 }
 0x39f   :  { %3250 = vst [vmem:[%s5135_s7 + $0x80] sm:$0xff] %v3172_v47  ;;  %v3175_v53 = vadd.f32 %v3646_v1, %v3014_v49  ;;  %v3535_v55 = vpop.f32.mrb[164].mxu0  ;;  %v3647_v54 = vpop.f32.mrb[164].mxu1 }
 0x3a0   :  { %v3536_v57 = vpop.f32.mrb[165].mxu0  ;;  %v3648_v58 = vpop.f32.mrb[165].mxu1 }
 0x3a1   :  { %3251 = vst [vmem:[%s5135_s7 + $0x88] sm:$0xff] %v3175_v53  ;;  %v3537_v3 = vadd.f32 %v3536_v57, %v3535_v55  ;;  %v3649_v18 = vadd.f32 %v3648_v58, %v3647_v54  ;;  %v3538_v6 = vpop.f32.mrb[166].mxu0  ;;  %v3650_v7 = vpop.f32.mrb[166].mxu1 }
 0x3a2   :  { %v3539_v8 = vpop.f32.mrb[167].mxu0  ;;  %v3651_v10 = vpop.f32.mrb[167].mxu1 }
 0x3a3   :  { %v3019_v11 = vadd.f32 %v3537_v3, %v4998_v19  ;;  %v3540_v12 = vadd.f32 %v3539_v8, %v3538_v6  ;;  %v3652_v14 = vadd.f32 %v3651_v10, %v3650_v7 }
 0x3a5   :  { %v3180_v63 = vadd.f32 %v3649_v18, %v3019_v11  ;;  %v3022_v52 = vadd.f32 %v3540_v12, %v4998_v19 }
 0x3a7   :  { %3252 = vst [vmem:[%s5135_s7 + $0x90] sm:$0xff] %v3180_v63  ;;  %v3183_v15 = vadd.f32 %v3652_v14, %v3022_v52  ;;  %v3541_v44 = vpop.f32.mrb[168].mxu0  ;;  %v3653_v62 = vpop.f32.mrb[168].mxu1 }
 0x3a8   :  { %v3542_v4 = vpop.f32.mrb[169].mxu0  ;;  %v3654_v40 = vpop.f32.mrb[169].mxu1 }
 0x3a9   :  { %3253 = vst [vmem:[%s5135_s7 + $0x98] sm:$0xff] %v3183_v15  ;;  %v3543_v45 = vadd.f32 %v3542_v4, %v3541_v44  ;;  %v3655_v23 = vadd.f32 %v3654_v40, %v3653_v62  ;;  %v3544_v20 = vpop.f32.mrb[170].mxu0  ;;  %v3656_v28 = vpop.f32.mrb[170].mxu1 }
 0x3aa   :  { %v3545_v48 = vpop.f32.mrb[171].mxu0  ;;  %v3657_v5 = vpop.f32.mrb[171].mxu1 }
 0x3ab   :  { %v3027_v9 = vadd.f32 %v3543_v45, %v4998_v19  ;;  %v3546_v25 = vadd.f32 %v3545_v48, %v3544_v20  ;;  %v3658_v22 = vadd.f32 %v3657_v5, %v3656_v28 }
 0x3ad   :  { %v3188_v51 = vadd.f32 %v3655_v23, %v3027_v9  ;;  %v3030_v56 = vadd.f32 %v3546_v25, %v4998_v19 }
 0x3af   :  { %3254 = vst [vmem:[%s5135_s7 + $0xa0] sm:$0xff] %v3188_v51  ;;  %v3191_v59 = vadd.f32 %v3658_v22, %v3030_v56  ;;  %v3547_v43 = vpop.f32.mrb[172].mxu0  ;;  %v3659_v50 = vpop.f32.mrb[172].mxu1 }
 0x3b0   :  { %v3548_v36 = vpop.f32.mrb[173].mxu0  ;;  %v3660_v39 = vpop.f32.mrb[173].mxu1 }
 0x3b1   :  { %3255 = vst [vmem:[%s5135_s7 + $0xa8] sm:$0xff] %v3191_v59  ;;  %v3549_v26 = vadd.f32 %v3548_v36, %v3547_v43  ;;  %v3661_v33 = vadd.f32 %v3660_v39, %v3659_v50  ;;  %v3550_v60 = vpop.f32.mrb[174].mxu0  ;;  %v3662_v2 = vpop.f32.mrb[174].mxu1 }
 0x3b2   :  { %v3551_v46 = vpop.f32.mrb[175].mxu0  ;;  %v3663_v16 = vpop.f32.mrb[175].mxu1 }
 0x3b3   :  { %v3035_v30 = vadd.f32 %v3549_v26, %v4998_v19  ;;  %v3552_v17 = vadd.f32 %v3551_v46, %v3550_v60  ;;  %v3664_v35 = vadd.f32 %v3663_v16, %v3662_v2 }
 0x3b5   :  { %v3196_v21 = vadd.f32 %v3661_v33, %v3035_v30  ;;  %v3038_v13 = vadd.f32 %v3552_v17, %v4998_v19 }
 0x3b7   :  { %3256 = vst [vmem:[%s5135_s7 + $0xb0] sm:$0xff] %v3196_v21  ;;  %v3199_v24 = vadd.f32 %v3664_v35, %v3038_v13  ;;  %v3553_v29 = vpop.f32.mrb[176].mxu0  ;;  %v3665_v31 = vpop.f32.mrb[176].mxu1 }
 0x3b8   :  { %v3554_v32 = vpop.f32.mrb[177].mxu0  ;;  %v3666_v34 = vpop.f32.mrb[177].mxu1 }
 0x3b9   :  { %3257 = vst [vmem:[%s5135_s7 + $0xb8] sm:$0xff] %v3199_v24  ;;  %v3555_v37 = vadd.f32 %v3554_v32, %v3553_v29  ;;  %v3667_v41 = vadd.f32 %v3666_v34, %v3665_v31  ;;  %v3556_v38 = vpop.f32.mrb[178].mxu0  ;;  %v3668_v27 = vpop.f32.mrb[178].mxu1 }
 0x3ba   :  { %v3557_v61 = vpop.f32.mrb[179].mxu0  ;;  %v3669_v0 = vpop.f32.mrb[179].mxu1 }
 0x3bb   :  { %v3043_v42 = vadd.f32 %v3555_v37, %v4998_v19  ;;  %v3558_v1 = vadd.f32 %v3557_v61, %v3556_v38  ;;  %v3670_v47 = vadd.f32 %v3669_v0, %v3668_v27 }
 0x3bd   :  { %v3204_v49 = vadd.f32 %v3667_v41, %v3043_v42  ;;  %v3046_v53 = vadd.f32 %v3558_v1, %v4998_v19 }
 0x3bf   :  { %3258 = vst [vmem:[%s5135_s7 + $0xc0] sm:$0xff] %v3204_v49  ;;  %v3207_v55 = vadd.f32 %v3670_v47, %v3046_v53  ;;  %v3559_v54 = vpop.f32.mrb[180].mxu0  ;;  %v3671_v57 = vpop.f32.mrb[180].mxu1 }
 0x3c0   :  { %v3560_v58 = vpop.f32.mrb[181].mxu0  ;;  %v3672_v3 = vpop.f32.mrb[181].mxu1 }
 0x3c1   :  { %3259 = vst [vmem:[%s5135_s7 + $0xc8] sm:$0xff] %v3207_v55  ;;  %v3561_v18 = vadd.f32 %v3560_v58, %v3559_v54  ;;  %v3673_v6 = vadd.f32 %v3672_v3, %v3671_v57  ;;  %v3562_v7 = vpop.f32.mrb[182].mxu0  ;;  %v3674_v8 = vpop.f32.mrb[182].mxu1 }
 0x3c2   :  { %v3563_v10 = vpop.f32.mrb[183].mxu0  ;;  %v3675_v11 = vpop.f32.mrb[183].mxu1 }
 0x3c3   :  { %v3051_v12 = vadd.f32 %v3561_v18, %v4998_v19  ;;  %v3564_v14 = vadd.f32 %v3563_v10, %v3562_v7  ;;  %v3676_v63 = vadd.f32 %v3675_v11, %v3674_v8 }
 0x3c5   :  { %v3212_v52 = vadd.f32 %v3673_v6, %v3051_v12  ;;  %v3054_v15 = vadd.f32 %v3564_v14, %v4998_v19 }
 0x3c7   :  { %3260 = vst [vmem:[%s5135_s7 + $0xd0] sm:$0xff] %v3212_v52  ;;  %v3215_v44 = vadd.f32 %v3676_v63, %v3054_v15  ;;  %v3565_v62 = vpop.f32.mrb[184].mxu0  ;;  %v3677_v4 = vpop.f32.mrb[184].mxu1 }
 0x3c8   :  { %v3566_v40 = vpop.f32.mrb[185].mxu0  ;;  %v3678_v45 = vpop.f32.mrb[185].mxu1 }
 0x3c9   :  { %3261 = vst [vmem:[%s5135_s7 + $0xd8] sm:$0xff] %v3215_v44  ;;  %v3567_v23 = vadd.f32 %v3566_v40, %v3565_v62  ;;  %v3679_v20 = vadd.f32 %v3678_v45, %v3677_v4  ;;  %v3568_v28 = vpop.f32.mrb[186].mxu0  ;;  %v3680_v48 = vpop.f32.mrb[186].mxu1 }
 0x3ca   :  { %v3569_v5 = vpop.f32.mrb[187].mxu0  ;;  %v3681_v9 = vpop.f32.mrb[187].mxu1 }
 0x3cb   :  { %v3059_v25 = vadd.f32 %v3567_v23, %v4998_v19  ;;  %v3570_v22 = vadd.f32 %v3569_v5, %v3568_v28  ;;  %v3682_v51 = vadd.f32 %v3681_v9, %v3680_v48 }
 0x3cd   :  { %v3220_v56 = vadd.f32 %v3679_v20, %v3059_v25  ;;  %v3062_v59 = vadd.f32 %v3570_v22, %v4998_v19 }
 0x3cf   :  { %3262 = vst [vmem:[%s5135_s7 + $0xe0] sm:$0xff] %v3220_v56  ;;  %v3223_v43 = vadd.f32 %v3682_v51, %v3062_v59  ;;  %v3571_v50 = vpop.f32.mrb[188].mxu0  ;;  %v3683_v36 = vpop.f32.mrb[188].mxu1 }
 0x3d0   :  { %v3572_v39 = vpop.f32.mrb[189].mxu0  ;;  %v3684_v26 = vpop.f32.mrb[189].mxu1 }
 0x3d1   :  { %3263 = vst [vmem:[%s5135_s7 + $0xe8] sm:$0xff] %v3223_v43  ;;  %v3573_v33 = vadd.f32 %v3572_v39, %v3571_v50  ;;  %v3685_v60 = vadd.f32 %v3684_v26, %v3683_v36  ;;  %v3574_v2 = vpop.f32.mrb[190].mxu0  ;;  %v3686_v46 = vpop.f32.mrb[190].mxu1 }
 0x3d2   :  { %v3575_v16 = vpop.f32.mrb[191].mxu0  ;;  %v3687_v30 = vpop.f32.mrb[191].mxu1 }
 0x3d3   :  { %v3067_v17 = vadd.f32 %v3573_v33, %v4998_v19  ;;  %v3576_v35 = vadd.f32 %v3575_v16, %v3574_v2  ;;  %v3688_v21 = vadd.f32 %v3687_v30, %v3686_v46 }
 0x3d5   :  { %v3228_v13 = vadd.f32 %v3685_v60, %v3067_v17  ;;  %v3070_v24 = vadd.f32 %v3576_v35, %v4998_v19 }
 0x3d7   :  { %3264 = vst [vmem:[%s5135_s7 + $0xf0] sm:$0xff] %v3228_v13  ;;  %v3231_v29 = vadd.f32 %v3688_v21, %v3070_v24 }
 0x3d9   :  { %3265 = vst [vmem:[%s5135_s7 + $0xf8] sm:$0xff] %v3231_v29 }
 0x3da   :  { %3270 = vsyncpa [#allocation3], 1 }
 0x3db   :  { %3271 = vsyncpa [#allocation5], 1 }

</bundles_post_ra>
